<compile_context>
chip_gen: v7x
topology: tpu7x:2x2x1
jax: 0.10.0
libtpu: 0.0.40
codegen_flags: <defaults>
</compile_context>

<pallas_src>
import jax
import jax.numpy as jnp
from jax.experimental import pallas as pl
from jax.experimental.pallas import tpu as pltpu

F_IN = 1000      # inception_v3 logits dim
F_PAD = 1024     # K padded to a multiple of 128 (clean MXU cadence)
H1 = 512
H2 = 128
OUT_CH = 1       # StraiNet default output_channels
OUT_PAD = 128    # lane-dense output tile; wrapper slices [:, :OUT_CH]


def _round_up(x, m):
    return (x + m - 1) // m * m


def _head_kernel(x_ref, w1_ref, b1_ref, w2_ref, b2_ref, w3_ref, b3_ref, o_ref):
    # x tile: (TM, F_PAD) bf16; weights bf16; biases f32.
    # Three MXU matmuls (bf16 in, f32 accumulate) fused with VPU ReLU / bias
    # adds and the EUP tanh; no intermediate HBM traffic.
    x = x_ref[...]
    h1 = jnp.dot(x, w1_ref[...], preferred_element_type=jnp.float32) + b1_ref[...]
    h1 = jnp.maximum(h1, 0.0)
    h2 = jnp.dot(h1.astype(jnp.bfloat16), w2_ref[...],
                 preferred_element_type=jnp.float32) + b2_ref[...]
    h2 = jnp.maximum(h2, 0.0)
    h3 = jnp.dot(h2.astype(jnp.bfloat16), w3_ref[...],
                 preferred_element_type=jnp.float32) + b3_ref[...]
    o_ref[...] = jnp.tanh(h3).astype(o_ref.dtype)


def _pad_params(params):
    """Pad K (1000->1024) and OUT (OUT_CH->128) with zeros; cast weights to bf16."""
    w1, b1, w2, b2, w3, b3 = params
    w1p = jnp.zeros((F_PAD, H1), jnp.float32).at[: w1.shape[0], :].set(w1)
    w3p = jnp.zeros((H2, OUT_PAD), jnp.float32).at[:, : w3.shape[1]].set(w3)
    b3p = jnp.zeros((1, OUT_PAD), jnp.float32).at[:, : b3.shape[1]].set(b3)
    return (w1p.astype(jnp.bfloat16), b1,
            w2.astype(jnp.bfloat16), b2,
            w3p.astype(jnp.bfloat16), b3p)


def strainet_head(features, params, *, tm=512):
    """features: (N, 1000) f32 backbone logits -> (N, OUT_CH) f32 in [-1, 1]."""
    n, f = features.shape
    w1, b1, w2, b2, w3, b3 = _pad_params(params)

    # Batch tile: multiple of 256 (keeps the 2x256^2 MXU full on v6e/v7x),
    # clamped so tiny batches don't over-pad.
    tm = min(tm, _round_up(max(n, 1), 256))
    n_pad = _round_up(n, tm)

    # Zero-pad batch rows and the K dim; zero rows/cols are sliced off below
    # and contribute nothing to the valid outputs.
    x = jnp.zeros((n_pad, F_PAD), jnp.bfloat16)
    x = x.at[:n, :f].set(features.astype(jnp.bfloat16))

    grid = (n_pad // tm,)

    def const_spec(shape):
        # Whole-array block, same block every grid step -> stays VMEM-resident.
        return pl.BlockSpec(shape, lambda i: tuple(0 for _ in shape))

    out = pl.pallas_call(
        _head_kernel,
        out_shape=jax.ShapeDtypeStruct((n_pad, OUT_PAD), jnp.float32),
        grid=grid,
        in_specs=[
            pl.BlockSpec((tm, F_PAD), lambda i: (i, 0)),   # streamed feature tiles
            const_spec(w1.shape), const_spec(b1.shape),
            const_spec(w2.shape), const_spec(b2.shape),
            const_spec(w3.shape), const_spec(b3.shape),
        ],
        out_specs=pl.BlockSpec((tm, OUT_PAD), lambda i: (i, 0)),
        compiler_params=pltpu.CompilerParams(
            dimension_semantics=("parallel",),
            vmem_limit_bytes=24 << 20,
        ),
    )(x, w1, b1, w2, b2, w3, b3)

    return out[:n, :OUT_CH]


def init_params(key):
    """Deterministic init matching the nn.Linear shapes of the regression head.

    Weights kept as (in, out) == W_pt.T; biases as (1, out) for 2-D refs.
    Stored unpadded in f32; the wrapper pads/casts for the kernel.
    """
    k1, k2, k3, k4, k5, k6 = jax.random.split(key, 6)

    def uniform(k, shape, fan_in):
        bound = 1.0 / jnp.sqrt(jnp.float32(fan_in))
        return jax.random.uniform(k, shape, jnp.float32, -bound, bound)

    w1 = uniform(k1, (F_IN, H1), F_IN)
    b1 = uniform(k2, (1, H1), F_IN)
    w2 = uniform(k3, (H1, H2), H1)
    b2 = uniform(k4, (1, H2), H1)
    w3 = uniform(k5, (H2, OUT_CH), H2)
    b3 = uniform(k6, (1, OUT_CH), H2)
    return (w1, b1, w2, b2, w3, b3)


def strainet_head_ref(features, params):
    """Pure-JAX f32 reference (matches the PyTorch head)."""
    w1, b1, w2, b2, w3, b3 = params
    h = jnp.maximum(features @ w1 + b1, 0.0)
    h = jnp.maximum(h @ w2 + b2, 0.0)
    return jnp.tanh(h @ w3 + b3)


if __name__ == "__main__":
    key = jax.random.PRNGKey(0)
    k_feat, k_par = jax.random.split(key)
    params = init_params(k_par)

    # Small batch of backbone features (what StraiNet's head consumes).
    # The original module's image input would be (N, 3, 299, 299) NCHW.
    batch = 2
    features = jax.random.normal(k_feat, (batch, F_IN), jnp.float32)

    out = jax.block_until_ready(strainet_head(features, params))
    ref = strainet_head_ref(features, params)
    assert out.shape == (batch, OUT_CH)
    # bf16 matmul inputs with f32 accumulation -> relaxed tolerance vs f32 ref
    # (outputs are tanh-bounded in [-1, 1]).
    assert jnp.allclose(out, ref, atol=2e-2, rtol=0.0), "mismatch vs JAX reference"

    # Exercise multiple grid steps + ragged batch padding path.
    batch2 = 300
    features2 = jax.random.normal(jax.random.PRNGKey(7), (batch2, F_IN), jnp.float32)
    out2 = jax.block_until_ready(strainet_head(features2, params, tm=256))
    ref2 = strainet_head_ref(features2, params)
    assert out2.shape == (batch2, OUT_CH)
    assert jnp.allclose(out2, ref2, atol=2e-2, rtol=0.0), "mismatch (tiled) vs reference"

    print("KERNEL_OK")
</pallas_src>

<mosaic_0001>
module attributes {stable_mosaic.version = 11 : i64} {
  func.func @_head_kernel(%arg0: i32, %arg1: memref<256x1024xbf16, #tpu.memory_space<vmem>>, %arg2: memref<1024x512xbf16, #tpu.memory_space<vmem>>, %arg3: memref<1x512xf32, #tpu.memory_space<vmem>>, %arg4: memref<512x128xbf16, #tpu.memory_space<vmem>>, %arg5: memref<1x128xf32, #tpu.memory_space<vmem>>, %arg6: memref<128x128xbf16, #tpu.memory_space<vmem>>, %arg7: memref<1x128xf32, #tpu.memory_space<vmem>>, %arg8: memref<256x128xf32, #tpu.memory_space<vmem>>) attributes {dimension_semantics = [#tpu.dimension_semantics<parallel>], iteration_bounds = array<i64: 1>, scalar_prefetch = 0 : i64, scratch_operands = 0 : i64, tpu.core_type = #tpu.core_type<tc>, window_params = [{transform_indices = @transform_0, window_bounds = array<i64: 256, 1024>}, {pipeline_mode = #tpu.pipeline_mode<synchronous>, transform_indices = @transform_1, window_bounds = array<i64: 1024, 512>}, {pipeline_mode = #tpu.pipeline_mode<synchronous>, transform_indices = @transform_2, window_bounds = array<i64: 1, 512>}, {pipeline_mode = #tpu.pipeline_mode<synchronous>, transform_indices = @transform_3, window_bounds = array<i64: 512, 128>}, {pipeline_mode = #tpu.pipeline_mode<synchronous>, transform_indices = @transform_4, window_bounds = array<i64: 1, 128>}, {pipeline_mode = #tpu.pipeline_mode<synchronous>, transform_indices = @transform_5, window_bounds = array<i64: 128, 128>}, {pipeline_mode = #tpu.pipeline_mode<synchronous>, transform_indices = @transform_6, window_bounds = array<i64: 1, 128>}, {transform_indices = @transform_7, window_bounds = array<i64: 256, 128>}]} {
    %c0 = arith.constant 0 : index
    %c0_0 = arith.constant 0 : index
    %0 = vector.load %arg1[%c0, %c0_0] : memref<256x1024xbf16, #tpu.memory_space<vmem>>, vector<256x1024xbf16>
    %c0_1 = arith.constant 0 : index
    %c0_2 = arith.constant 0 : index
    %1 = vector.load %arg2[%c0_1, %c0_2] : memref<1024x512xbf16, #tpu.memory_space<vmem>>, vector<1024x512xbf16>
    %cst = arith.constant dense<0.000000e+00> : vector<256x512xf32>
    %2 = tpu.matmul %0, %1, %cst {dimension_numbers = #tpu.dot_dimension_numbers<[1], [0], [0], [1], [0, 0, 1, 1], [], []>} : vector<256x1024xbf16>, vector<1024x512xbf16>, vector<256x512xf32> -> vector<256x512xf32>
    %c0_3 = arith.constant 0 : index
    %c0_4 = arith.constant 0 : index
    %3 = vector.load %arg3[%c0_3, %c0_4] : memref<1x512xf32, #tpu.memory_space<vmem>>, vector<1x512xf32>
    %4 = vector.broadcast %3 : vector<1x512xf32> to vector<256x512xf32>
    %5 = arith.addf %2, %4 : vector<256x512xf32>
    %cst_5 = arith.constant 0.000000e+00 : f32
    %6 = vector.broadcast %cst_5 : f32 to vector<256x512xf32>
    %7 = arith.maximumf %5, %6 : vector<256x512xf32>
    %8 = arith.truncf %7 : vector<256x512xf32> to vector<256x512xbf16>
    %c0_6 = arith.constant 0 : index
    %c0_7 = arith.constant 0 : index
    %9 = vector.load %arg4[%c0_6, %c0_7] : memref<512x128xbf16, #tpu.memory_space<vmem>>, vector<512x128xbf16>
    %cst_8 = arith.constant dense<0.000000e+00> : vector<256x128xf32>
    %10 = tpu.matmul %8, %9, %cst_8 {dimension_numbers = #tpu.dot_dimension_numbers<[1], [0], [0], [1], [0, 0, 1, 1], [], []>} : vector<256x512xbf16>, vector<512x128xbf16>, vector<256x128xf32> -> vector<256x128xf32>
    %c0_9 = arith.constant 0 : index
    %c0_10 = arith.constant 0 : index
    %11 = vector.load %arg5[%c0_9, %c0_10] : memref<1x128xf32, #tpu.memory_space<vmem>>, vector<1x128xf32>
    %12 = vector.broadcast %11 : vector<1x128xf32> to vector<256x128xf32>
    %13 = arith.addf %10, %12 : vector<256x128xf32>
    %cst_11 = arith.constant 0.000000e+00 : f32
    %14 = vector.broadcast %cst_11 : f32 to vector<256x128xf32>
    %15 = arith.maximumf %13, %14 : vector<256x128xf32>
    %16 = arith.truncf %15 : vector<256x128xf32> to vector<256x128xbf16>
    %c0_12 = arith.constant 0 : index
    %c0_13 = arith.constant 0 : index
    %17 = vector.load %arg6[%c0_12, %c0_13] : memref<128x128xbf16, #tpu.memory_space<vmem>>, vector<128x128xbf16>
    %cst_14 = arith.constant dense<0.000000e+00> : vector<256x128xf32>
    %18 = tpu.matmul %16, %17, %cst_14 {dimension_numbers = #tpu.dot_dimension_numbers<[1], [0], [0], [1], [0, 0, 1, 1], [], []>} : vector<256x128xbf16>, vector<128x128xbf16>, vector<256x128xf32> -> vector<256x128xf32>
    %c0_15 = arith.constant 0 : index
    %c0_16 = arith.constant 0 : index
    %19 = vector.load %arg7[%c0_15, %c0_16] : memref<1x128xf32, #tpu.memory_space<vmem>>, vector<1x128xf32>
    %20 = vector.broadcast %19 : vector<1x128xf32> to vector<256x128xf32>
    %21 = arith.addf %18, %20 : vector<256x128xf32>
    %22 = math.tanh %21 : vector<256x128xf32>
    %c0_17 = arith.constant 0 : index
    %c0_18 = arith.constant 0 : index
    %23 = vector.load %arg8[%c0_17, %c0_18] : memref<256x128xf32, #tpu.memory_space<vmem>>, vector<256x128xf32>
    tpu.vector_store %arg8[%c0_17, %c0_18], %22 {strides = array<i32>} : memref<256x128xf32, #tpu.memory_space<vmem>>, vector<256x128xf32>,
    return
  }
  func.func @transform_0(%arg0: i32) -> (i32, i32) {
    %c0_i32 = arith.constant 0 : i32
    %c0_i32_0 = arith.constant 0 : i32
    return %arg0, %c0_i32 : i32, i32
  }
  func.func @transform_1(%arg0: i32) -> (i32, i32) {
    %c0_i32 = arith.constant 0 : i32
    %c0_i32_0 = arith.constant 0 : i32
    %c0_i32_1 = arith.constant 0 : i32
    return %c0_i32, %c0_i32_0 : i32, i32
  }
  func.func @transform_2(%arg0: i32) -> (i32, i32) {
    %c0_i32 = arith.constant 0 : i32
    %c0_i32_0 = arith.constant 0 : i32
    %c0_i32_1 = arith.constant 0 : i32
    return %c0_i32, %c0_i32_0 : i32, i32
  }
  func.func @transform_3(%arg0: i32) -> (i32, i32) {
    %c0_i32 = arith.constant 0 : i32
    %c0_i32_0 = arith.constant 0 : i32
    %c0_i32_1 = arith.constant 0 : i32
    return %c0_i32, %c0_i32_0 : i32, i32
  }
  func.func @transform_4(%arg0: i32) -> (i32, i32) {
    %c0_i32 = arith.constant 0 : i32
    %c0_i32_0 = arith.constant 0 : i32
    %c0_i32_1 = arith.constant 0 : i32
    return %c0_i32, %c0_i32_0 : i32, i32
  }
  func.func @transform_5(%arg0: i32) -> (i32, i32) {
    %c0_i32 = arith.constant 0 : i32
    %c0_i32_0 = arith.constant 0 : i32
    %c0_i32_1 = arith.constant 0 : i32
    return %c0_i32, %c0_i32_0 : i32, i32
  }
  func.func @transform_6(%arg0: i32) -> (i32, i32) {
    %c0_i32 = arith.constant 0 : i32
    %c0_i32_0 = arith.constant 0 : i32
    %c0_i32_1 = arith.constant 0 : i32
    return %c0_i32, %c0_i32_0 : i32, i32
  }
  func.func @transform_7(%arg0: i32) -> (i32, i32) {
    %c0_i32 = arith.constant 0 : i32
    %c0_i32_0 = arith.constant 0 : i32
    return %arg0, %c0_i32 : i32, i32
  }
}

</mosaic_0001>

<bundles_post_ra>
// kernel: tpu_custom_call.1
= control target key start
LH: loop header
LB: loop body
LE: loop exit
PB: predicated region body
PF: predicated region fallthrough
CT: control target
= control target key end

     0   :  { %12 = vsyncpa [#allocation3], 0  ;;  %s7480_s0 = inlined_call_operand.hbm [shape: bf16[256,1024], index: 0, kind: input, shape index: {}]   ;;  %s7481_s1 = inlined_call_operand.hbm [shape: bf16[1024,512], index: 1, kind: input, shape index: {}]   ;;  %s7482_s2 = inlined_call_operand.vmem [shape: f32[1,512], index: 2, kind: input, shape index: {}]   ;;  %s7483_s3 = inlined_call_operand.hbm [shape: bf16[512,128], index: 3, kind: input, shape index: {}]   ;;  %s7484_s4 = inlined_call_operand.vmem [shape: f32[1,128], index: 4, kind: input, shape index: {}]   ;;  %s7485_s5 = inlined_call_operand.hbm [shape: bf16[128,128], index: 5, kind: input, shape index: {}]   ;;  %s7486_s6 = inlined_call_operand.vmem [shape: f32[1,128], index: 6, kind: input, shape index: {}]   ;;  %s7487_s7 = inlined_call_operand.hbm [shape: f32[256,128], index: 7, kind: output, shape index: {}]  }
   0x1   :  { %13 = vsyncpa [#allocation6], 0 }
   0x2   :  { %14 = vsyncpa [#allocation9], 0 }
   0x3   :  { %15 = vsyncpa [#allocation4], 0  ;;  %s6962_s24 = smov [#allocation5]   ;;  %s6844_s28 = scalar_lea.hbm %s7481_s1, 32768 }
   0x4   :  { %s33_s25 = sshll.u32 %s6962_s24, 4  ;;  %p6845_p0 = scmp.ne.s32.totalorder %s7481_s1, %s6844_s28  ;;  %s34_s25 = int_to_ptr.vmem [resolvable:$true] %s33_s25 }
   0x5   :  { %p6848_p1 = scmp.lt.u32.totalorder %s6844_s28, %s7481_s1 }
   0x7   :  { %p6850_p2 = pnand %p6848_p1, %p6845_p0 }
   0x9   :  { %6853 = shalt.err (!%p6850_p2)
}
   0xa   :  { %s6854_s10 = scalar_lea.vmem %s34_s25, 32768  ;;  %p6859_p4 = scmp.lt.s32.totalorder %s34_s25, %s34_s25 }
   0xb   :  { %p6855_p3 = scmp.ne.s32.totalorder %s34_s25, %s6854_s10  ;;  %p6860_p5 = scmp.lt.s32.totalorder %s6854_s10, %s6854_s10 }
   0xd   :  { %p6861_p6 = por %p6860_p5, %p6859_p4 }
   0xf   :  { %p6862_p7 = pnand %p6861_p6, %p6855_p3 }
  0x11   :  { %6865 = shalt.err (!%p6862_p7)
}
  0x12   :  { %s6963_s11 = smov 256   ;;  %s6964_s12 = smov 16  }
  0x13   :  { %39 = dma.hbm_to_vmem [thread:$0]  %s7481_s1, 32768, %s34_s25, [#allocation6], %s6963_s11, %s6963_s11, %s6964_s12  }
  0x14   :  { %s6965_s15 = smov [#allocation2]   ;;  %s6866_s19 = scalar_lea.hbm %s7480_s0, 16384 }
  0x15   :  { %s21_s16 = sshll.u32 %s6965_s15, 4  ;;  %p6867_p8 = scmp.ne.s32.totalorder %s7480_s0, %s6866_s19  ;;  %s22_s16 = int_to_ptr.vmem [resolvable:$true] %s21_s16 }
  0x16   :  { %p6870_p9 = scmp.lt.u32.totalorder %s6866_s19, %s7480_s0 }
  0x18   :  { %p6872_p10 = pnand %p6870_p9, %p6867_p8 }
  0x1a   :  { %6875 = shalt.err (!%p6872_p10)
}
  0x1b   :  { %s6876_s24 = scalar_lea.vmem %s22_s16, 16384  ;;  %p6881_p12 = scmp.lt.s32.totalorder %s22_s16, %s22_s16 }
  0x1c   :  { %p6877_p11 = scmp.ne.s32.totalorder %s22_s16, %s6876_s24  ;;  %p6882_p13 = scmp.lt.s32.totalorder %s6876_s24, %s6876_s24 }
  0x1e   :  { %p6883_p0 = por %p6882_p13, %p6881_p12 }
  0x20   :  { %p6884_p1 = pnand %p6883_p0, %p6877_p11 }
  0x22   :  { %6887 = shalt.err (!%p6884_p1)
}
  0x23   :  { %s6966_s1 = smov 512   ;;  %s6967_s25 = smov 32  }
  0x24   :  { %27 = dma.hbm_to_vmem [thread:$0]  %s7480_s0, 16384, %s22_s16, [#allocation3], %s6966_s1, %s6966_s1, %s6967_s25  }
  0x25   :  { %s6968_s28 = smov [#allocation7]   ;;  %s6888_s9 = scalar_lea.hbm %s7483_s3, 4096 }
  0x26   :  { %s47_s29 = sshll.u32 %s6968_s28, 4  ;;  %p6889_p2 = scmp.ne.s32.totalorder %s7483_s3, %s6888_s9  ;;  %s48_s29 = int_to_ptr.vmem [resolvable:$true] %s47_s29 }
  0x27   :  { %p6892_p3 = scmp.lt.u32.totalorder %s6888_s9, %s7483_s3 }
  0x29   :  { %p6894_p4 = pnand %p6892_p3, %p6889_p2 }
  0x2b   :  { %6897 = shalt.err (!%p6894_p4)
}
  0x2c   :  { %s6898_s14 = scalar_lea.vmem %s48_s29, 4096  ;;  %p6903_p6 = scmp.lt.s32.totalorder %s48_s29, %s48_s29 }
  0x2d   :  { %p6899_p5 = scmp.ne.s32.totalorder %s48_s29, %s6898_s14  ;;  %p6904_p7 = scmp.lt.s32.totalorder %s6898_s14, %s6898_s14 }
  0x2f   :  { %p6905_p8 = por %p6904_p7, %p6903_p6 }
  0x31   :  { %p6906_p9 = pnand %p6905_p8, %p6899_p5 }
  0x33   :  { %6909 = shalt.err (!%p6906_p9)
}
  0x34   :  { %s6969_s0 = smov 64   ;;  %s6970_s15 = smov 4  }
  0x35   :  { %53 = dma.hbm_to_vmem [thread:$0]  %s7483_s3, 4096, %s48_s29, [#allocation6], %s6969_s0, %s6969_s0, %s6970_s15  }
  0x36   :  { %s6971_s18 = smov [#allocation8]   ;;  %s6910_s22 = scalar_lea.hbm %s7485_s5, 1024 }
  0x37   :  { %s61_s19 = sshll.u32 %s6971_s18, 4  ;;  %p6911_p10 = scmp.ne.s32.totalorder %s7485_s5, %s6910_s22  ;;  %s62_s19 = int_to_ptr.vmem [resolvable:$true] %s61_s19 }
  0x38   :  { %p6914_p11 = scmp.lt.u32.totalorder %s6910_s22, %s7485_s5 }
  0x3a   :  { %p6916_p12 = pnand %p6914_p11, %p6911_p10 }
  0x3c   :  { %6919 = shalt.err (!%p6916_p12)
}
  0x3d   :  { %s6920_s26 = scalar_lea.vmem %s62_s19, 1024  ;;  %p6925_p0 = scmp.lt.s32.totalorder %s62_s19, %s62_s19 }
  0x3e   :  { %p6921_p13 = scmp.ne.s32.totalorder %s62_s19, %s6920_s26  ;;  %p6926_p1 = scmp.lt.s32.totalorder %s6920_s26, %s6920_s26 }
  0x40   :  { %p6927_p2 = por %p6926_p1, %p6925_p0 }
  0x42   :  { %p6928_p3 = pnand %p6927_p2, %p6921_p13 }
  0x44   :  { %6931 = shalt.err (!%p6928_p3)
}
  0x45   :  { %67 = dma.hbm_to_vmem [thread:$0]  %s7485_s5, 1024, %s62_s19, [#allocation9], %s6969_s0, %s6969_s0, %s6970_s15  }
  0x46   :  { %6954 = dma.done.wait [#allocation3], 16384  }
  0x47   :  { %6955 = vsyncadd [#allocation3], 4294950912 }
  0x48   :  { %6956 = dma.done.wait [#allocation6], 36864  }
  0x49   :  { %6957 = vsyncadd [#allocation6], 4294930432 }
  0x4a   :  { %6958 = dma.done.wait [#allocation9], 1024  }
  0x4b   :  { %6959 = vsyncadd [#allocation9], 4294966272  ;;  %v6356_v0 = vld [vmem:[#allocation5 + $0x4] ss:$16 sps:$4 sm:$0xff]   ;;  %v6358_v1 = vld [vmem:[#allocation5 + $0xc] ss:$16 sps:$4 sm:$0xff]  }
  0x4c   :  { %2409 = vmatprep.subr.bf16.mxu0 %v6356_v0  ;;  %v6360_v2 = vld [vmem:[#allocation5] ss:$16 sps:$4 sm:$0xff]   ;;  %v6361_v3 = vld [vmem:[#allocation5 + $0x8] ss:$16 sps:$4 sm:$0xff]   ;;  %3181 = vmatprep.subr.bf16.mxu1 %v6358_v1  ;;  %v6362_v4 = vld [vmem:[#allocation5 + $0x24] ss:$16 sps:$4 sm:$0xff]  }
  0x4d   :  { %2410 = vmatpush1.bf16.msra.mxu0 %v6360_v2  ;;  %3182 = vmatpush1.bf16.msra.mxu1 %v6361_v3  ;;  %v6364_v5 = vld [vmem:[#allocation5 + $0x2c] ss:$16 sps:$4 sm:$0xff]   ;;  %v6366_v6 = vld [vmem:[#allocation5 + $0x20] ss:$16 sps:$4 sm:$0xff]   ;;  %v6367_v7 = vld [vmem:[#allocation5 + $0x28] ss:$16 sps:$4 sm:$0xff]  }
  0x4e   :  { %2411 = vmatprep.subr.bf16.mxu0 %v6362_v4  ;;  %3183 = vmatprep.subr.bf16.mxu1 %v6364_v5  ;;  %v6368_v8 = vld [vmem:[#allocation5 + $0x44] ss:$16 sps:$4 sm:$0xff]   ;;  %v6370_v9 = vld [vmem:[#allocation5 + $0x4c] ss:$16 sps:$4 sm:$0xff]   ;;  %v6372_v10 = vld [vmem:[#allocation5 + $0x40] ss:$16 sps:$4 sm:$0xff]  }
  0x4f   :  { %v6373_v11 = vld [vmem:[#allocation5 + $0x48] ss:$16 sps:$4 sm:$0xff]   ;;  %v6374_v12 = vld [vmem:[#allocation5 + $0x64] ss:$16 sps:$4 sm:$0xff]   ;;  %v6376_v13 = vld [vmem:[#allocation5 + $0x6c] ss:$16 sps:$4 sm:$0xff]  }
  0x50   :  { %v6378_v14 = vld [vmem:[#allocation5 + $0x60] ss:$16 sps:$4 sm:$0xff]   ;;  %v6379_v15 = vld [vmem:[#allocation5 + $0x68] ss:$16 sps:$4 sm:$0xff]   ;;  %v6380_v16 = vld [vmem:[#allocation5 + $0x84] ss:$16 sps:$4 sm:$0xff]  }
  0x51   :  { %2412 = vmatpush1.bf16.msra.mxu0 %v6366_v6  ;;  %3184 = vmatpush1.bf16.msra.mxu1 %v6367_v7  ;;  %v6382_v17 = vld [vmem:[#allocation5 + $0x8c] ss:$16 sps:$4 sm:$0xff]   ;;  %v6384_v18 = vld [vmem:[#allocation5 + $0x80] ss:$16 sps:$4 sm:$0xff]   ;;  %v6385_v19 = vld [vmem:[#allocation5 + $0x88] ss:$16 sps:$4 sm:$0xff]  }
  0x52   :  { %2413 = vmatprep.subr.bf16.mxu0 %v6368_v8  ;;  %3185 = vmatprep.subr.bf16.mxu1 %v6370_v9  ;;  %v6386_v20 = vld [vmem:[#allocation5 + $0xa4] ss:$16 sps:$4 sm:$0xff]   ;;  %v6388_v21 = vld [vmem:[#allocation5 + $0xac] ss:$16 sps:$4 sm:$0xff]   ;;  %v6390_v22 = vld [vmem:[#allocation5 + $0xa0] ss:$16 sps:$4 sm:$0xff]  }
  0x53   :  { %v6391_v23 = vld [vmem:[#allocation5 + $0xa8] ss:$16 sps:$4 sm:$0xff]   ;;  %v6392_v24 = vld [vmem:[#allocation5 + $0xc4] ss:$16 sps:$4 sm:$0xff]   ;;  %v6394_v25 = vld [vmem:[#allocation5 + $0xcc] ss:$16 sps:$4 sm:$0xff]  }
  0x54   :  { %v6396_v26 = vld [vmem:[#allocation5 + $0xc0] ss:$16 sps:$4 sm:$0xff]   ;;  %v6397_v27 = vld [vmem:[#allocation5 + $0xc8] ss:$16 sps:$4 sm:$0xff]   ;;  %v6398_v28 = vld [vmem:[#allocation5 + $0xe4] ss:$16 sps:$4 sm:$0xff]  }
  0x55   :  { %2414 = vmatpush1.bf16.msra.mxu0 %v6372_v10  ;;  %3186 = vmatpush1.bf16.msra.mxu1 %v6373_v11  ;;  %v6400_v29 = vld [vmem:[#allocation5 + $0xec] ss:$16 sps:$4 sm:$0xff]   ;;  %v6402_v30 = vld [vmem:[#allocation5 + $0xe0] ss:$16 sps:$4 sm:$0xff]   ;;  %v6403_v31 = vld [vmem:[#allocation5 + $0xe8] ss:$16 sps:$4 sm:$0xff]  }
  0x56   :  { %2415 = vmatprep.subr.bf16.mxu0 %v6374_v12  ;;  %3187 = vmatprep.subr.bf16.mxu1 %v6376_v13  ;;  %v6404_v32 = vld [vmem:[#allocation5 + $0x104] ss:$16 sps:$4 sm:$0xff]   ;;  %v6406_v33 = vld [vmem:[#allocation5 + $0x10c] ss:$16 sps:$4 sm:$0xff]   ;;  %v6408_v34 = vld [vmem:[#allocation5 + $0x100] ss:$16 sps:$4 sm:$0xff]  }
  0x57   :  { %v6409_v35 = vld [vmem:[#allocation5 + $0x108] ss:$16 sps:$4 sm:$0xff]   ;;  %v6410_v36 = vld [vmem:[#allocation5 + $0x124] ss:$16 sps:$4 sm:$0xff]   ;;  %v6412_v37 = vld [vmem:[#allocation5 + $0x12c] ss:$16 sps:$4 sm:$0xff]  }
  0x58   :  { %v6414_v38 = vld [vmem:[#allocation5 + $0x120] ss:$16 sps:$4 sm:$0xff]   ;;  %v6415_v39 = vld [vmem:[#allocation5 + $0x128] ss:$16 sps:$4 sm:$0xff]   ;;  %v6416_v40 = vld [vmem:[#allocation5 + $0x144] ss:$16 sps:$4 sm:$0xff]  }
  0x59   :  { %2416 = vmatpush1.bf16.msra.mxu0 %v6378_v14  ;;  %3188 = vmatpush1.bf16.msra.mxu1 %v6379_v15  ;;  %v6418_v41 = vld [vmem:[#allocation5 + $0x14c] ss:$16 sps:$4 sm:$0xff]   ;;  %v6420_v42 = vld [vmem:[#allocation5 + $0x140] ss:$16 sps:$4 sm:$0xff]   ;;  %v6421_v43 = vld [vmem:[#allocation5 + $0x148] ss:$16 sps:$4 sm:$0xff]  }
  0x5a   :  { %2417 = vmatprep.subr.bf16.mxu0 %v6380_v16  ;;  %3189 = vmatprep.subr.bf16.mxu1 %v6382_v17  ;;  %v6422_v44 = vld [vmem:[#allocation5 + $0x164] ss:$16 sps:$4 sm:$0xff]   ;;  %v6424_v45 = vld [vmem:[#allocation5 + $0x16c] ss:$16 sps:$4 sm:$0xff]   ;;  %v6426_v48 = vld [vmem:[#allocation5 + $0x160] ss:$16 sps:$4 sm:$0xff]  }
  0x5b   :  { %v83_v46 = vld [vmem:[#allocation2] sm:$0xff]  ;;  %v6427_v49 = vld [vmem:[#allocation5 + $0x168] ss:$16 sps:$4 sm:$0xff]   ;;  %v6430_v52 = vld [vmem:[#allocation5 + $0x18c] ss:$16 sps:$4 sm:$0xff]  }
  0x5c   :  { %v87_v47 = vld [vmem:[#allocation2 + $0x20] sm:$0xff]  ;;  %v6433_v54 = vld [vmem:[#allocation5 + $0x188] ss:$16 sps:$4 sm:$0xff]   ;;  %v6436_v56 = vld [vmem:[#allocation5 + $0x1ac] ss:$16 sps:$4 sm:$0xff]  }
  0x5d   :  { %2418 = vmatpush1.bf16.msra.mxu0 %v6384_v18  ;;  %3190 = vmatpush1.bf16.msra.mxu1 %v6385_v19  ;;  %v6428_v50 = vld [vmem:[#allocation5 + $0x184] ss:$16 sps:$4 sm:$0xff]   ;;  %v5094_v51 = vcombine.high %v83_v46, %v87_v47  ;;  %v6432_v53 = vld [vmem:[#allocation5 + $0x180] ss:$16 sps:$4 sm:$0xff]   ;;  %v6439_v58 = vld [vmem:[#allocation5 + $0x1a8] ss:$16 sps:$4 sm:$0xff]   ;;  %v5093_v7 = vcombine.low %v83_v46, %v87_v47 }
  0x5e   :  { %2419 = vmatprep.subr.bf16.mxu0 %v6386_v20  ;;  %3191 = vmatprep.subr.bf16.mxu1 %v6388_v21  ;;  %v6434_v55 = vld [vmem:[#allocation5 + $0x1a4] ss:$16 sps:$4 sm:$0xff]   ;;  %v6438_v57 = vld [vmem:[#allocation5 + $0x1a0] ss:$16 sps:$4 sm:$0xff]   ;;  %v6442_v60 = vld [vmem:[#allocation5 + $0x1cc] ss:$16 sps:$4 sm:$0xff]  }
  0x5f   :  { %2441 = vmatprep.mubr.bf16.mxu0 %v5094_v51  ;;  %3213 = vmatprep.mubr.bf16.mxu1 %v5094_v51  ;;  %v6440_v59 = vld [vmem:[#allocation5 + $0x1c4] ss:$16 sps:$4 sm:$0xff]   ;;  %v6444_v61 = vld [vmem:[#allocation5 + $0x1c0] ss:$16 sps:$4 sm:$0xff]   ;;  %v6445_v62 = vld [vmem:[#allocation5 + $0x1c8] ss:$16 sps:$4 sm:$0xff]  }
  0x60   :  { %v6446_v63 = vld [vmem:[#allocation5 + $0x1e4] ss:$16 sps:$4 sm:$0xff]   ;;  %v6448_v0 = vld [vmem:[#allocation5 + $0x1ec] ss:$16 sps:$4 sm:$0xff]   ;;  %v6450_v1 = vld [vmem:[#allocation5 + $0x1e0] ss:$16 sps:$4 sm:$0xff]  }
  0x61   :  { %2420 = vmatpush1.bf16.msra.mxu0 %v6390_v22  ;;  %3192 = vmatpush1.bf16.msra.mxu1 %v6391_v23  ;;  %v6451_v2 = vld [vmem:[#allocation5 + $0x1e8] ss:$16 sps:$4 sm:$0xff]   ;;  %v6454_v3 = vld [vmem:[#allocation5 + $0x204] ss:$16 sps:$4 sm:$0xff]   ;;  %v6481_v6 = vld [vmem:[#allocation5 + $0x20c] ss:$16 sps:$4 sm:$0xff]  }
  0x62   :  { %2421 = vmatprep.subr.bf16.mxu0 %v6392_v24  ;;  %3193 = vmatprep.subr.bf16.mxu1 %v6394_v25  ;;  %v91_v4 = vld [vmem:[#allocation2 + $0x40] sm:$0xff]  ;;  %v6479_v11 = vld [vmem:[#allocation5 + $0x208] ss:$16 sps:$4 sm:$0xff]   ;;  %v6484_v12 = vld [vmem:[#allocation5 + $0x22c] ss:$16 sps:$4 sm:$0xff]  }
  0x63   :  { %v95_v5 = vld [vmem:[#allocation2 + $0x60] sm:$0xff]  ;;  %v6482_v17 = vld [vmem:[#allocation5 + $0x228] ss:$16 sps:$4 sm:$0xff]   ;;  %v6490_v21 = vld [vmem:[#allocation5 + $0x24c] ss:$16 sps:$4 sm:$0xff]  }
  0x64   :  { %v6452_v8 = vld [vmem:[#allocation5 + $0x200] ss:$16 sps:$4 sm:$0xff]   ;;  %v5102_v9 = vcombine.high %v91_v4, %v95_v5  ;;  %v6457_v10 = vld [vmem:[#allocation5 + $0x224] ss:$16 sps:$4 sm:$0xff]   ;;  %v5101_v18 = vcombine.low %v91_v4, %v95_v5  ;;  %v6488_v23 = vld [vmem:[#allocation5 + $0x248] ss:$16 sps:$4 sm:$0xff]  }
  0x65   :  { %2422 = vmatpush1.bf16.msra.mxu0 %v6396_v26  ;;  %3194 = vmatpush1.bf16.msra.mxu1 %v6397_v27  ;;  %v6455_v13 = vld [vmem:[#allocation5 + $0x220] ss:$16 sps:$4 sm:$0xff]   ;;  %v6460_v16 = vld [vmem:[#allocation5 + $0x244] ss:$16 sps:$4 sm:$0xff]   ;;  %v6493_v24 = vld [vmem:[#allocation5 + $0x26c] ss:$16 sps:$4 sm:$0xff]  }
  0x66   :  { %2423 = vmatprep.subr.bf16.mxu0 %v6398_v28  ;;  %3195 = vmatprep.subr.bf16.mxu1 %v6400_v29  ;;  %v99_v14 = vld [vmem:[#allocation2 + $0x80] sm:$0xff]  ;;  %v6491_v29 = vld [vmem:[#allocation5 + $0x268] ss:$16 sps:$4 sm:$0xff]   ;;  %v6508_v46 = vld [vmem:[#allocation5 + $0x2cc] ss:$16 sps:$4 sm:$0xff]  }
  0x67   :  { %v103_v15 = vld [vmem:[#allocation2 + $0xa0] sm:$0xff]  ;;  %v6506_v47 = vld [vmem:[#allocation5 + $0x2c8] ss:$16 sps:$4 sm:$0xff]   ;;  %v6526_v5 = vld [vmem:[#allocation5 + $0x34c] ss:$16 sps:$4 sm:$0xff]  }
  0x68   :  { %v5110_v19 = vcombine.high %v99_v14, %v103_v15  ;;  %v6458_v20 = vld [vmem:[#allocation5 + $0x240] ss:$16 sps:$4 sm:$0xff]   ;;  %v6463_v22 = vld [vmem:[#allocation5 + $0x264] ss:$16 sps:$4 sm:$0xff]  }
  0x69   :  { %2424 = vmatpush1.bf16.msra.mxu0 %v6402_v30  ;;  %3196 = vmatpush1.bf16.msra.mxu1 %v6403_v31  ;;  %v107_v25 = vld [vmem:[#allocation2 + $0xc0] sm:$0xff]  ;;  %v5109_v30 = vcombine.low %v99_v14, %v103_v15 }
  0x6a   :  { %2425 = vmatprep.subr.bf16.mxu0 %v6404_v32  ;;  %3197 = vmatprep.subr.bf16.mxu1 %v6406_v33  ;;  %v111_v26 = vld [vmem:[#allocation2 + $0xe0] sm:$0xff]  ;;  %v6499_v33 = vld [vmem:[#allocation5 + $0x28c] ss:$16 sps:$4 sm:$0xff]  }
  0x6b   :  { %v6461_v27 = vld [vmem:[#allocation5 + $0x260] ss:$16 sps:$4 sm:$0xff]   ;;  %v6466_v28 = vld [vmem:[#allocation5 + $0x284] ss:$16 sps:$4 sm:$0xff]   ;;  %v5118_v31 = vcombine.high %v107_v25, %v111_v26 }
  0x6c   :  { %v6464_v32 = vld [vmem:[#allocation5 + $0x280] ss:$16 sps:$4 sm:$0xff]  }
  0x6d   :  { %2426 = vmatpush1.bf16.msra.mxu0 %v6408_v34  ;;  %3198 = vmatpush1.bf16.msra.mxu1 %v6409_v35  ;;  %v6469_v34 = vld [vmem:[#allocation5 + $0x2a4] ss:$16 sps:$4 sm:$0xff]   ;;  %v6497_v35 = vld [vmem:[#allocation5 + $0x288] ss:$16 sps:$4 sm:$0xff]   ;;  %v6473_v51 = vld [vmem:[#allocation5 + $0x2e0] ss:$16 sps:$4 sm:$0xff]  }
  0x6e   :  { %2427 = vmatprep.subr.bf16.mxu0 %v6410_v36  ;;  %3199 = vmatprep.subr.bf16.mxu1 %v6412_v37  ;;  %v115_v36 = vld [vmem:[#allocation2 + $0x100] sm:$0xff]  ;;  %v6502_v37 = vld [vmem:[#allocation5 + $0x2ac] ss:$16 sps:$4 sm:$0xff]  }
  0x6f   :  { %v6494_v4 = vld [vmem:[#allocation5 + $0x340] ss:$16 sps:$4 sm:$0xff]  }
  0x70   :  { %v6512_v15 = vld [vmem:[#allocation5 + $0x380] ss:$16 sps:$4 sm:$0xff]  }
  0x71   :  { %2428 = vmatpush1.bf16.msra.mxu0 %v6414_v38  ;;  %3200 = vmatpush1.bf16.msra.mxu1 %v6415_v39  ;;  %v119_v38 = vld [vmem:[#allocation2 + $0x120] sm:$0xff] }
  0x72   :  { %2429 = vmatprep.subr.bf16.mxu0 %v6416_v40  ;;  %3201 = vmatprep.subr.bf16.mxu1 %v6418_v41  ;;  %v6467_v39 = vld [vmem:[#allocation5 + $0x2a0] ss:$16 sps:$4 sm:$0xff]   ;;  %v6472_v40 = vld [vmem:[#allocation5 + $0x2c4] ss:$16 sps:$4 sm:$0xff]   ;;  %v6500_v41 = vld [vmem:[#allocation5 + $0x2a8] ss:$16 sps:$4 sm:$0xff]  }
  0x75   :  { %2430 = vmatpush1.bf16.msra.mxu0 %v6420_v42  ;;  %3202 = vmatpush1.bf16.msra.mxu1 %v6421_v43  ;;  %v5117_v42 = vcombine.low %v107_v25, %v111_v26  ;;  %v5126_v43 = vcombine.high %v115_v36, %v119_v38  ;;  %v6536_v25 = vld [vmem:[#allocation5 + $0x3a8] ss:$16 sps:$4 sm:$0xff]  }
  0x76   :  { %2431 = vmatprep.subr.bf16.mxu0 %v6422_v44  ;;  %3203 = vmatprep.subr.bf16.mxu1 %v6424_v45  ;;  %v6470_v44 = vld [vmem:[#allocation5 + $0x2c0] ss:$16 sps:$4 sm:$0xff]   ;;  %v6475_v45 = vld [vmem:[#allocation5 + $0x2e4] ss:$16 sps:$4 sm:$0xff]  }
  0x79   :  { %2432 = vmatpush1.bf16.msra.mxu0 %v6426_v48  ;;  %3204 = vmatpush1.bf16.msra.mxu1 %v6427_v49  ;;  %v123_v48 = vld [vmem:[#allocation2 + $0x140] sm:$0xff]  ;;  %v6511_v49 = vld [vmem:[#allocation5 + $0x2ec] ss:$16 sps:$4 sm:$0xff]  }
  0x7a   :  { %2433 = vmatprep.subr.bf16.mxu0 %v6428_v50  ;;  %3205 = vmatprep.subr.bf16.mxu1 %v6430_v52  ;;  %v127_v50 = vld [vmem:[#allocation2 + $0x160] sm:$0xff] }
  0x7b   :  { %v6478_v52 = vld [vmem:[#allocation5 + $0x304] ss:$16 sps:$4 sm:$0xff]  }
  0x7d   :  { %2434 = vmatpush1.bf16.msra.mxu0 %v6432_v53  ;;  %3206 = vmatpush1.bf16.msra.mxu1 %v6433_v54  ;;  %v6509_v53 = vld [vmem:[#allocation5 + $0x2e8] ss:$16 sps:$4 sm:$0xff]   ;;  %v5125_v54 = vcombine.low %v115_v36, %v119_v38 }
  0x7e   :  { %2435 = vmatprep.subr.bf16.mxu0 %v6434_v55  ;;  %3207 = vmatprep.subr.bf16.mxu1 %v6436_v56  ;;  %v5134_v55 = vcombine.high %v123_v48, %v127_v50  ;;  %v6476_v56 = vld [vmem:[#allocation5 + $0x300] ss:$16 sps:$4 sm:$0xff]   ;;  %v6545_v36 = vld [vmem:[#allocation5 + $0x3e8] ss:$16 sps:$4 sm:$0xff]  }
  0x81   :  { %2436 = vmatpush1.bf16.msra.mxu0 %v6438_v57  ;;  %3208 = vmatpush1.bf16.msra.mxu1 %v6439_v58  ;;  %v6517_v57 = vld [vmem:[#allocation5 + $0x30c] ss:$16 sps:$4 sm:$0xff]   ;;  %v6487_v58 = vld [vmem:[#allocation5 + $0x324] ss:$16 sps:$4 sm:$0xff]  }
  0x82   :  { %2437 = vmatprep.subr.bf16.mxu0 %v6440_v59  ;;  %3209 = vmatprep.subr.bf16.mxu1 %v6442_v60  ;;  %v6515_v59 = vld [vmem:[#allocation5 + $0x308] ss:$16 sps:$4 sm:$0xff]   ;;  %v6520_v60 = vld [vmem:[#allocation5 + $0x32c] ss:$16 sps:$4 sm:$0xff]  }
  0x85   :  { %2438 = vmatpush1.bf16.msra.mxu0 %v6444_v61  ;;  %3210 = vmatpush1.bf16.msra.mxu1 %v6445_v62  ;;  %v131_v61 = vld [vmem:[#allocation2 + $0x180] sm:$0xff] }
  0x86   :  { %2439 = vmatprep.subr.bf16.mxu0 %v6446_v63  ;;  %3211 = vmatprep.subr.bf16.mxu1 %v6448_v0  ;;  %v135_v62 = vld [vmem:[#allocation2 + $0x1a0] sm:$0xff] }
  0x87   :  { %v6485_v63 = vld [vmem:[#allocation5 + $0x320] ss:$16 sps:$4 sm:$0xff]   ;;  %v6496_v0 = vld [vmem:[#allocation5 + $0x344] ss:$16 sps:$4 sm:$0xff]   ;;  %v5141_v14 = vcombine.low %v131_v61, %v135_v62 }
  0x89   :  { %2440 = vmatpush1.bf16.msra.mxu0 %v6450_v1  ;;  %3212 = vmatpush1.bf16.msra.mxu1 %v6451_v2  ;;  %v6518_v1 = vld [vmem:[#allocation5 + $0x328] ss:$16 sps:$4 sm:$0xff]   ;;  %v5133_v2 = vcombine.low %v123_v48, %v127_v50  ;;  %v183_v50 = vld [vmem:[#allocation2 + $0x320] sm:$0xff] }
  0x8a   :  { %2602 = vmatprep.subr.bf16.mxu0 %v6454_v3  ;;  %3374 = vmatprep.subr.bf16.mxu1 %v6481_v6  ;;  %v5142_v3 = vcombine.high %v131_v61, %v135_v62  ;;  %v6505_v6 = vld [vmem:[#allocation5 + $0x364] ss:$16 sps:$4 sm:$0xff]  }
  0x8b   :  { %v203_v61 = vld [vmem:[#allocation2 + $0x3c0] sm:$0xff] }
  0x8c   :  { %2442 = vmatmul.mubr.bf16.vlgmr.msra.gmra.mrb[0].mxu0 %v5093_v7  ;;  %3214 = vmatmul.mubr.bf16.vlgmr.msra.gmra.mrb[0].mxu1 %v5093_v7  ;;  %v6524_v7 = vld [vmem:[#allocation5 + $0x348] ss:$16 sps:$4 sm:$0xff]   ;;  %v207_v62 = vld [vmem:[#allocation2 + $0x3e0] sm:$0xff] }
  0x8d   :  { %2603 = vmatpush1.bf16.msra.mxu0 %v6452_v8  ;;  %2451 = vmatprep.mubr.bf16.mxu0 %v5102_v9  ;;  %v139_v8 = vld [vmem:[#allocation2 + $0x1c0] sm:$0xff] }
  0x8e   :  { %3223 = vmatprep.mubr.bf16.mxu1 %v5102_v9  ;;  %2604 = vmatprep.subr.bf16.mxu0 %v6457_v10  ;;  %v143_v9 = vld [vmem:[#allocation2 + $0x1e0] sm:$0xff] }
  0x8f   :  { %3375 = vmatpush1.bf16.msra.mxu1 %v6479_v11  ;;  %v6503_v10 = vld [vmem:[#allocation5 + $0x360] ss:$16 sps:$4 sm:$0xff]   ;;  %v6529_v11 = vld [vmem:[#allocation5 + $0x36c] ss:$16 sps:$4 sm:$0xff]   ;;  %v5149_v26 = vcombine.low %v139_v8, %v143_v9 }
  0x90   :  { %3376 = vmatprep.subr.bf16.mxu1 %v6484_v12  ;;  %v6514_v12 = vld [vmem:[#allocation5 + $0x384] ss:$16 sps:$4 sm:$0xff]  }
  0x91   :  { %2605 = vmatpush1.bf16.msra.mxu0 %v6455_v13  ;;  %v6527_v13 = vld [vmem:[#allocation5 + $0x368] ss:$16 sps:$4 sm:$0xff]  }
  0x92   :  { %2606 = vmatprep.subr.bf16.mxu0 %v6460_v16  ;;  %v6535_v16 = vld [vmem:[#allocation5 + $0x38c] ss:$16 sps:$4 sm:$0xff]  }
  0x93   :  { %3377 = vmatpush1.bf16.msra.mxu1 %v6482_v17  ;;  %v5150_v17 = vcombine.high %v139_v8, %v143_v9  ;;  %v6553_v9 = vld [vmem:[#allocation5 + $0x424] ss:$16 sps:$4 sm:$0xff]  }
  0x94   :  { %2452 = vmatmul.mubr.bf16.gmra.mrb[4].mxu0 %v5101_v18  ;;  %3224 = vmatmul.mubr.bf16.gmra.mrb[4].mxu1 %v5101_v18  ;;  %v6523_v18 = vld [vmem:[#allocation5 + $0x3a4] ss:$16 sps:$4 sm:$0xff]  }
  0x95   :  { %2461 = vmatprep.mubr.bf16.mxu0 %v5110_v19  ;;  %3233 = vmatprep.mubr.bf16.mxu1 %v5110_v19  ;;  %v6533_v19 = vld [vmem:[#allocation5 + $0x388] ss:$16 sps:$4 sm:$0xff]  }
  0x96   :  { %2607 = vmatpush1.bf16.msra.mxu0 %v6458_v20  ;;  %3378 = vmatprep.subr.bf16.mxu1 %v6490_v21  ;;  %v147_v20 = vld [vmem:[#allocation2 + $0x200] sm:$0xff] }
  0x97   :  { %2608 = vmatprep.subr.bf16.mxu0 %v6463_v22  ;;  %3379 = vmatpush1.bf16.msra.mxu1 %v6488_v23  ;;  %v151_v21 = vld [vmem:[#allocation2 + $0x220] sm:$0xff]  ;;  %v6538_v23 = vld [vmem:[#allocation5 + $0x3ac] ss:$16 sps:$4 sm:$0xff]  }
  0x98   :  { %3380 = vmatprep.subr.bf16.mxu1 %v6493_v24  ;;  %v6521_v22 = vld [vmem:[#allocation5 + $0x3a0] ss:$16 sps:$4 sm:$0xff]   ;;  %v6532_v24 = vld [vmem:[#allocation5 + $0x3c4] ss:$16 sps:$4 sm:$0xff]   ;;  %v5157_v38 = vcombine.low %v147_v20, %v151_v21 }
  0x9a   :  { %2609 = vmatpush1.bf16.msra.mxu0 %v6461_v27  ;;  %v6530_v27 = vld [vmem:[#allocation5 + $0x3c0] ss:$16 sps:$4 sm:$0xff]  }
  0x9b   :  { %2610 = vmatprep.subr.bf16.mxu0 %v6466_v28  ;;  %3381 = vmatpush1.bf16.msra.mxu1 %v6491_v29  ;;  %v6544_v28 = vld [vmem:[#allocation5 + $0x3cc] ss:$16 sps:$4 sm:$0xff]   ;;  %v5158_v29 = vcombine.high %v147_v20, %v151_v21  ;;  %v6554_v20 = vld [vmem:[#allocation5 + $0x440] ss:$16 sps:$4 sm:$0xff]  }
  0x9c   :  { %2462 = vmatmul.mubr.bf16.gmra.mrb[8].mxu0 %v5109_v30  ;;  %3234 = vmatmul.mubr.bf16.gmra.mrb[8].mxu1 %v5109_v30  ;;  %v6541_v30 = vld [vmem:[#allocation5 + $0x3e4] ss:$16 sps:$4 sm:$0xff]   ;;  %v6586_v21 = vld [vmem:[#allocation5 + $0x44c] ss:$16 sps:$4 sm:$0xff]  }
  0x9d   :  { %2471 = vmatprep.mubr.bf16.mxu0 %v5118_v31  ;;  %3243 = vmatprep.mubr.bf16.mxu1 %v5118_v31  ;;  %v6542_v31 = vld [vmem:[#allocation5 + $0x3c8] ss:$16 sps:$4 sm:$0xff]  }
  0x9e   :  { %2611 = vmatpush1.bf16.msra.mxu0 %v6464_v32  ;;  %3382 = vmatprep.subr.bf16.mxu1 %v6499_v33  ;;  %v155_v32 = vld [vmem:[#allocation2 + $0x240] sm:$0xff] }
  0x9f   :  { %2612 = vmatprep.subr.bf16.mxu0 %v6469_v34  ;;  %3383 = vmatpush1.bf16.msra.mxu1 %v6497_v35  ;;  %v159_v33 = vld [vmem:[#allocation2 + $0x260] sm:$0xff]  ;;  %v6547_v35 = vld [vmem:[#allocation5 + $0x3ec] ss:$16 sps:$4 sm:$0xff]  }
  0xa0   :  { %3384 = vmatprep.subr.bf16.mxu1 %v6502_v37  ;;  %v6539_v34 = vld [vmem:[#allocation5 + $0x3e0] ss:$16 sps:$4 sm:$0xff]   ;;  %v6550_v37 = vld [vmem:[#allocation5 + $0x404] ss:$16 sps:$4 sm:$0xff]  }
  0xa2   :  { %2613 = vmatpush1.bf16.msra.mxu0 %v6467_v39  ;;  %v5166_v39 = vcombine.high %v155_v32, %v159_v33 }
  0xa3   :  { %2614 = vmatprep.subr.bf16.mxu0 %v6472_v40  ;;  %3385 = vmatpush1.bf16.msra.mxu1 %v6500_v41  ;;  %v6577_v40 = vld [vmem:[#allocation5 + $0x40c] ss:$16 sps:$4 sm:$0xff]   ;;  %v163_v41 = vld [vmem:[#allocation2 + $0x280] sm:$0xff] }
  0xa4   :  { %2472 = vmatmul.mubr.bf16.gmra.mrb[12].mxu0 %v5117_v42  ;;  %3244 = vmatmul.mubr.bf16.gmra.mrb[12].mxu1 %v5117_v42  ;;  %v167_v42 = vld [vmem:[#allocation2 + $0x2a0] sm:$0xff] }
  0xa5   :  { %2481 = vmatprep.mubr.bf16.mxu0 %v5126_v43  ;;  %3253 = vmatprep.mubr.bf16.mxu1 %v5126_v43  ;;  %v5165_v43 = vcombine.low %v155_v32, %v159_v33  ;;  %v6560_v32 = vld [vmem:[#allocation5 + $0x480] ss:$16 sps:$4 sm:$0xff]   ;;  %v6595_v33 = vld [vmem:[#allocation5 + $0x48c] ss:$16 sps:$4 sm:$0xff]  }
  0xa6   :  { %2615 = vmatpush1.bf16.msra.mxu0 %v6470_v44  ;;  %3386 = vmatprep.subr.bf16.mxu1 %v6508_v46  ;;  %v5174_v44 = vcombine.high %v163_v41, %v167_v42  ;;  %v175_v46 = vld [vmem:[#allocation2 + $0x2e0] sm:$0xff] }
  0xa7   :  { %2616 = vmatprep.subr.bf16.mxu0 %v6475_v45  ;;  %3387 = vmatpush1.bf16.msra.mxu1 %v6506_v47  ;;  %v171_v45 = vld [vmem:[#allocation2 + $0x2c0] sm:$0xff]  ;;  %v5173_v47 = vcombine.low %v163_v41, %v167_v42  ;;  %v6596_v41 = vld [vmem:[#allocation5 + $0x4a8] ss:$16 sps:$4 sm:$0xff]  }
  0xa8   :  { %3388 = vmatprep.subr.bf16.mxu1 %v6511_v49  ;;  %v5182_v48 = vcombine.high %v171_v45, %v175_v46  ;;  %v179_v49 = vld [vmem:[#allocation2 + $0x300] sm:$0xff] }
  0xaa   :  { %2617 = vmatpush1.bf16.msra.mxu0 %v6473_v51  ;;  %v5181_v51 = vcombine.low %v171_v45, %v175_v46  ;;  %v6604_v45 = vld [vmem:[#allocation5 + $0x4cc] ss:$16 sps:$4 sm:$0xff]   ;;  %v6571_v46 = vld [vmem:[#allocation5 + $0x4e4] ss:$16 sps:$4 sm:$0xff]  }
  0xab   :  { %2618 = vmatprep.subr.bf16.mxu0 %v6478_v52  ;;  %3389 = vmatpush1.bf16.msra.mxu1 %v6509_v53  ;;  %v5190_v52 = vcombine.high %v179_v49, %v183_v50  ;;  %v187_v53 = vld [vmem:[#allocation2 + $0x340] sm:$0xff] }
  0xac   :  { %2482 = vmatmul.mubr.bf16.gmra.mrb[16].mxu0 %v5125_v54  ;;  %3254 = vmatmul.mubr.bf16.gmra.mrb[16].mxu1 %v5125_v54  ;;  %v191_v54 = vld [vmem:[#allocation2 + $0x360] sm:$0xff] }
  0xad   :  { %2491 = vmatprep.mubr.bf16.mxu0 %v5134_v55  ;;  %3263 = vmatprep.mubr.bf16.mxu1 %v5134_v55  ;;  %v5189_v55 = vcombine.low %v179_v49, %v183_v50  ;;  %v124_v49 = vld [vmem:[#allocation2 + $0x148] sm:$0xff] }
  0xae   :  { %2619 = vmatpush1.bf16.msra.mxu0 %v6476_v56  ;;  %3390 = vmatprep.subr.bf16.mxu1 %v6517_v57  ;;  %v5198_v56 = vcombine.high %v187_v53, %v191_v54  ;;  %v195_v57 = vld [vmem:[#allocation2 + $0x380] sm:$0xff]  ;;  %v128_v50 = vld [vmem:[#allocation2 + $0x168] sm:$0xff] }
  0xaf   :  { %2620 = vmatprep.subr.bf16.mxu0 %v6487_v58  ;;  %3391 = vmatpush1.bf16.msra.mxu1 %v6515_v59  ;;  %v199_v58 = vld [vmem:[#allocation2 + $0x3a0] sm:$0xff]  ;;  %v5197_v59 = vcombine.low %v187_v53, %v191_v54  ;;  %v6605_v53 = vld [vmem:[#allocation5 + $0x4e8] ss:$16 sps:$4 sm:$0xff]  }
  0xb0   :  { %3392 = vmatprep.subr.bf16.mxu1 %v6520_v60  ;;  %v5206_v60 = vcombine.high %v195_v57, %v199_v58 }
  0xb2   :  { %2621 = vmatpush1.bf16.msra.mxu0 %v6485_v63  ;;  %v5205_v63 = vcombine.low %v195_v57, %v199_v58  ;;  %v6613_v57 = vld [vmem:[#allocation5 + $0x50c] ss:$16 sps:$4 sm:$0xff]   ;;  %v6583_v58 = vld [vmem:[#allocation5 + $0x524] ss:$16 sps:$4 sm:$0xff]  }
  0xb3   :  { %2622 = vmatprep.subr.bf16.mxu0 %v6496_v0  ;;  %3393 = vmatpush1.bf16.msra.mxu1 %v6518_v1  ;;  %v5214_v0 = vcombine.high %v203_v61, %v207_v62  ;;  %v84_v1 = vld [vmem:[#allocation2 + $0x8] sm:$0xff] }
  0xb4   :  { %2492 = vmatmul.mubr.bf16.gmra.mrb[20].mxu0 %v5133_v2  ;;  %3264 = vmatmul.mubr.bf16.gmra.mrb[20].mxu1 %v5133_v2  ;;  %v88_v2 = vld [vmem:[#allocation2 + $0x28] sm:$0xff] }
  0xb5   :  { %2501 = vmatprep.mubr.bf16.mxu0 %v5142_v3  ;;  %3273 = vmatprep.mubr.bf16.mxu1 %v5142_v3  ;;  %v5213_v3 = vcombine.low %v203_v61, %v207_v62  ;;  %v5095_v8 = vcombine.low %v84_v1, %v88_v2  ;;  %v132_v61 = vld [vmem:[#allocation2 + $0x188] sm:$0xff] }
  0xb6   :  { %2623 = vmatpush1.bf16.msra.mxu0 %v6494_v4  ;;  %3394 = vmatprep.subr.bf16.mxu1 %v6526_v5  ;;  %v5096_v4 = vcombine.high %v84_v1, %v88_v2  ;;  %v92_v5 = vld [vmem:[#allocation2 + $0x48] sm:$0xff]  ;;  %v5135_v2 = vcombine.low %v124_v49, %v128_v50 }
  0xb7   :  { %2624 = vmatprep.subr.bf16.mxu0 %v6505_v6  ;;  %3395 = vmatpush1.bf16.msra.mxu1 %v6524_v7  ;;  %v96_v6 = vld [vmem:[#allocation2 + $0x68] sm:$0xff]  ;;  %v6548_v7 = vld [vmem:[#allocation5 + $0x400] ss:$16 sps:$4 sm:$0xff]  }
  0xb8   :  { %3396 = vmatprep.subr.bf16.mxu1 %v6529_v11  ;;  %v6575_v11 = vld [vmem:[#allocation5 + $0x408] ss:$16 sps:$4 sm:$0xff]  }
  0xb9   :  { %v136_v62 = vld [vmem:[#allocation2 + $0x1a8] sm:$0xff] }
  0xba   :  { %2625 = vmatpush1.bf16.msra.mxu0 %v6503_v10  ;;  %v5104_v10 = vcombine.high %v92_v5, %v96_v6  ;;  %v6614_v1 = vld [vmem:[#allocation5 + $0x528] ss:$16 sps:$4 sm:$0xff]  }
  0xbb   :  { %2626 = vmatprep.subr.bf16.mxu0 %v6514_v12  ;;  %3397 = vmatpush1.bf16.msra.mxu1 %v6527_v13  ;;  %v6551_v12 = vld [vmem:[#allocation5 + $0x420] ss:$16 sps:$4 sm:$0xff]   ;;  %v100_v13 = vld [vmem:[#allocation2 + $0x88] sm:$0xff] }
  0xbc   :  { %2502 = vmatmul.mubr.bf16.gmra.mrb[24].mxu0 %v5141_v14  ;;  %3274 = vmatmul.mubr.bf16.gmra.mrb[24].mxu1 %v5141_v14  ;;  %v104_v14 = vld [vmem:[#allocation2 + $0xa8] sm:$0xff] }
  0xbd   :  { %2511 = vmatprep.mubr.bf16.mxu0 %v5150_v17  ;;  %3283 = vmatprep.mubr.bf16.mxu1 %v5150_v17  ;;  %v6578_v17 = vld [vmem:[#allocation5 + $0x428] ss:$16 sps:$4 sm:$0xff]  }
  0xbe   :  { %2627 = vmatpush1.bf16.msra.mxu0 %v6512_v15  ;;  %3398 = vmatprep.subr.bf16.mxu1 %v6535_v16  ;;  %v6580_v15 = vld [vmem:[#allocation5 + $0x42c] ss:$16 sps:$4 sm:$0xff]   ;;  %v6556_v16 = vld [vmem:[#allocation5 + $0x444] ss:$16 sps:$4 sm:$0xff]  }
  0xbf   :  { %2628 = vmatprep.subr.bf16.mxu0 %v6523_v18  ;;  %3399 = vmatpush1.bf16.msra.mxu1 %v6533_v19  ;;  %v5103_v18 = vcombine.low %v92_v5, %v96_v6  ;;  %v5112_v19 = vcombine.high %v100_v13, %v104_v14  ;;  %v6622_v5 = vld [vmem:[#allocation5 + $0x54c] ss:$16 sps:$4 sm:$0xff]   ;;  %v6601_v6 = vld [vmem:[#allocation5 + $0x564] ss:$16 sps:$4 sm:$0xff]  }
  0xc0   :  { %3400 = vmatprep.subr.bf16.mxu1 %v6538_v23  ;;  %v6584_v23 = vld [vmem:[#allocation5 + $0x448] ss:$16 sps:$4 sm:$0xff]  }
  0xc2   :  { %2629 = vmatpush1.bf16.msra.mxu0 %v6521_v22  ;;  %v6559_v22 = vld [vmem:[#allocation5 + $0x464] ss:$16 sps:$4 sm:$0xff]  }
  0xc3   :  { %2630 = vmatprep.subr.bf16.mxu0 %v6532_v24  ;;  %3401 = vmatpush1.bf16.msra.mxu1 %v6536_v25  ;;  %v6589_v24 = vld [vmem:[#allocation5 + $0x46c] ss:$16 sps:$4 sm:$0xff]  }
  0xc4   :  { %2512 = vmatmul.mubr.bf16.gmra.mrb[28].mxu0 %v5149_v26  ;;  %3284 = vmatmul.mubr.bf16.gmra.mrb[28].mxu1 %v5149_v26  ;;  %v108_v25 = vld [vmem:[#allocation2 + $0xc8] sm:$0xff] }
  0xc5   :  { %2521 = vmatprep.mubr.bf16.mxu0 %v5158_v29  ;;  %3293 = vmatprep.mubr.bf16.mxu1 %v5158_v29  ;;  %v112_v26 = vld [vmem:[#allocation2 + $0xe8] sm:$0xff] }
  0xc6   :  { %2631 = vmatpush1.bf16.msra.mxu0 %v6530_v27  ;;  %3402 = vmatprep.subr.bf16.mxu1 %v6544_v28  ;;  %v6557_v27 = vld [vmem:[#allocation5 + $0x460] ss:$16 sps:$4 sm:$0xff]   ;;  %v6562_v28 = vld [vmem:[#allocation5 + $0x484] ss:$16 sps:$4 sm:$0xff]   ;;  %v6587_v29 = vld [vmem:[#allocation5 + $0x468] ss:$16 sps:$4 sm:$0xff]   ;;  %v5119_v42 = vcombine.low %v108_v25, %v112_v26 }
  0xc7   :  { %2632 = vmatprep.subr.bf16.mxu0 %v6541_v30  ;;  %3403 = vmatpush1.bf16.msra.mxu1 %v6542_v31  ;;  %v5111_v30 = vcombine.low %v100_v13, %v104_v14  ;;  %v5120_v31 = vcombine.high %v108_v25, %v112_v26  ;;  %v6623_v13 = vld [vmem:[#allocation5 + $0x568] ss:$16 sps:$4 sm:$0xff]   ;;  %v5143_v14 = vcombine.low %v132_v61, %v136_v62 }
  0xc8   :  { %3404 = vmatprep.subr.bf16.mxu1 %v6547_v35  ;;  %v6593_v35 = vld [vmem:[#allocation5 + $0x488] ss:$16 sps:$4 sm:$0xff]  }
  0xc9   :  { %v6632_v25 = vld [vmem:[#allocation5 + $0x5a8] ss:$16 sps:$4 sm:$0xff]  }
  0xca   :  { %2633 = vmatpush1.bf16.msra.mxu0 %v6539_v34  ;;  %v6565_v34 = vld [vmem:[#allocation5 + $0x4a4] ss:$16 sps:$4 sm:$0xff]  }
  0xcb   :  { %3405 = vmatpush1.bf16.msra.mxu1 %v6545_v36  ;;  %2795 = vmatprep.subr.bf16.mxu0 %v6550_v37  ;;  %v6598_v36 = vld [vmem:[#allocation5 + $0x4ac] ss:$16 sps:$4 sm:$0xff]  }
  0xcc   :  { %2522 = vmatmul.mubr.bf16.gmra.mrb[32].mxu0 %v5157_v38  ;;  %3294 = vmatmul.mubr.bf16.gmra.mrb[32].mxu1 %v5157_v38  ;;  %v116_v37 = vld [vmem:[#allocation2 + $0x108] sm:$0xff] }
  0xcd   :  { %2531 = vmatprep.mubr.bf16.mxu0 %v5166_v39  ;;  %3303 = vmatprep.mubr.bf16.mxu1 %v5166_v39  ;;  %v120_v38 = vld [vmem:[#allocation2 + $0x128] sm:$0xff]  ;;  %v6563_v39 = vld [vmem:[#allocation5 + $0x4a0] ss:$16 sps:$4 sm:$0xff]  }
  0xce   :  { %3567 = vmatprep.subr.bf16.mxu1 %v6577_v40  ;;  %v6568_v40 = vld [vmem:[#allocation5 + $0x4c4] ss:$16 sps:$4 sm:$0xff]   ;;  %v5127_v54 = vcombine.low %v116_v37, %v120_v38 }
  0xd4   :  { %2532 = vmatmul.mubr.bf16.gmra.mrb[36].mxu0 %v5165_v43  ;;  %3304 = vmatmul.mubr.bf16.gmra.mrb[36].mxu1 %v5165_v43  ;;  %v5128_v43 = vcombine.high %v116_v37, %v120_v38  ;;  %v6646_v37 = vld [vmem:[#allocation5 + $0x604] ss:$16 sps:$4 sm:$0xff]  }
  0xd5   :  { %2541 = vmatprep.mubr.bf16.mxu0 %v5174_v44  ;;  %3313 = vmatprep.mubr.bf16.mxu1 %v5174_v44  ;;  %v6566_v44 = vld [vmem:[#allocation5 + $0x4c0] ss:$16 sps:$4 sm:$0xff]  }
  0xdc   :  { %2542 = vmatmul.mubr.bf16.gmra.mrb[40].mxu0 %v5173_v47  ;;  %3314 = vmatmul.mubr.bf16.gmra.mrb[40].mxu1 %v5173_v47  ;;  %v6602_v47 = vld [vmem:[#allocation5 + $0x4c8] ss:$16 sps:$4 sm:$0xff]  }
  0xdd   :  { %2551 = vmatprep.mubr.bf16.mxu0 %v5182_v48  ;;  %3323 = vmatprep.mubr.bf16.mxu1 %v5182_v48  ;;  %v6607_v48 = vld [vmem:[#allocation5 + $0x4ec] ss:$16 sps:$4 sm:$0xff]  }
  0xe4   :  { %2552 = vmatmul.mubr.bf16.gmra.mrb[44].mxu0 %v5181_v51  ;;  %3324 = vmatmul.mubr.bf16.gmra.mrb[44].mxu1 %v5181_v51  ;;  %v6569_v51 = vld [vmem:[#allocation5 + $0x4e0] ss:$16 sps:$4 sm:$0xff]  }
  0xe5   :  { %2561 = vmatprep.mubr.bf16.mxu0 %v5190_v52  ;;  %3333 = vmatprep.mubr.bf16.mxu1 %v5190_v52  ;;  %v6574_v52 = vld [vmem:[#allocation5 + $0x504] ss:$16 sps:$4 sm:$0xff]  }
  0xec   :  { %2562 = vmatmul.mubr.bf16.gmra.mrb[48].mxu0 %v5189_v55  ;;  %3334 = vmatmul.mubr.bf16.gmra.mrb[48].mxu1 %v5189_v55  ;;  %v5136_v55 = vcombine.high %v124_v49, %v128_v50  ;;  %v180_v49 = vld [vmem:[#allocation2 + $0x308] sm:$0xff] }
  0xed   :  { %2571 = vmatprep.mubr.bf16.mxu0 %v5198_v56  ;;  %3343 = vmatprep.mubr.bf16.mxu1 %v5198_v56  ;;  %v6572_v56 = vld [vmem:[#allocation5 + $0x500] ss:$16 sps:$4 sm:$0xff]   ;;  %v184_v50 = vld [vmem:[#allocation2 + $0x328] sm:$0xff] }
  0xf4   :  { %2572 = vmatmul.mubr.bf16.gmra.mrb[52].mxu0 %v5197_v59  ;;  %3344 = vmatmul.mubr.bf16.gmra.mrb[52].mxu1 %v5197_v59  ;;  %v6611_v59 = vld [vmem:[#allocation5 + $0x508] ss:$16 sps:$4 sm:$0xff]  }
  0xf5   :  { %2581 = vmatprep.mubr.bf16.mxu0 %v5206_v60  ;;  %3353 = vmatprep.mubr.bf16.mxu1 %v5206_v60  ;;  %v6616_v60 = vld [vmem:[#allocation5 + $0x52c] ss:$16 sps:$4 sm:$0xff]  }
  0xfc   :  { %2582 = vmatmul.mubr.bf16.gmra.mrb[56].mxu0 %v5205_v63  ;;  %3354 = vmatmul.mubr.bf16.gmra.mrb[56].mxu1 %v5205_v63  ;;  %v6581_v63 = vld [vmem:[#allocation5 + $0x520] ss:$16 sps:$4 sm:$0xff]  }
  0xfd   :  { %2591 = vmatprep.mubr.bf16.mxu0 %v5214_v0  ;;  %3363 = vmatprep.mubr.bf16.mxu1 %v5214_v0  ;;  %v6592_v0 = vld [vmem:[#allocation5 + $0x544] ss:$16 sps:$4 sm:$0xff]  }
 0x104   :  { %2592 = vmatmul.mubr.bf16.gmra.mrb[60].mxu0 %v5213_v3  ;;  %3364 = vmatmul.mubr.bf16.gmra.mrb[60].mxu1 %v5213_v3  ;;  %v5144_v3 = vcombine.high %v132_v61, %v136_v62  ;;  %v204_v61 = vld [vmem:[#allocation2 + $0x3c8] sm:$0xff] }
 0x105   :  { %2634 = vmatprep.mubr.bf16.mxu0 %v5096_v4  ;;  %3406 = vmatprep.mubr.bf16.mxu1 %v5096_v4  ;;  %v6590_v4 = vld [vmem:[#allocation5 + $0x540] ss:$16 sps:$4 sm:$0xff]   ;;  %v208_v62 = vld [vmem:[#allocation2 + $0x3e8] sm:$0xff] }
 0x10c   :  { %2635 = vmatmul.mubr.bf16.vlgmr.msra.gmra.mrb[0].mxu0 %v5095_v8  ;;  %3407 = vmatmul.mubr.bf16.vlgmr.msra.gmra.mrb[0].mxu1 %v5095_v8  ;;  %v6625_v8 = vld [vmem:[#allocation5 + $0x56c] ss:$16 sps:$4 sm:$0xff]  }
 0x10d   :  { %2796 = vmatpush1.bf16.msra.mxu0 %v6548_v7  ;;  %2644 = vmatprep.mubr.bf16.mxu0 %v5104_v10  ;;  %v6620_v7 = vld [vmem:[#allocation5 + $0x548] ss:$16 sps:$4 sm:$0xff]  }
 0x10e   :  { %3416 = vmatprep.mubr.bf16.mxu1 %v5104_v10  ;;  %2797 = vmatprep.subr.bf16.mxu0 %v6553_v9  ;;  %v140_v9 = vld [vmem:[#allocation2 + $0x1c8] sm:$0xff] }
 0x10f   :  { %3568 = vmatpush1.bf16.msra.mxu1 %v6575_v11  ;;  %v144_v10 = vld [vmem:[#allocation2 + $0x1e8] sm:$0xff]  ;;  %v6599_v11 = vld [vmem:[#allocation5 + $0x560] ss:$16 sps:$4 sm:$0xff]  }
 0x110   :  { %3569 = vmatprep.subr.bf16.mxu1 %v6580_v15  ;;  %v5152_v15 = vcombine.high %v140_v9, %v144_v10  ;;  %v5151_v26 = vcombine.low %v140_v9, %v144_v10  ;;  %v6649_v10 = vld [vmem:[#allocation5 + $0x624] ss:$16 sps:$4 sm:$0xff]  }
 0x111   :  { %2798 = vmatpush1.bf16.msra.mxu0 %v6551_v12  ;;  %v6610_v12 = vld [vmem:[#allocation5 + $0x584] ss:$16 sps:$4 sm:$0xff]  }
 0x112   :  { %2799 = vmatprep.subr.bf16.mxu0 %v6556_v16  ;;  %v6608_v16 = vld [vmem:[#allocation5 + $0x580] ss:$16 sps:$4 sm:$0xff]  }
 0x113   :  { %3570 = vmatpush1.bf16.msra.mxu1 %v6578_v17  ;;  %v6631_v17 = vld [vmem:[#allocation5 + $0x58c] ss:$16 sps:$4 sm:$0xff]  }
 0x114   :  { %2645 = vmatmul.mubr.bf16.gmra.mrb[4].mxu0 %v5103_v18  ;;  %3417 = vmatmul.mubr.bf16.gmra.mrb[4].mxu1 %v5103_v18  ;;  %v6619_v18 = vld [vmem:[#allocation5 + $0x5a4] ss:$16 sps:$4 sm:$0xff]  }
 0x115   :  { %2654 = vmatprep.mubr.bf16.mxu0 %v5112_v19  ;;  %3426 = vmatprep.mubr.bf16.mxu1 %v5112_v19  ;;  %v6629_v19 = vld [vmem:[#allocation5 + $0x588] ss:$16 sps:$4 sm:$0xff]  }
 0x116   :  { %2800 = vmatpush1.bf16.msra.mxu0 %v6554_v20  ;;  %3571 = vmatprep.subr.bf16.mxu1 %v6586_v21  ;;  %v6634_v20 = vld [vmem:[#allocation5 + $0x5ac] ss:$16 sps:$4 sm:$0xff]  }
 0x117   :  { %2801 = vmatprep.subr.bf16.mxu0 %v6559_v22  ;;  %3572 = vmatpush1.bf16.msra.mxu1 %v6584_v23  ;;  %v148_v21 = vld [vmem:[#allocation2 + $0x208] sm:$0xff]  ;;  %v6617_v23 = vld [vmem:[#allocation5 + $0x5a0] ss:$16 sps:$4 sm:$0xff]  }
 0x118   :  { %3573 = vmatprep.subr.bf16.mxu1 %v6589_v24  ;;  %v152_v22 = vld [vmem:[#allocation2 + $0x228] sm:$0xff]  ;;  %v6628_v24 = vld [vmem:[#allocation5 + $0x5c4] ss:$16 sps:$4 sm:$0xff]  }
 0x119   :  { %v5159_v38 = vcombine.low %v148_v21, %v152_v22 }
 0x11a   :  { %2802 = vmatpush1.bf16.msra.mxu0 %v6557_v27  ;;  %v5160_v27 = vcombine.high %v148_v21, %v152_v22  ;;  %v6682_v21 = vld [vmem:[#allocation5 + $0x64c] ss:$16 sps:$4 sm:$0xff]   ;;  %v6655_v22 = vld [vmem:[#allocation5 + $0x664] ss:$16 sps:$4 sm:$0xff]  }
 0x11b   :  { %2803 = vmatprep.subr.bf16.mxu0 %v6562_v28  ;;  %3574 = vmatpush1.bf16.msra.mxu1 %v6587_v29  ;;  %v6626_v28 = vld [vmem:[#allocation5 + $0x5c0] ss:$16 sps:$4 sm:$0xff]   ;;  %v6640_v29 = vld [vmem:[#allocation5 + $0x5cc] ss:$16 sps:$4 sm:$0xff]  }
 0x11c   :  { %2655 = vmatmul.mubr.bf16.gmra.mrb[8].mxu0 %v5111_v30  ;;  %3427 = vmatmul.mubr.bf16.gmra.mrb[8].mxu1 %v5111_v30  ;;  %v6637_v30 = vld [vmem:[#allocation5 + $0x5e4] ss:$16 sps:$4 sm:$0xff]  }
 0x11d   :  { %2664 = vmatprep.mubr.bf16.mxu0 %v5120_v31  ;;  %3436 = vmatprep.mubr.bf16.mxu1 %v5120_v31  ;;  %v6638_v31 = vld [vmem:[#allocation5 + $0x5c8] ss:$16 sps:$4 sm:$0xff]  }
 0x11e   :  { %2804 = vmatpush1.bf16.msra.mxu0 %v6560_v32  ;;  %3575 = vmatprep.subr.bf16.mxu1 %v6595_v33  ;;  %v6643_v32 = vld [vmem:[#allocation5 + $0x5ec] ss:$16 sps:$4 sm:$0xff]  }
 0x11f   :  { %2805 = vmatprep.subr.bf16.mxu0 %v6565_v34  ;;  %3576 = vmatpush1.bf16.msra.mxu1 %v6593_v35  ;;  %v156_v33 = vld [vmem:[#allocation2 + $0x248] sm:$0xff]  ;;  %v6635_v35 = vld [vmem:[#allocation5 + $0x5e0] ss:$16 sps:$4 sm:$0xff]  }
 0x120   :  { %3577 = vmatprep.subr.bf16.mxu1 %v6598_v36  ;;  %v160_v34 = vld [vmem:[#allocation2 + $0x268] sm:$0xff] }
 0x121   :  { %v6641_v36 = vld [vmem:[#allocation5 + $0x5e8] ss:$16 sps:$4 sm:$0xff]  }
 0x122   :  { %2806 = vmatpush1.bf16.msra.mxu0 %v6563_v39  ;;  %v5168_v39 = vcombine.high %v156_v33, %v160_v34 }
 0x123   :  { %2807 = vmatprep.subr.bf16.mxu0 %v6568_v40  ;;  %3578 = vmatpush1.bf16.msra.mxu1 %v6596_v41  ;;  %v6673_v40 = vld [vmem:[#allocation5 + $0x60c] ss:$16 sps:$4 sm:$0xff]  }
 0x124   :  { %2665 = vmatmul.mubr.bf16.gmra.mrb[12].mxu0 %v5119_v42  ;;  %3437 = vmatmul.mubr.bf16.gmra.mrb[12].mxu1 %v5119_v42  ;;  %v164_v41 = vld [vmem:[#allocation2 + $0x288] sm:$0xff] }
 0x125   :  { %2674 = vmatprep.mubr.bf16.mxu0 %v5128_v43  ;;  %3446 = vmatprep.mubr.bf16.mxu1 %v5128_v43  ;;  %v168_v42 = vld [vmem:[#allocation2 + $0x2a8] sm:$0xff]  ;;  %v5167_v43 = vcombine.low %v156_v33, %v160_v34  ;;  %v6661_v34 = vld [vmem:[#allocation5 + $0x6a4] ss:$16 sps:$4 sm:$0xff]  }
 0x126   :  { %2808 = vmatpush1.bf16.msra.mxu0 %v6566_v44  ;;  %3579 = vmatprep.subr.bf16.mxu1 %v6604_v45  ;;  %v5176_v44 = vcombine.high %v164_v41, %v168_v42  ;;  %v172_v45 = vld [vmem:[#allocation2 + $0x2c8] sm:$0xff] }
 0x127   :  { %2809 = vmatprep.subr.bf16.mxu0 %v6571_v46  ;;  %3580 = vmatpush1.bf16.msra.mxu1 %v6602_v47  ;;  %v176_v46 = vld [vmem:[#allocation2 + $0x2e8] sm:$0xff]  ;;  %v5175_v47 = vcombine.low %v164_v41, %v168_v42 }
 0x128   :  { %3581 = vmatprep.subr.bf16.mxu1 %v6607_v48  ;;  %v5184_v48 = vcombine.high %v172_v45, %v176_v46  ;;  %v6691_v33 = vld [vmem:[#allocation5 + $0x68c] ss:$16 sps:$4 sm:$0xff]   ;;  %v6692_v41 = vld [vmem:[#allocation5 + $0x6a8] ss:$16 sps:$4 sm:$0xff]  }
 0x12a   :  { %2810 = vmatpush1.bf16.msra.mxu0 %v6569_v51  ;;  %v5183_v51 = vcombine.low %v172_v45, %v176_v46  ;;  %v6700_v45 = vld [vmem:[#allocation5 + $0x6cc] ss:$16 sps:$4 sm:$0xff]   ;;  %v6667_v46 = vld [vmem:[#allocation5 + $0x6e4] ss:$16 sps:$4 sm:$0xff]  }
 0x12b   :  { %2811 = vmatprep.subr.bf16.mxu0 %v6574_v52  ;;  %3582 = vmatpush1.bf16.msra.mxu1 %v6605_v53  ;;  %v5192_v52 = vcombine.high %v180_v49, %v184_v50  ;;  %v188_v53 = vld [vmem:[#allocation2 + $0x348] sm:$0xff] }
 0x12c   :  { %2675 = vmatmul.mubr.bf16.gmra.mrb[16].mxu0 %v5127_v54  ;;  %3447 = vmatmul.mubr.bf16.gmra.mrb[16].mxu1 %v5127_v54  ;;  %v192_v54 = vld [vmem:[#allocation2 + $0x368] sm:$0xff] }
 0x12d   :  { %2684 = vmatprep.mubr.bf16.mxu0 %v5136_v55  ;;  %3456 = vmatprep.mubr.bf16.mxu1 %v5136_v55  ;;  %v5191_v55 = vcombine.low %v180_v49, %v184_v50  ;;  %v125_v49 = vld [vmem:[#allocation2 + $0x150] sm:$0xff] }
 0x12e   :  { %2812 = vmatpush1.bf16.msra.mxu0 %v6572_v56  ;;  %3583 = vmatprep.subr.bf16.mxu1 %v6613_v57  ;;  %v5200_v56 = vcombine.high %v188_v53, %v192_v54  ;;  %v196_v57 = vld [vmem:[#allocation2 + $0x388] sm:$0xff]  ;;  %v129_v50 = vld [vmem:[#allocation2 + $0x170] sm:$0xff] }
 0x12f   :  { %2813 = vmatprep.subr.bf16.mxu0 %v6583_v58  ;;  %3584 = vmatpush1.bf16.msra.mxu1 %v6611_v59  ;;  %v200_v58 = vld [vmem:[#allocation2 + $0x3a8] sm:$0xff]  ;;  %v5199_v59 = vcombine.low %v188_v53, %v192_v54 }
 0x130   :  { %3585 = vmatprep.subr.bf16.mxu1 %v6616_v60  ;;  %v5208_v60 = vcombine.high %v196_v57, %v200_v58  ;;  %v6701_v53 = vld [vmem:[#allocation5 + $0x6e8] ss:$16 sps:$4 sm:$0xff]  }
 0x132   :  { %2814 = vmatpush1.bf16.msra.mxu0 %v6581_v63  ;;  %v5207_v63 = vcombine.low %v196_v57, %v200_v58  ;;  %v6709_v57 = vld [vmem:[#allocation5 + $0x70c] ss:$16 sps:$4 sm:$0xff]   ;;  %v6679_v58 = vld [vmem:[#allocation5 + $0x724] ss:$16 sps:$4 sm:$0xff]  }
 0x133   :  { %2815 = vmatprep.subr.bf16.mxu0 %v6592_v0  ;;  %3586 = vmatpush1.bf16.msra.mxu1 %v6614_v1  ;;  %v5216_v0 = vcombine.high %v204_v61, %v208_v62  ;;  %v85_v1 = vld [vmem:[#allocation2 + $0x10] sm:$0xff] }
 0x134   :  { %2685 = vmatmul.mubr.bf16.gmra.mrb[20].mxu0 %v5135_v2  ;;  %3457 = vmatmul.mubr.bf16.gmra.mrb[20].mxu1 %v5135_v2  ;;  %v89_v2 = vld [vmem:[#allocation2 + $0x30] sm:$0xff] }
 0x135   :  { %2694 = vmatprep.mubr.bf16.mxu0 %v5144_v3  ;;  %3466 = vmatprep.mubr.bf16.mxu1 %v5144_v3  ;;  %v5215_v3 = vcombine.low %v204_v61, %v208_v62  ;;  %v133_v61 = vld [vmem:[#allocation2 + $0x190] sm:$0xff] }
 0x136   :  { %2816 = vmatpush1.bf16.msra.mxu0 %v6590_v4  ;;  %3587 = vmatprep.subr.bf16.mxu1 %v6622_v5  ;;  %v5098_v4 = vcombine.high %v85_v1, %v89_v2  ;;  %v93_v5 = vld [vmem:[#allocation2 + $0x50] sm:$0xff] }
 0x137   :  { %2817 = vmatprep.subr.bf16.mxu0 %v6601_v6  ;;  %3588 = vmatpush1.bf16.msra.mxu1 %v6620_v7  ;;  %v97_v6 = vld [vmem:[#allocation2 + $0x70] sm:$0xff]  ;;  %v5097_v7 = vcombine.low %v85_v1, %v89_v2  ;;  %v6710_v1 = vld [vmem:[#allocation5 + $0x728] ss:$16 sps:$4 sm:$0xff]   ;;  %v5137_v2 = vcombine.low %v125_v49, %v129_v50 }
 0x138   :  { %3589 = vmatprep.subr.bf16.mxu1 %v6625_v8  ;;  %v6644_v8 = vld [vmem:[#allocation5 + $0x600] ss:$16 sps:$4 sm:$0xff]   ;;  %v5106_v9 = vcombine.high %v93_v5, %v97_v6 }
 0x139   :  { %v137_v62 = vld [vmem:[#allocation2 + $0x1b0] sm:$0xff] }
 0x13a   :  { %2818 = vmatpush1.bf16.msra.mxu0 %v6599_v11  ;;  %v6671_v11 = vld [vmem:[#allocation5 + $0x608] ss:$16 sps:$4 sm:$0xff]  }
 0x13b   :  { %2819 = vmatprep.subr.bf16.mxu0 %v6610_v12  ;;  %3590 = vmatpush1.bf16.msra.mxu1 %v6623_v13  ;;  %v6676_v12 = vld [vmem:[#allocation5 + $0x62c] ss:$16 sps:$4 sm:$0xff]   ;;  %v6647_v13 = vld [vmem:[#allocation5 + $0x620] ss:$16 sps:$4 sm:$0xff]  }
 0x13c   :  { %2695 = vmatmul.mubr.bf16.gmra.mrb[24].mxu0 %v5143_v14  ;;  %3467 = vmatmul.mubr.bf16.gmra.mrb[24].mxu1 %v5143_v14  ;;  %v101_v14 = vld [vmem:[#allocation2 + $0x90] sm:$0xff] }
 0x13d   :  { %2704 = vmatprep.mubr.bf16.mxu0 %v5152_v15  ;;  %3476 = vmatprep.mubr.bf16.mxu1 %v5152_v15  ;;  %v105_v15 = vld [vmem:[#allocation2 + $0xb0] sm:$0xff] }
 0x13e   :  { %2820 = vmatpush1.bf16.msra.mxu0 %v6608_v16  ;;  %3591 = vmatprep.subr.bf16.mxu1 %v6631_v17  ;;  %v6652_v16 = vld [vmem:[#allocation5 + $0x644] ss:$16 sps:$4 sm:$0xff]   ;;  %v6674_v17 = vld [vmem:[#allocation5 + $0x628] ss:$16 sps:$4 sm:$0xff]  }
 0x13f   :  { %2821 = vmatprep.subr.bf16.mxu0 %v6619_v18  ;;  %3592 = vmatpush1.bf16.msra.mxu1 %v6629_v19  ;;  %v5105_v18 = vcombine.low %v93_v5, %v97_v6  ;;  %v5114_v19 = vcombine.high %v101_v14, %v105_v15  ;;  %v6718_v5 = vld [vmem:[#allocation5 + $0x74c] ss:$16 sps:$4 sm:$0xff]   ;;  %v6697_v6 = vld [vmem:[#allocation5 + $0x764] ss:$16 sps:$4 sm:$0xff]  }
 0x140   :  { %3593 = vmatprep.subr.bf16.mxu1 %v6634_v20  ;;  %v6650_v20 = vld [vmem:[#allocation5 + $0x640] ss:$16 sps:$4 sm:$0xff]  }
 0x142   :  { %2822 = vmatpush1.bf16.msra.mxu0 %v6617_v23  ;;  %v6680_v23 = vld [vmem:[#allocation5 + $0x648] ss:$16 sps:$4 sm:$0xff]  }
 0x143   :  { %2823 = vmatprep.subr.bf16.mxu0 %v6628_v24  ;;  %3594 = vmatpush1.bf16.msra.mxu1 %v6632_v25  ;;  %v6685_v24 = vld [vmem:[#allocation5 + $0x66c] ss:$16 sps:$4 sm:$0xff]   ;;  %v109_v25 = vld [vmem:[#allocation2 + $0xd0] sm:$0xff] }
 0x144   :  { %2705 = vmatmul.mubr.bf16.gmra.mrb[28].mxu0 %v5151_v26  ;;  %3477 = vmatmul.mubr.bf16.gmra.mrb[28].mxu1 %v5151_v26  ;;  %v113_v26 = vld [vmem:[#allocation2 + $0xf0] sm:$0xff] }
 0x145   :  { %2714 = vmatprep.mubr.bf16.mxu0 %v5160_v27  ;;  %3486 = vmatprep.mubr.bf16.mxu1 %v5160_v27  ;;  %v6653_v27 = vld [vmem:[#allocation5 + $0x660] ss:$16 sps:$4 sm:$0xff]   ;;  %v5121_v42 = vcombine.low %v109_v25, %v113_v26 }
 0x146   :  { %2824 = vmatpush1.bf16.msra.mxu0 %v6626_v28  ;;  %3595 = vmatprep.subr.bf16.mxu1 %v6640_v29  ;;  %v6658_v28 = vld [vmem:[#allocation5 + $0x684] ss:$16 sps:$4 sm:$0xff]   ;;  %v6683_v29 = vld [vmem:[#allocation5 + $0x668] ss:$16 sps:$4 sm:$0xff]  }
 0x147   :  { %2825 = vmatprep.subr.bf16.mxu0 %v6637_v30  ;;  %3596 = vmatpush1.bf16.msra.mxu1 %v6638_v31  ;;  %v5113_v30 = vcombine.low %v101_v14, %v105_v15  ;;  %v5122_v31 = vcombine.high %v109_v25, %v113_v26  ;;  %v5145_v14 = vcombine.low %v133_v61, %v137_v62  ;;  %v6728_v25 = vld [vmem:[#allocation5 + $0x7a8] ss:$16 sps:$4 sm:$0xff]  }
 0x148   :  { %3597 = vmatprep.subr.bf16.mxu1 %v6643_v32  ;;  %v6656_v32 = vld [vmem:[#allocation5 + $0x680] ss:$16 sps:$4 sm:$0xff]  }
 0x14a   :  { %2826 = vmatpush1.bf16.msra.mxu0 %v6635_v35  ;;  %v6689_v35 = vld [vmem:[#allocation5 + $0x688] ss:$16 sps:$4 sm:$0xff]  }
 0x14b   :  { %3598 = vmatpush1.bf16.msra.mxu1 %v6641_v36  ;;  %2988 = vmatprep.subr.bf16.mxu0 %v6646_v37  ;;  %v6694_v36 = vld [vmem:[#allocation5 + $0x6ac] ss:$16 sps:$4 sm:$0xff]   ;;  %v117_v37 = vld [vmem:[#allocation2 + $0x110] sm:$0xff] }
 0x14c   :  { %2715 = vmatmul.mubr.bf16.gmra.mrb[32].mxu0 %v5159_v38  ;;  %3487 = vmatmul.mubr.bf16.gmra.mrb[32].mxu1 %v5159_v38  ;;  %v121_v38 = vld [vmem:[#allocation2 + $0x130] sm:$0xff] }
 0x14d   :  { %2724 = vmatprep.mubr.bf16.mxu0 %v5168_v39  ;;  %3496 = vmatprep.mubr.bf16.mxu1 %v5168_v39  ;;  %v6659_v39 = vld [vmem:[#allocation5 + $0x6a0] ss:$16 sps:$4 sm:$0xff]   ;;  %v5129_v54 = vcombine.low %v117_v37, %v121_v38 }
 0x14e   :  { %3760 = vmatprep.subr.bf16.mxu1 %v6673_v40  ;;  %v6664_v40 = vld [vmem:[#allocation5 + $0x6c4] ss:$16 sps:$4 sm:$0xff]  }
 0x154   :  { %2725 = vmatmul.mubr.bf16.gmra.mrb[36].mxu0 %v5167_v43  ;;  %3497 = vmatmul.mubr.bf16.gmra.mrb[36].mxu1 %v5167_v43  ;;  %v5130_v43 = vcombine.high %v117_v37, %v121_v38 }
 0x155   :  { %2734 = vmatprep.mubr.bf16.mxu0 %v5176_v44  ;;  %3506 = vmatprep.mubr.bf16.mxu1 %v5176_v44  ;;  %v6662_v44 = vld [vmem:[#allocation5 + $0x6c0] ss:$16 sps:$4 sm:$0xff]  }
 0x15c   :  { %2735 = vmatmul.mubr.bf16.gmra.mrb[40].mxu0 %v5175_v47  ;;  %3507 = vmatmul.mubr.bf16.gmra.mrb[40].mxu1 %v5175_v47  ;;  %v6698_v47 = vld [vmem:[#allocation5 + $0x6c8] ss:$16 sps:$4 sm:$0xff]  }
 0x15d   :  { %2744 = vmatprep.mubr.bf16.mxu0 %v5184_v48  ;;  %3516 = vmatprep.mubr.bf16.mxu1 %v5184_v48  ;;  %v6703_v48 = vld [vmem:[#allocation5 + $0x6ec] ss:$16 sps:$4 sm:$0xff]  }
 0x164   :  { %2745 = vmatmul.mubr.bf16.gmra.mrb[44].mxu0 %v5183_v51  ;;  %3517 = vmatmul.mubr.bf16.gmra.mrb[44].mxu1 %v5183_v51  ;;  %v6665_v51 = vld [vmem:[#allocation5 + $0x6e0] ss:$16 sps:$4 sm:$0xff]  }
 0x165   :  { %2754 = vmatprep.mubr.bf16.mxu0 %v5192_v52  ;;  %3526 = vmatprep.mubr.bf16.mxu1 %v5192_v52  ;;  %v6670_v52 = vld [vmem:[#allocation5 + $0x704] ss:$16 sps:$4 sm:$0xff]  }
 0x16c   :  { %2755 = vmatmul.mubr.bf16.gmra.mrb[48].mxu0 %v5191_v55  ;;  %3527 = vmatmul.mubr.bf16.gmra.mrb[48].mxu1 %v5191_v55  ;;  %v5138_v55 = vcombine.high %v125_v49, %v129_v50 }
 0x16d   :  { %2764 = vmatprep.mubr.bf16.mxu0 %v5200_v56  ;;  %3536 = vmatprep.mubr.bf16.mxu1 %v5200_v56  ;;  %v6668_v56 = vld [vmem:[#allocation5 + $0x700] ss:$16 sps:$4 sm:$0xff]  }
 0x174   :  { %2765 = vmatmul.mubr.bf16.gmra.mrb[52].mxu0 %v5199_v59  ;;  %3537 = vmatmul.mubr.bf16.gmra.mrb[52].mxu1 %v5199_v59  ;;  %v6707_v59 = vld [vmem:[#allocation5 + $0x708] ss:$16 sps:$4 sm:$0xff]  }
 0x175   :  { %2774 = vmatprep.mubr.bf16.mxu0 %v5208_v60  ;;  %3546 = vmatprep.mubr.bf16.mxu1 %v5208_v60  ;;  %v6712_v60 = vld [vmem:[#allocation5 + $0x72c] ss:$16 sps:$4 sm:$0xff]  }
 0x17c   :  { %2775 = vmatmul.mubr.bf16.gmra.mrb[56].mxu0 %v5207_v63  ;;  %3547 = vmatmul.mubr.bf16.gmra.mrb[56].mxu1 %v5207_v63  ;;  %v6677_v63 = vld [vmem:[#allocation5 + $0x720] ss:$16 sps:$4 sm:$0xff]  }
 0x17d   :  { %2784 = vmatprep.mubr.bf16.mxu0 %v5216_v0  ;;  %3556 = vmatprep.mubr.bf16.mxu1 %v5216_v0  ;;  %v6688_v0 = vld [vmem:[#allocation5 + $0x744] ss:$16 sps:$4 sm:$0xff]  }
 0x184   :  { %2785 = vmatmul.mubr.bf16.gmra.mrb[60].mxu0 %v5215_v3  ;;  %3557 = vmatmul.mubr.bf16.gmra.mrb[60].mxu1 %v5215_v3  ;;  %v5146_v3 = vcombine.high %v133_v61, %v137_v62 }
 0x185   :  { %2827 = vmatprep.mubr.bf16.mxu0 %v5098_v4  ;;  %3599 = vmatprep.mubr.bf16.mxu1 %v5098_v4  ;;  %v6686_v4 = vld [vmem:[#allocation5 + $0x740] ss:$16 sps:$4 sm:$0xff]  }
 0x18c   :  { %2828 = vmatmul.mubr.bf16.vlgmr.msra.gmra.mrb[0].mxu0 %v5097_v7  ;;  %3600 = vmatmul.mubr.bf16.vlgmr.msra.gmra.mrb[0].mxu1 %v5097_v7  ;;  %v6716_v7 = vld [vmem:[#allocation5 + $0x748] ss:$16 sps:$4 sm:$0xff]  }
 0x18d   :  { %2989 = vmatpush1.bf16.msra.mxu0 %v6644_v8  ;;  %2837 = vmatprep.mubr.bf16.mxu0 %v5106_v9  ;;  %v6721_v8 = vld [vmem:[#allocation5 + $0x76c] ss:$16 sps:$4 sm:$0xff]  }
 0x18e   :  { %3609 = vmatprep.mubr.bf16.mxu1 %v5106_v9  ;;  %2990 = vmatprep.subr.bf16.mxu0 %v6649_v10  ;;  %v141_v9 = vld [vmem:[#allocation2 + $0x1d0] sm:$0xff] }
 0x18f   :  { %3761 = vmatpush1.bf16.msra.mxu1 %v6671_v11  ;;  %v145_v10 = vld [vmem:[#allocation2 + $0x1f0] sm:$0xff] }
 0x190   :  { %3762 = vmatprep.subr.bf16.mxu1 %v6676_v12  ;;  %v6695_v11 = vld [vmem:[#allocation5 + $0x760] ss:$16 sps:$4 sm:$0xff]   ;;  %v6706_v12 = vld [vmem:[#allocation5 + $0x784] ss:$16 sps:$4 sm:$0xff]   ;;  %v5154_v15 = vcombine.high %v141_v9, %v145_v10  ;;  %v5153_v26 = vcombine.low %v141_v9, %v145_v10  ;;  %v6742_v9 = vld [vmem:[#allocation7 + $0x48] sm:$0xff]  }
 0x191   :  { %2991 = vmatpush1.bf16.msra.mxu0 %v6647_v13  ;;  %v6719_v13 = vld [vmem:[#allocation5 + $0x768] ss:$16 sps:$4 sm:$0xff]  }
 0x192   :  { %2992 = vmatprep.subr.bf16.mxu0 %v6652_v16  ;;  %v6704_v16 = vld [vmem:[#allocation5 + $0x780] ss:$16 sps:$4 sm:$0xff]   ;;  %v102_v10 = vld [vmem:[#allocation2 + $0x98] sm:$0xff] }
 0x193   :  { %3763 = vmatpush1.bf16.msra.mxu1 %v6674_v17  ;;  %v6727_v17 = vld [vmem:[#allocation5 + $0x78c] ss:$16 sps:$4 sm:$0xff]  }
 0x194   :  { %2838 = vmatmul.mubr.bf16.gmra.mrb[4].mxu0 %v5105_v18  ;;  %3610 = vmatmul.mubr.bf16.gmra.mrb[4].mxu1 %v5105_v18  ;;  %v6715_v18 = vld [vmem:[#allocation5 + $0x7a4] ss:$16 sps:$4 sm:$0xff]  }
 0x195   :  { %2847 = vmatprep.mubr.bf16.mxu0 %v5114_v19  ;;  %3619 = vmatprep.mubr.bf16.mxu1 %v5114_v19  ;;  %v6725_v19 = vld [vmem:[#allocation5 + $0x788] ss:$16 sps:$4 sm:$0xff]  }
 0x196   :  { %2993 = vmatpush1.bf16.msra.mxu0 %v6650_v20  ;;  %3764 = vmatprep.subr.bf16.mxu1 %v6682_v21  ;;  %v6730_v20 = vld [vmem:[#allocation5 + $0x7ac] ss:$16 sps:$4 sm:$0xff]   ;;  %v149_v21 = vld [vmem:[#allocation2 + $0x210] sm:$0xff] }
 0x197   :  { %2994 = vmatprep.subr.bf16.mxu0 %v6655_v22  ;;  %3765 = vmatpush1.bf16.msra.mxu1 %v6680_v23  ;;  %v153_v22 = vld [vmem:[#allocation2 + $0x230] sm:$0xff] }
 0x198   :  { %3766 = vmatprep.subr.bf16.mxu1 %v6685_v24  ;;  %v6713_v23 = vld [vmem:[#allocation5 + $0x7a0] ss:$16 sps:$4 sm:$0xff]   ;;  %v6724_v24 = vld [vmem:[#allocation5 + $0x7c4] ss:$16 sps:$4 sm:$0xff]   ;;  %v5161_v37 = vcombine.low %v149_v21, %v153_v22 }
 0x19a   :  { %2995 = vmatpush1.bf16.msra.mxu0 %v6653_v27  ;;  %v5162_v27 = vcombine.high %v149_v21, %v153_v22  ;;  %v6748_v21 = vld [vmem:[#allocation7 + $0x60] sm:$0xff]  }
 0x19b   :  { %2996 = vmatprep.subr.bf16.mxu0 %v6658_v28  ;;  %3767 = vmatpush1.bf16.msra.mxu1 %v6683_v29  ;;  %v6722_v28 = vld [vmem:[#allocation5 + $0x7c0] ss:$16 sps:$4 sm:$0xff]   ;;  %v6736_v29 = vld [vmem:[#allocation5 + $0x7cc] ss:$16 sps:$4 sm:$0xff]  }
 0x19c   :  { %2848 = vmatmul.mubr.bf16.gmra.mrb[8].mxu0 %v5113_v30  ;;  %3620 = vmatmul.mubr.bf16.gmra.mrb[8].mxu1 %v5113_v30  ;;  %v6733_v30 = vld [vmem:[#allocation5 + $0x7e4] ss:$16 sps:$4 sm:$0xff]  }
 0x19d   :  { %2857 = vmatprep.mubr.bf16.mxu0 %v5122_v31  ;;  %3629 = vmatprep.mubr.bf16.mxu1 %v5122_v31  ;;  %v6734_v31 = vld [vmem:[#allocation5 + $0x7c8] ss:$16 sps:$4 sm:$0xff]  }
 0x19e   :  { %2997 = vmatpush1.bf16.msra.mxu0 %v6656_v32  ;;  %3768 = vmatprep.subr.bf16.mxu1 %v6691_v33  ;;  %v6739_v32 = vld [vmem:[#allocation5 + $0x7ec] ss:$16 sps:$4 sm:$0xff]   ;;  %v157_v33 = vld [vmem:[#allocation2 + $0x250] sm:$0xff] }
 0x19f   :  { %2998 = vmatprep.subr.bf16.mxu0 %v6661_v34  ;;  %3769 = vmatpush1.bf16.msra.mxu1 %v6689_v35  ;;  %v161_v34 = vld [vmem:[#allocation2 + $0x270] sm:$0xff] }
 0x1a0   :  { %3770 = vmatprep.subr.bf16.mxu1 %v6694_v36  ;;  %v6731_v35 = vld [vmem:[#allocation5 + $0x7e0] ss:$16 sps:$4 sm:$0xff]   ;;  %v6737_v36 = vld [vmem:[#allocation5 + $0x7e8] ss:$16 sps:$4 sm:$0xff]   ;;  %v5170_v38 = vcombine.high %v157_v33, %v161_v34 }
 0x1a2   :  { %2999 = vmatpush1.bf16.msra.mxu0 %v6659_v39  ;;  %v165_v39 = vld [vmem:[#allocation2 + $0x290] sm:$0xff] }
 0x1a3   :  { %3000 = vmatprep.subr.bf16.mxu0 %v6664_v40  ;;  %3771 = vmatpush1.bf16.msra.mxu1 %v6692_v41  ;;  %v169_v40 = vld [vmem:[#allocation2 + $0x2b0] sm:$0xff]  ;;  %v5169_v41 = vcombine.low %v157_v33, %v161_v34  ;;  %v134_v34 = vld [vmem:[#allocation2 + $0x198] sm:$0xff] }
 0x1a4   :  { %2858 = vmatmul.mubr.bf16.gmra.mrb[12].mxu0 %v5121_v42  ;;  %3630 = vmatmul.mubr.bf16.gmra.mrb[12].mxu1 %v5121_v42  ;;  %v5178_v42 = vcombine.high %v165_v39, %v169_v40 }
 0x1a5   :  { %2867 = vmatprep.mubr.bf16.mxu0 %v5130_v43  ;;  %3639 = vmatprep.mubr.bf16.mxu1 %v5130_v43  ;;  %v173_v43 = vld [vmem:[#allocation2 + $0x2d0] sm:$0xff] }
 0x1a6   :  { %3001 = vmatpush1.bf16.msra.mxu0 %v6662_v44  ;;  %3772 = vmatprep.subr.bf16.mxu1 %v6700_v45  ;;  %v177_v44 = vld [vmem:[#allocation2 + $0x2f0] sm:$0xff]  ;;  %v5177_v45 = vcombine.low %v165_v39, %v169_v40  ;;  %v146_v39 = vld [vmem:[#allocation2 + $0x1f8] sm:$0xff] }
 0x1a7   :  { %3002 = vmatprep.subr.bf16.mxu0 %v6667_v46  ;;  %3773 = vmatpush1.bf16.msra.mxu1 %v6698_v47  ;;  %v5186_v46 = vcombine.high %v173_v43, %v177_v44  ;;  %v181_v47 = vld [vmem:[#allocation2 + $0x310] sm:$0xff]  ;;  %v5185_v49 = vcombine.low %v173_v43, %v177_v44  ;;  %v154_v43 = vld [vmem:[#allocation2 + $0x238] sm:$0xff] }
 0x1a8   :  { %3774 = vmatprep.subr.bf16.mxu1 %v6703_v48  ;;  %v185_v48 = vld [vmem:[#allocation2 + $0x330] sm:$0xff] }
 0x1a9   :  { %v5194_v50 = vcombine.high %v181_v47, %v185_v48 }
 0x1aa   :  { %3003 = vmatpush1.bf16.msra.mxu0 %v6665_v51  ;;  %v189_v51 = vld [vmem:[#allocation2 + $0x350] sm:$0xff] }
 0x1ab   :  { %3004 = vmatprep.subr.bf16.mxu0 %v6670_v52  ;;  %3775 = vmatpush1.bf16.msra.mxu1 %v6701_v53  ;;  %v193_v52 = vld [vmem:[#allocation2 + $0x370] sm:$0xff]  ;;  %v5193_v53 = vcombine.low %v181_v47, %v185_v48  ;;  %v162_v47 = vld [vmem:[#allocation2 + $0x278] sm:$0xff] }
 0x1ac   :  { %2868 = vmatmul.mubr.bf16.gmra.mrb[16].mxu0 %v5129_v54  ;;  %3640 = vmatmul.mubr.bf16.gmra.mrb[16].mxu1 %v5129_v54  ;;  %v5202_v54 = vcombine.high %v189_v51, %v193_v52 }
 0x1ad   :  { %2877 = vmatprep.mubr.bf16.mxu0 %v5138_v55  ;;  %3649 = vmatprep.mubr.bf16.mxu1 %v5138_v55  ;;  %v197_v55 = vld [vmem:[#allocation2 + $0x390] sm:$0xff] }
 0x1ae   :  { %3005 = vmatpush1.bf16.msra.mxu0 %v6668_v56  ;;  %3776 = vmatprep.subr.bf16.mxu1 %v6709_v57  ;;  %v201_v56 = vld [vmem:[#allocation2 + $0x3b0] sm:$0xff]  ;;  %v5201_v57 = vcombine.low %v189_v51, %v193_v52  ;;  %v170_v51 = vld [vmem:[#allocation2 + $0x2b8] sm:$0xff] }
 0x1af   :  { %3006 = vmatprep.subr.bf16.mxu0 %v6679_v58  ;;  %3777 = vmatpush1.bf16.msra.mxu1 %v6707_v59  ;;  %v5210_v58 = vcombine.high %v197_v55, %v201_v56  ;;  %v205_v59 = vld [vmem:[#allocation2 + $0x3d0] sm:$0xff]  ;;  %v5209_v61 = vcombine.low %v197_v55, %v201_v56  ;;  %v178_v55 = vld [vmem:[#allocation2 + $0x2f8] sm:$0xff] }
 0x1b0   :  { %3778 = vmatprep.subr.bf16.mxu1 %v6712_v60  ;;  %v209_v60 = vld [vmem:[#allocation2 + $0x3f0] sm:$0xff] }
 0x1b1   :  { %v5218_v62 = vcombine.high %v205_v59, %v209_v60 }
 0x1b2   :  { %3007 = vmatpush1.bf16.msra.mxu0 %v6677_v63  ;;  %v86_v63 = vld [vmem:[#allocation2 + $0x18] sm:$0xff] }
 0x1b3   :  { %3008 = vmatprep.subr.bf16.mxu0 %v6688_v0  ;;  %3779 = vmatpush1.bf16.msra.mxu1 %v6710_v1  ;;  %v90_v0 = vld [vmem:[#allocation2 + $0x38] sm:$0xff]  ;;  %v5217_v1 = vcombine.low %v205_v59, %v209_v60 }
 0x1b4   :  { %2878 = vmatmul.mubr.bf16.gmra.mrb[20].mxu0 %v5137_v2  ;;  %3650 = vmatmul.mubr.bf16.gmra.mrb[20].mxu1 %v5137_v2  ;;  %v5100_v2 = vcombine.high %v86_v63, %v90_v0  ;;  %v182_v59 = vld [vmem:[#allocation2 + $0x318] sm:$0xff] }
 0x1b5   :  { %2887 = vmatprep.mubr.bf16.mxu0 %v5146_v3  ;;  %3659 = vmatprep.mubr.bf16.mxu1 %v5146_v3  ;;  %v6740_v3 = vld [vmem:[#allocation7 + $0x40] sm:$0xff]   ;;  %v186_v60 = vld [vmem:[#allocation2 + $0x338] sm:$0xff] }
 0x1b6   :  { %3009 = vmatpush1.bf16.msra.mxu0 %v6686_v4  ;;  %3780 = vmatprep.subr.bf16.mxu1 %v6718_v5  ;;  %v94_v4 = vld [vmem:[#allocation2 + $0x58] sm:$0xff] }
 0x1b7   :  { %3010 = vmatprep.subr.bf16.mxu0 %v6697_v6  ;;  %3781 = vmatpush1.bf16.msra.mxu1 %v6716_v7  ;;  %v98_v5 = vld [vmem:[#allocation2 + $0x78] sm:$0xff]  ;;  %v5099_v6 = vcombine.low %v86_v63, %v90_v0  ;;  %v5196_v63 = vcombine.high %v182_v59, %v186_v60  ;;  %v6753_v0 = vld [vmem:[#allocation7 + $0x30] sm:$0xff]  }
 0x1b8   :  { %3782 = vmatprep.subr.bf16.mxu1 %v6721_v8  ;;  %v5108_v7 = vcombine.high %v94_v4, %v98_v5  ;;  %v6741_v8 = vld [vmem:[#allocation7] sm:$0xff]  }
 0x1ba   :  { %3011 = vmatpush1.bf16.msra.mxu0 %v6695_v11  ;;  %v106_v11 = vld [vmem:[#allocation2 + $0xb8] sm:$0xff] }
 0x1bb   :  { %3012 = vmatprep.subr.bf16.mxu0 %v6706_v12  ;;  %3783 = vmatpush1.bf16.msra.mxu1 %v6719_v13  ;;  %v6743_v12 = vld [vmem:[#allocation7 + $0x8] sm:$0xff]   ;;  %v6744_v13 = vld [vmem:[#allocation7 + $0x50] sm:$0xff]   ;;  %v5115_v22 = vcombine.low %v102_v10, %v106_v11 }
 0x1bc   :  { %2888 = vmatmul.mubr.bf16.gmra.mrb[24].mxu0 %v5145_v14  ;;  %3660 = vmatmul.mubr.bf16.gmra.mrb[24].mxu1 %v5145_v14  ;;  %v5107_v14 = vcombine.low %v94_v4, %v98_v5  ;;  %v194_v4 = vld [vmem:[#allocation2 + $0x378] sm:$0xff]  ;;  %v5195_v5 = vcombine.low %v182_v59, %v186_v60 }
 0x1bd   :  { %2897 = vmatprep.mubr.bf16.mxu0 %v5154_v15  ;;  %3669 = vmatprep.mubr.bf16.mxu1 %v5154_v15  ;;  %v5116_v15 = vcombine.high %v102_v10, %v106_v11  ;;  %v206_v11 = vld [vmem:[#allocation2 + $0x3d8] sm:$0xff] }
 0x1be   :  { %3013 = vmatpush1.bf16.msra.mxu0 %v6704_v16  ;;  %3784 = vmatprep.subr.bf16.mxu1 %v6727_v17  ;;  %v6745_v16 = vld [vmem:[#allocation7 + $0x10] sm:$0xff]   ;;  %v6746_v17 = vld [vmem:[#allocation7 + $0x58] sm:$0xff]  }
 0x1bf   :  { %3014 = vmatprep.subr.bf16.mxu0 %v6715_v18  ;;  %3785 = vmatpush1.bf16.msra.mxu1 %v6725_v19  ;;  %v110_v18 = vld [vmem:[#allocation2 + $0xd8] sm:$0xff] }
 0x1c0   :  { %3786 = vmatprep.subr.bf16.mxu1 %v6730_v20  ;;  %v114_v19 = vld [vmem:[#allocation2 + $0xf8] sm:$0xff] }
 0x1c1   :  { %v6747_v20 = vld [vmem:[#allocation7 + $0x18] sm:$0xff]  }
 0x1c2   :  { %3015 = vmatpush1.bf16.msra.mxu0 %v6713_v23  ;;  %v5124_v23 = vcombine.high %v110_v18, %v114_v19 }
 0x1c3   :  { %3016 = vmatprep.subr.bf16.mxu0 %v6724_v24  ;;  %3787 = vmatpush1.bf16.msra.mxu1 %v6728_v25  ;;  %v6749_v24 = vld [vmem:[#allocation7 + $0x20] sm:$0xff]   ;;  %v6750_v25 = vld [vmem:[#allocation7 + $0x68] sm:$0xff]  }
 0x1c4   :  { %2898 = vmatmul.mubr.bf16.gmra.mrb[28].mxu0 %v5153_v26  ;;  %3670 = vmatmul.mubr.bf16.gmra.mrb[28].mxu1 %v5153_v26  ;;  %v118_v26 = vld [vmem:[#allocation2 + $0x118] sm:$0xff] }
 0x1c5   :  { %2907 = vmatprep.mubr.bf16.mxu0 %v5162_v27  ;;  %3679 = vmatprep.mubr.bf16.mxu1 %v5162_v27  ;;  %v122_v27 = vld [vmem:[#allocation2 + $0x138] sm:$0xff] }
 0x1c6   :  { %3017 = vmatpush1.bf16.msra.mxu0 %v6722_v28  ;;  %3788 = vmatprep.subr.bf16.mxu1 %v6736_v29  ;;  %v5123_v28 = vcombine.low %v110_v18, %v114_v19  ;;  %v5132_v29 = vcombine.high %v118_v26, %v122_v27 }
 0x1c7   :  { %3018 = vmatprep.subr.bf16.mxu0 %v6733_v30  ;;  %3789 = vmatpush1.bf16.msra.mxu1 %v6734_v31  ;;  %v126_v30 = vld [vmem:[#allocation2 + $0x158] sm:$0xff] }
 0x1c8   :  { %3790 = vmatprep.subr.bf16.mxu1 %v6739_v32  ;;  %v130_v31 = vld [vmem:[#allocation2 + $0x178] sm:$0xff]  ;;  %v5131_v32 = vcombine.low %v118_v26, %v122_v27 }
 0x1c9   :  { %v5140_v33 = vcombine.high %v126_v30, %v130_v31 }
 0x1ca   :  { %3019 = vmatpush1.bf16.msra.mxu0 %v6731_v35  ;;  %v138_v35 = vld [vmem:[#allocation2 + $0x1b8] sm:$0xff] }
 0x1cb   :  { %3791 = vmatpush1.bf16.msra.mxu1 %v6737_v36  ;;  %5519 = vmatprep.subr.bf16.mxu0 %v6740_v3  ;;  %v5139_v36 = vcombine.low %v126_v30, %v130_v31  ;;  %v5147_v40 = vcombine.low %v134_v34, %v138_v35 }
 0x1cc   :  { %2908 = vmatmul.mubr.bf16.gmra.mrb[32].mxu0 %v5161_v37  ;;  %3680 = vmatmul.mubr.bf16.gmra.mrb[32].mxu1 %v5161_v37  ;;  %v5148_v37 = vcombine.high %v134_v34, %v138_v35 }
 0x1cd   :  { %2917 = vmatprep.mubr.bf16.mxu0 %v5170_v38  ;;  %3689 = vmatprep.mubr.bf16.mxu1 %v5170_v38  ;;  %v142_v38 = vld [vmem:[#allocation2 + $0x1d8] sm:$0xff] }
 0x1ce   :  { %5815 = vmatprep.subr.bf16.mxu1 %v6740_v3  ;;  %v5155_v44 = vcombine.low %v142_v38, %v146_v39  ;;  %v190_v3 = vld [vmem:[#allocation2 + $0x358] sm:$0xff] }
 0x1d4   :  { %2918 = vmatmul.mubr.bf16.gmra.mrb[36].mxu0 %v5169_v41  ;;  %3690 = vmatmul.mubr.bf16.gmra.mrb[36].mxu1 %v5169_v41  ;;  %v5156_v41 = vcombine.high %v142_v38, %v146_v39 }
 0x1d5   :  { %2927 = vmatprep.mubr.bf16.mxu0 %v5178_v42  ;;  %3699 = vmatprep.mubr.bf16.mxu1 %v5178_v42  ;;  %v150_v42 = vld [vmem:[#allocation2 + $0x218] sm:$0xff] }
 0x1d6   :  { %v5163_v48 = vcombine.low %v150_v42, %v154_v43 }
 0x1dc   :  { %2928 = vmatmul.mubr.bf16.gmra.mrb[40].mxu0 %v5177_v45  ;;  %3700 = vmatmul.mubr.bf16.gmra.mrb[40].mxu1 %v5177_v45  ;;  %v5164_v45 = vcombine.high %v150_v42, %v154_v43 }
 0x1dd   :  { %2937 = vmatprep.mubr.bf16.mxu0 %v5186_v46  ;;  %3709 = vmatprep.mubr.bf16.mxu1 %v5186_v46  ;;  %v158_v46 = vld [vmem:[#allocation2 + $0x258] sm:$0xff] }
 0x1de   :  { %v5171_v52 = vcombine.low %v158_v46, %v162_v47 }
 0x1e4   :  { %2938 = vmatmul.mubr.bf16.gmra.mrb[44].mxu0 %v5185_v49  ;;  %3710 = vmatmul.mubr.bf16.gmra.mrb[44].mxu1 %v5185_v49  ;;  %v5172_v49 = vcombine.high %v158_v46, %v162_v47 }
 0x1e5   :  { %2947 = vmatprep.mubr.bf16.mxu0 %v5194_v50  ;;  %3719 = vmatprep.mubr.bf16.mxu1 %v5194_v50  ;;  %v166_v50 = vld [vmem:[#allocation2 + $0x298] sm:$0xff] }
 0x1e6   :  { %v5179_v56 = vcombine.low %v166_v50, %v170_v51 }
 0x1ec   :  { %2948 = vmatmul.mubr.bf16.gmra.mrb[48].mxu0 %v5193_v53  ;;  %3720 = vmatmul.mubr.bf16.gmra.mrb[48].mxu1 %v5193_v53  ;;  %v5180_v53 = vcombine.high %v166_v50, %v170_v51 }
 0x1ed   :  { %2957 = vmatprep.mubr.bf16.mxu0 %v5202_v54  ;;  %3729 = vmatprep.mubr.bf16.mxu1 %v5202_v54  ;;  %v174_v54 = vld [vmem:[#allocation2 + $0x2d8] sm:$0xff] }
 0x1f4   :  { %2958 = vmatmul.mubr.bf16.gmra.mrb[52].mxu0 %v5201_v57  ;;  %3730 = vmatmul.mubr.bf16.gmra.mrb[52].mxu1 %v5201_v57  ;;  %v5188_v57 = vcombine.high %v174_v54, %v178_v55 }
 0x1f5   :  { %2967 = vmatprep.mubr.bf16.mxu0 %v5210_v58  ;;  %3739 = vmatprep.mubr.bf16.mxu1 %v5210_v58  ;;  %v6751_v58 = vld [vmem:[#allocation7 + $0x28] sm:$0xff]  }
 0x1fc   :  { %2968 = vmatmul.mubr.bf16.gmra.mrb[56].mxu0 %v5209_v61  ;;  %3740 = vmatmul.mubr.bf16.gmra.mrb[56].mxu1 %v5209_v61  ;;  %v5187_v61 = vcombine.low %v174_v54, %v178_v55 }
 0x1fd   :  { %2977 = vmatprep.mubr.bf16.mxu0 %v5218_v62  ;;  %3749 = vmatprep.mubr.bf16.mxu1 %v5218_v62  ;;  %v6752_v62 = vld [vmem:[#allocation7 + $0x70] sm:$0xff]  }
 0x204   :  { %2978 = vmatmul.mubr.bf16.gmra.mrb[60].mxu0 %v5217_v1  ;;  %3750 = vmatmul.mubr.bf16.gmra.mrb[60].mxu1 %v5217_v1  ;;  %v6754_v1 = vld [vmem:[#allocation7 + $0x78] sm:$0xff]  }
 0x205   :  { %3020 = vmatprep.mubr.bf16.mxu0 %v5100_v2  ;;  %3792 = vmatprep.mubr.bf16.mxu1 %v5100_v2  ;;  %v6755_v2 = vld [vmem:[#allocation7 + $0x38] sm:$0xff]  }
 0x20c   :  { %3021 = vmatmul.mubr.bf16.vlgmr.msra.gmra.mrb[0].mxu0 %v5099_v6  ;;  %3793 = vmatmul.mubr.bf16.vlgmr.msra.gmra.mrb[0].mxu1 %v5099_v6  ;;  %v5204_v6 = vcombine.high %v190_v3, %v194_v4 }
 0x20d   :  { %3030 = vmatprep.mubr.bf16.mxu0 %v5108_v7  ;;  %3802 = vmatprep.mubr.bf16.mxu1 %v5108_v7  ;;  %v198_v7 = vld [vmem:[#allocation2 + $0x398] sm:$0xff] }
 0x20e   :  { %5520 = vmatpush3.bf16.msra.mxu0 %v6741_v8  ;;  %5823 = vmatpush3.bf16.msra.mxu1 %v6741_v8  ;;  %v202_v8 = vld [vmem:[#allocation2 + $0x3b8] sm:$0xff] }
 0x20f   :  { %5521 = vmatprep.subr.bf16.mxu0 %v6742_v9  ;;  %5816 = vmatprep.subr.bf16.mxu1 %v6742_v9  ;;  %v5203_v9 = vcombine.low %v190_v3, %v194_v4  ;;  %v5212_v10 = vcombine.high %v198_v7, %v202_v8 }
 0x212   :  { %5522 = vmatpush3.bf16.msra.mxu0 %v6743_v12  ;;  %5824 = vmatpush3.bf16.msra.mxu1 %v6743_v12  ;;  %v210_v12 = vld [vmem:[#allocation2 + $0x3f8] sm:$0xff] }
 0x213   :  { %5523 = vmatprep.subr.bf16.mxu0 %v6744_v13  ;;  %5817 = vmatprep.subr.bf16.mxu1 %v6744_v13  ;;  %v5211_v13 = vcombine.low %v198_v7, %v202_v8 }
 0x214   :  { %3031 = vmatmul.mubr.bf16.gmra.mrb[4].mxu0 %v5107_v14  ;;  %3803 = vmatmul.mubr.bf16.gmra.mrb[4].mxu1 %v5107_v14  ;;  %v5220_v14 = vcombine.high %v206_v11, %v210_v12 }
 0x215   :  { %3040 = vmatprep.mubr.bf16.mxu0 %v5116_v15  ;;  %3812 = vmatprep.mubr.bf16.mxu1 %v5116_v15  ;;  %v5219_v15 = vcombine.low %v206_v11, %v210_v12 }
 0x216   :  { %5524 = vmatpush3.bf16.msra.mxu0 %v6745_v16  ;;  %5825 = vmatpush3.bf16.msra.mxu1 %v6745_v16  ;;  %v6756_v16 = vld [vmem:[#allocation7 + $0xc0] sm:$0xff]  }
 0x217   :  { %5525 = vmatprep.subr.bf16.mxu0 %v6746_v17  ;;  %5818 = vmatprep.subr.bf16.mxu1 %v6746_v17  ;;  %v469_v17 = vlaneseq }
 0x219   :  { %v470_v18 = vshrl.u32 %v469_v17, 7 }
 0x21a   :  { %5526 = vmatpush3.bf16.msra.mxu0 %v6747_v20  ;;  %5826 = vmatpush3.bf16.msra.mxu1 %v6747_v20 }
 0x21b   :  { %5527 = vmatprep.subr.bf16.mxu0 %v6748_v21  ;;  %5819 = vmatprep.subr.bf16.mxu1 %v6748_v21  ;;  %v471_v19 = vsub.s32 0, %v470_v18  ;;  %v479_v20 = vsub.s32 2, %v470_v18  ;;  %v467_v21 = vld [vmem:[%s7482_s2] sm:$0xf] }
 0x21c   :  { %3041 = vmatmul.mubr.bf16.gmra.mrb[8].mxu0 %v5115_v22  ;;  %3813 = vmatmul.mubr.bf16.gmra.mrb[8].mxu1 %v5115_v22  ;;  %v475_v22 = vsub.s32 1, %v470_v18 }
 0x21d   :  { %3050 = vmatprep.mubr.bf16.mxu0 %v5124_v23  ;;  %3822 = vmatprep.mubr.bf16.mxu1 %v5124_v23  ;;  %v483_v23 = vsub.s32 3, %v470_v18 }
 0x21e   :  { %5528 = vmatpush3.bf16.msra.mxu0 %v6749_v24  ;;  %5827 = vmatpush3.bf16.msra.mxu1 %v6749_v24  ;;  %v7066_v24 = vrot.slane %v467_v21, %v471_v19  ;;  %v7070_v26 = vrot.slane %v467_v21, %v475_v22 }
 0x21f   :  { %5529 = vmatprep.subr.bf16.mxu0 %v6750_v25  ;;  %5820 = vmatprep.subr.bf16.mxu1 %v6750_v25  ;;  %v7068_v25 = vrot.slane %v467_v21, %v479_v20  ;;  %v7072_v27 = vrot.slane %v467_v21, %v483_v23 }
 0x222   :  { %5530 = vmatpush3.bf16.msra.mxu0 %v6751_v58  ;;  %5828 = vmatpush3.bf16.msra.mxu1 %v6751_v58 }
 0x223   :  { %5531 = vmatprep.subr.bf16.mxu0 %v6752_v62  ;;  %5821 = vmatprep.subr.bf16.mxu1 %v6752_v62 }
 0x224   :  { %3051 = vmatmul.mubr.bf16.gmra.mrb[12].mxu0 %v5123_v28  ;;  %3823 = vmatmul.mubr.bf16.gmra.mrb[12].mxu1 %v5123_v28 }
 0x225   :  { %3060 = vmatprep.mubr.bf16.mxu0 %v5132_v29  ;;  %3832 = vmatprep.mubr.bf16.mxu1 %v5132_v29 }
 0x226   :  { %5532 = vmatpush3.bf16.msra.mxu0 %v6753_v0  ;;  %5829 = vmatpush3.bf16.msra.mxu1 %v6753_v0 }
 0x227   :  { %5533 = vmatprep.subr.bf16.mxu0 %v6754_v1  ;;  %5822 = vmatprep.subr.bf16.mxu1 %v6754_v1 }
 0x22a   :  { %5534 = vmatpush3.bf16.msra.mxu0 %v6755_v2  ;;  %5830 = vmatpush3.bf16.msra.mxu1 %v6755_v2 }
 0x22b   :  { %5631 = vmatprep.subr.bf16.mxu1 %v6756_v16 }
 0x22c   :  { %3061 = vmatmul.mubr.bf16.gmra.mrb[16].mxu0 %v5131_v32  ;;  %3833 = vmatmul.mubr.bf16.gmra.mrb[16].mxu1 %v5131_v32 }
 0x22d   :  { %3070 = vmatprep.mubr.bf16.mxu0 %v5140_v33  ;;  %3842 = vmatprep.mubr.bf16.mxu1 %v5140_v33 }
 0x234   :  { %3071 = vmatmul.mubr.bf16.gmra.mrb[20].mxu0 %v5139_v36  ;;  %3843 = vmatmul.mubr.bf16.gmra.mrb[20].mxu1 %v5139_v36 }
 0x235   :  { %3080 = vmatprep.mubr.bf16.mxu0 %v5148_v37  ;;  %3852 = vmatprep.mubr.bf16.mxu1 %v5148_v37 }
 0x23c   :  { %3081 = vmatmul.mubr.bf16.gmra.mrb[24].mxu0 %v5147_v40  ;;  %3853 = vmatmul.mubr.bf16.gmra.mrb[24].mxu1 %v5147_v40 }
 0x23d   :  { %3090 = vmatprep.mubr.bf16.mxu0 %v5156_v41  ;;  %3862 = vmatprep.mubr.bf16.mxu1 %v5156_v41 }
 0x244   :  { %3091 = vmatmul.mubr.bf16.gmra.mrb[28].mxu0 %v5155_v44  ;;  %3863 = vmatmul.mubr.bf16.gmra.mrb[28].mxu1 %v5155_v44 }
 0x245   :  { %3100 = vmatprep.mubr.bf16.mxu0 %v5164_v45  ;;  %3872 = vmatprep.mubr.bf16.mxu1 %v5164_v45 }
 0x24c   :  { %3101 = vmatmul.mubr.bf16.gmra.mrb[32].mxu0 %v5163_v48  ;;  %3873 = vmatmul.mubr.bf16.gmra.mrb[32].mxu1 %v5163_v48 }
 0x24d   :  { %3110 = vmatprep.mubr.bf16.mxu0 %v5172_v49  ;;  %3882 = vmatprep.mubr.bf16.mxu1 %v5172_v49 }
 0x254   :  { %3111 = vmatmul.mubr.bf16.gmra.mrb[36].mxu0 %v5171_v52  ;;  %3883 = vmatmul.mubr.bf16.gmra.mrb[36].mxu1 %v5171_v52 }
 0x255   :  { %3120 = vmatprep.mubr.bf16.mxu0 %v5180_v53  ;;  %3892 = vmatprep.mubr.bf16.mxu1 %v5180_v53 }
 0x25c   :  { %3121 = vmatmul.mubr.bf16.gmra.mrb[40].mxu0 %v5179_v56  ;;  %3893 = vmatmul.mubr.bf16.gmra.mrb[40].mxu1 %v5179_v56 }
 0x25d   :  { %3130 = vmatprep.mubr.bf16.mxu0 %v5188_v57  ;;  %3902 = vmatprep.mubr.bf16.mxu1 %v5188_v57 }
 0x264   :  { %3131 = vmatmul.mubr.bf16.gmra.mrb[44].mxu0 %v5187_v61  ;;  %3903 = vmatmul.mubr.bf16.gmra.mrb[44].mxu1 %v5187_v61 }
 0x265   :  { %3140 = vmatprep.mubr.bf16.mxu0 %v5196_v63  ;;  %3912 = vmatprep.mubr.bf16.mxu1 %v5196_v63 }
 0x26c   :  { %3141 = vmatmul.mubr.bf16.gmra.mrb[48].mxu0 %v5195_v5  ;;  %3913 = vmatmul.mubr.bf16.gmra.mrb[48].mxu1 %v5195_v5 }
 0x26d   :  { %3150 = vmatprep.mubr.bf16.mxu0 %v5204_v6  ;;  %3922 = vmatprep.mubr.bf16.mxu1 %v5204_v6 }
 0x274   :  { %3151 = vmatmul.mubr.bf16.gmra.mrb[52].mxu0 %v5203_v9  ;;  %3923 = vmatmul.mubr.bf16.gmra.mrb[52].mxu1 %v5203_v9 }
 0x275   :  { %3160 = vmatprep.mubr.bf16.mxu0 %v5212_v10  ;;  %3932 = vmatprep.mubr.bf16.mxu1 %v5212_v10 }
 0x27c   :  { %3161 = vmatmul.mubr.bf16.gmra.mrb[56].mxu0 %v5211_v13  ;;  %3933 = vmatmul.mubr.bf16.gmra.mrb[56].mxu1 %v5211_v13 }
 0x27d   :  { %3170 = vmatprep.mubr.bf16.mxu0 %v5220_v14  ;;  %3942 = vmatprep.mubr.bf16.mxu1 %v5220_v14 }
 0x284   :  { %3171 = vmatmul.mubr.bf16.gmra.mrb[60].mxu0 %v5219_v15  ;;  %3943 = vmatmul.mubr.bf16.gmra.mrb[60].mxu1 %v5219_v15 }
 0x2df   :  { %v3022_v28 = vpop.f32.mrb[0].mxu0  ;;  %v3794_v29 = vpop.f32.mrb[0].mxu1 }
 0x2e0   :  { %v5831_v30 = vadd.f32 %v3022_v28, %v7066_v24  ;;  %v5895_v31 = vadd.f32 %v3794_v29, %v7068_v25  ;;  %v3024_v32 = vpop.f32.mrb[1].mxu0  ;;  %v3796_v33 = vpop.f32.mrb[1].mxu1 }
 0x2e1   :  { %v5832_v34 = vadd.f32 %v3024_v32, %v7070_v26  ;;  %v5896_v35 = vadd.f32 %v3796_v33, %v7072_v27  ;;  %v3026_v36 = vpop.f32.mrb[2].mxu0  ;;  %v3798_v37 = vpop.f32.mrb[2].mxu1 }
 0x2e2   :  { %v5833_v38 = vadd.f32 %v3026_v36, %v7066_v24  ;;  %v5897_v39 = vadd.f32 %v3798_v37, %v7068_v25  ;;  %v3028_v40 = vpop.f32.mrb[3].mxu0  ;;  %v3800_v41 = vpop.f32.mrb[3].mxu1  ;;  %v3953_v44 = vmax.f32 %v5831_v30, 0.0  ;;  %v3955_v45 = vmax.f32 %v5895_v31, 0.0 }
 0x2e3   :  { %v5834_v42 = vadd.f32 %v3028_v40, %v7070_v26  ;;  %v5898_v43 = vadd.f32 %v3800_v41, %v7072_v27  ;;  %v3954_v48 = vmax.f32 %v5832_v34, 0.0  ;;  %v3956_v49 = vmax.f32 %v5896_v35, 0.0 }
 0x2e4   :  { %v3957_v46 = vmax.f32 %v5833_v38, 0.0  ;;  %v3959_v47 = vmax.f32 %v5897_v39, 0.0 }
 0x2e5   :  { %v3958_v50 = vmax.f32 %v5834_v42, 0.0  ;;  %v3960_v51 = vmax.f32 %v5898_v43, 0.0 }
 0x2e6   :  { %v4081_v52 = vpack.c.bf16 %v3957_v46, %v3953_v44  ;;  %v7082_v53 = vpack.c.bf16 %v3959_v47, %v3955_v45 }
 0x2e7   :  { %v4082_v54 = vpack.c.bf16 %v3958_v50, %v3954_v48  ;;  %v7084_v55 = vpack.c.bf16 %v3960_v51, %v3956_v49  ;;  %v3032_v56 = vpop.f32.mrb[4].mxu0  ;;  %v3804_v57 = vpop.f32.mrb[4].mxu1 }
 0x2e8   :  { %v5835_v58 = vadd.f32 %v3032_v56, %v7066_v24  ;;  %v5899_v59 = vadd.f32 %v3804_v57, %v7068_v25  ;;  %v3034_v60 = vpop.f32.mrb[5].mxu0  ;;  %v3806_v61 = vpop.f32.mrb[5].mxu1 }
 0x2e9   :  { %v5836_v62 = vadd.f32 %v3034_v60, %v7070_v26  ;;  %v5900_v63 = vadd.f32 %v3806_v61, %v7072_v27  ;;  %v3036_v0 = vpop.f32.mrb[6].mxu0  ;;  %v3808_v1 = vpop.f32.mrb[6].mxu1  ;;  %4440 = vmatprep.mubr.bf16.mxu0 %v4082_v54 }
 0x2ea   :  { %v5837_v2 = vadd.f32 %v3036_v0, %v7066_v24  ;;  %v5901_v3 = vadd.f32 %v3808_v1, %v7068_v25  ;;  %v3038_v4 = vpop.f32.mrb[7].mxu0  ;;  %v3810_v5 = vpop.f32.mrb[7].mxu1  ;;  %4441 = vmatmul.mubr.bf16.vlgmr.msra.gmra.mrb[64].mxu0 %v4081_v52  ;;  %v3961_v8 = vmax.f32 %v5835_v58, 0.0  ;;  %v3963_v9 = vmax.f32 %v5899_v59, 0.0 }
 0x2eb   :  { %v5838_v6 = vadd.f32 %v3038_v4, %v7070_v26  ;;  %v5902_v7 = vadd.f32 %v3810_v5, %v7072_v27  ;;  %v3962_v12 = vmax.f32 %v5836_v62, 0.0  ;;  %v3964_v13 = vmax.f32 %v5900_v63, 0.0 }
 0x2ec   :  { %v3965_v10 = vmax.f32 %v5837_v2, 0.0  ;;  %v3967_v11 = vmax.f32 %v5901_v3, 0.0 }
 0x2ed   :  { %v3966_v14 = vmax.f32 %v5838_v6, 0.0  ;;  %v3968_v15 = vmax.f32 %v5902_v7, 0.0 }
 0x2ee   :  { %v4085_v16 = vpack.c.bf16 %v3965_v10, %v3961_v8  ;;  %v7094_v17 = vpack.c.bf16 %v3967_v11, %v3963_v9 }
 0x2ef   :  { %v4086_v18 = vpack.c.bf16 %v3966_v14, %v3962_v12  ;;  %v7096_v19 = vpack.c.bf16 %v3968_v15, %v3964_v13  ;;  %v3042_v20 = vpop.f32.mrb[8].mxu0  ;;  %v3814_v21 = vpop.f32.mrb[8].mxu1 }
 0x2f0   :  { %v5839_v22 = vadd.f32 %v3042_v20, %v7066_v24  ;;  %v5903_v23 = vadd.f32 %v3814_v21, %v7068_v25  ;;  %v3044_v28 = vpop.f32.mrb[9].mxu0  ;;  %v3816_v29 = vpop.f32.mrb[9].mxu1 }
 0x2f1   :  { %v5840_v30 = vadd.f32 %v3044_v28, %v7070_v26  ;;  %v5904_v31 = vadd.f32 %v3816_v29, %v7072_v27  ;;  %v3046_v32 = vpop.f32.mrb[10].mxu0  ;;  %v3818_v33 = vpop.f32.mrb[10].mxu1  ;;  %4448 = vmatprep.mubr.bf16.mxu0 %v4086_v18 }
 0x2f2   :  { %v5841_v34 = vadd.f32 %v3046_v32, %v7066_v24  ;;  %v5905_v35 = vadd.f32 %v3818_v33, %v7068_v25  ;;  %v3048_v36 = vpop.f32.mrb[11].mxu0  ;;  %v3820_v37 = vpop.f32.mrb[11].mxu1  ;;  %4449 = vmatmul.mubr.bf16.gmra.mrb[68].mxu0 %v4085_v16  ;;  %v3969_v40 = vmax.f32 %v5839_v22, 0.0  ;;  %v3971_v41 = vmax.f32 %v5903_v23, 0.0 }
 0x2f3   :  { %v5842_v38 = vadd.f32 %v3048_v36, %v7070_v26  ;;  %v5906_v39 = vadd.f32 %v3820_v37, %v7072_v27  ;;  %v3970_v44 = vmax.f32 %v5840_v30, 0.0  ;;  %v3972_v45 = vmax.f32 %v5904_v31, 0.0 }
 0x2f4   :  { %v3973_v42 = vmax.f32 %v5841_v34, 0.0  ;;  %v3975_v43 = vmax.f32 %v5905_v35, 0.0 }
 0x2f5   :  { %v3974_v46 = vmax.f32 %v5842_v38, 0.0  ;;  %v3976_v47 = vmax.f32 %v5906_v39, 0.0 }
 0x2f6   :  { %v4089_v48 = vpack.c.bf16 %v3973_v42, %v3969_v40  ;;  %v7106_v49 = vpack.c.bf16 %v3975_v43, %v3971_v41 }
 0x2f7   :  { %v4090_v50 = vpack.c.bf16 %v3974_v46, %v3970_v44  ;;  %v7108_v51 = vpack.c.bf16 %v3976_v47, %v3972_v45  ;;  %v3052_v52 = vpop.f32.mrb[12].mxu0  ;;  %v3824_v54 = vpop.f32.mrb[12].mxu1 }
 0x2f8   :  { %v5843_v56 = vadd.f32 %v3052_v52, %v7066_v24  ;;  %v5907_v57 = vadd.f32 %v3824_v54, %v7068_v25  ;;  %v3054_v58 = vpop.f32.mrb[13].mxu0  ;;  %v3826_v59 = vpop.f32.mrb[13].mxu1 }
 0x2f9   :  { %v5844_v60 = vadd.f32 %v3054_v58, %v7070_v26  ;;  %v5908_v61 = vadd.f32 %v3826_v59, %v7072_v27  ;;  %v3056_v62 = vpop.f32.mrb[14].mxu0  ;;  %v3828_v63 = vpop.f32.mrb[14].mxu1  ;;  %4456 = vmatprep.mubr.bf16.mxu0 %v4090_v50 }
 0x2fa   :  { %v5845_v0 = vadd.f32 %v3056_v62, %v7066_v24  ;;  %v5909_v1 = vadd.f32 %v3828_v63, %v7068_v25  ;;  %v3058_v2 = vpop.f32.mrb[15].mxu0  ;;  %v3830_v3 = vpop.f32.mrb[15].mxu1  ;;  %4457 = vmatmul.mubr.bf16.gmra.mrb[72].mxu0 %v4089_v48  ;;  %v3977_v6 = vmax.f32 %v5843_v56, 0.0  ;;  %v3979_v7 = vmax.f32 %v5907_v57, 0.0 }
 0x2fb   :  { %v5846_v4 = vadd.f32 %v3058_v2, %v7070_v26  ;;  %v5910_v5 = vadd.f32 %v3830_v3, %v7072_v27  ;;  %v3978_v10 = vmax.f32 %v5844_v60, 0.0  ;;  %v3980_v11 = vmax.f32 %v5908_v61, 0.0 }
 0x2fc   :  { %v3981_v8 = vmax.f32 %v5845_v0, 0.0  ;;  %v3983_v9 = vmax.f32 %v5909_v1, 0.0 }
 0x2fd   :  { %v3982_v12 = vmax.f32 %v5846_v4, 0.0  ;;  %v3984_v13 = vmax.f32 %v5910_v5, 0.0 }
 0x2fe   :  { %v4093_v14 = vpack.c.bf16 %v3981_v8, %v3977_v6  ;;  %v7118_v15 = vpack.c.bf16 %v3983_v9, %v3979_v7 }
 0x2ff   :  { %v4094_v16 = vpack.c.bf16 %v3982_v12, %v3978_v10  ;;  %v7120_v18 = vpack.c.bf16 %v3984_v13, %v3980_v11  ;;  %v3062_v20 = vpop.f32.mrb[16].mxu0  ;;  %v3834_v21 = vpop.f32.mrb[16].mxu1 }
 0x300   :  { %v5847_v22 = vadd.f32 %v3062_v20, %v7066_v24  ;;  %v5911_v23 = vadd.f32 %v3834_v21, %v7068_v25  ;;  %v3064_v28 = vpop.f32.mrb[17].mxu0  ;;  %v3836_v29 = vpop.f32.mrb[17].mxu1 }
 0x301   :  { %v5848_v30 = vadd.f32 %v3064_v28, %v7070_v26  ;;  %v5912_v31 = vadd.f32 %v3836_v29, %v7072_v27  ;;  %v3066_v32 = vpop.f32.mrb[18].mxu0  ;;  %v3838_v33 = vpop.f32.mrb[18].mxu1  ;;  %4464 = vmatprep.mubr.bf16.mxu0 %v4094_v16 }
 0x302   :  { %v5849_v34 = vadd.f32 %v3066_v32, %v7066_v24  ;;  %v5913_v35 = vadd.f32 %v3838_v33, %v7068_v25  ;;  %v3068_v36 = vpop.f32.mrb[19].mxu0  ;;  %v3840_v37 = vpop.f32.mrb[19].mxu1  ;;  %4465 = vmatmul.mubr.bf16.gmra.mrb[76].mxu0 %v4093_v14  ;;  %v3985_v40 = vmax.f32 %v5847_v22, 0.0  ;;  %v3987_v41 = vmax.f32 %v5911_v23, 0.0 }
 0x303   :  { %v5850_v38 = vadd.f32 %v3068_v36, %v7070_v26  ;;  %v5914_v39 = vadd.f32 %v3840_v37, %v7072_v27  ;;  %v3986_v44 = vmax.f32 %v5848_v30, 0.0  ;;  %v3988_v45 = vmax.f32 %v5912_v31, 0.0 }
 0x304   :  { %v3989_v42 = vmax.f32 %v5849_v34, 0.0  ;;  %v3991_v43 = vmax.f32 %v5913_v35, 0.0 }
 0x305   :  { %v3990_v46 = vmax.f32 %v5850_v38, 0.0  ;;  %v3992_v47 = vmax.f32 %v5914_v39, 0.0 }
 0x306   :  { %v4097_v48 = vpack.c.bf16 %v3989_v42, %v3985_v40  ;;  %v7130_v50 = vpack.c.bf16 %v3991_v43, %v3987_v41 }
 0x307   :  { %v4098_v52 = vpack.c.bf16 %v3990_v46, %v3986_v44  ;;  %v7132_v54 = vpack.c.bf16 %v3992_v47, %v3988_v45  ;;  %v3072_v56 = vpop.f32.mrb[20].mxu0  ;;  %v3844_v57 = vpop.f32.mrb[20].mxu1 }
 0x308   :  { %v5851_v58 = vadd.f32 %v3072_v56, %v7066_v24  ;;  %v5915_v59 = vadd.f32 %v3844_v57, %v7068_v25  ;;  %v3074_v60 = vpop.f32.mrb[21].mxu0  ;;  %v3846_v61 = vpop.f32.mrb[21].mxu1 }
 0x309   :  { %v5852_v62 = vadd.f32 %v3074_v60, %v7070_v26  ;;  %v5916_v63 = vadd.f32 %v3846_v61, %v7072_v27  ;;  %v3076_v0 = vpop.f32.mrb[22].mxu0  ;;  %v3848_v1 = vpop.f32.mrb[22].mxu1  ;;  %4472 = vmatprep.mubr.bf16.mxu0 %v4098_v52 }
 0x30a   :  { %v5853_v2 = vadd.f32 %v3076_v0, %v7066_v24  ;;  %v5917_v3 = vadd.f32 %v3848_v1, %v7068_v25  ;;  %v3078_v4 = vpop.f32.mrb[23].mxu0  ;;  %v3850_v5 = vpop.f32.mrb[23].mxu1  ;;  %4473 = vmatmul.mubr.bf16.gmra.mrb[80].mxu0 %v4097_v48  ;;  %v3993_v8 = vmax.f32 %v5851_v58, 0.0  ;;  %v3995_v9 = vmax.f32 %v5915_v59, 0.0 }
 0x30b   :  { %v5854_v6 = vadd.f32 %v3078_v4, %v7070_v26  ;;  %v5918_v7 = vadd.f32 %v3850_v5, %v7072_v27  ;;  %v3994_v12 = vmax.f32 %v5852_v62, 0.0  ;;  %v3996_v13 = vmax.f32 %v5916_v63, 0.0 }
 0x30c   :  { %v3997_v10 = vmax.f32 %v5853_v2, 0.0  ;;  %v3999_v11 = vmax.f32 %v5917_v3, 0.0 }
 0x30d   :  { %v3998_v14 = vmax.f32 %v5854_v6, 0.0  ;;  %v4000_v16 = vmax.f32 %v5918_v7, 0.0 }
 0x30e   :  { %v4101_v20 = vpack.c.bf16 %v3997_v10, %v3993_v8  ;;  %v7142_v21 = vpack.c.bf16 %v3999_v11, %v3995_v9 }
 0x30f   :  { %v4102_v22 = vpack.c.bf16 %v3998_v14, %v3994_v12  ;;  %v7144_v23 = vpack.c.bf16 %v4000_v16, %v3996_v13  ;;  %v3082_v28 = vpop.f32.mrb[24].mxu0  ;;  %v3854_v29 = vpop.f32.mrb[24].mxu1 }
 0x310   :  { %v5855_v30 = vadd.f32 %v3082_v28, %v7066_v24  ;;  %v5919_v31 = vadd.f32 %v3854_v29, %v7068_v25  ;;  %v3084_v32 = vpop.f32.mrb[25].mxu0  ;;  %v3856_v33 = vpop.f32.mrb[25].mxu1 }
 0x311   :  { %v5856_v34 = vadd.f32 %v3084_v32, %v7070_v26  ;;  %v5920_v35 = vadd.f32 %v3856_v33, %v7072_v27  ;;  %v3086_v36 = vpop.f32.mrb[26].mxu0  ;;  %v3858_v37 = vpop.f32.mrb[26].mxu1  ;;  %4480 = vmatprep.mubr.bf16.mxu0 %v4102_v22 }
 0x312   :  { %v5857_v38 = vadd.f32 %v3086_v36, %v7066_v24  ;;  %v5921_v39 = vadd.f32 %v3858_v37, %v7068_v25  ;;  %v3088_v40 = vpop.f32.mrb[27].mxu0  ;;  %v3860_v41 = vpop.f32.mrb[27].mxu1  ;;  %4481 = vmatmul.mubr.bf16.gmra.mrb[84].mxu0 %v4101_v20  ;;  %v4001_v44 = vmax.f32 %v5855_v30, 0.0  ;;  %v4003_v45 = vmax.f32 %v5919_v31, 0.0 }
 0x313   :  { %v5858_v42 = vadd.f32 %v3088_v40, %v7070_v26  ;;  %v5922_v43 = vadd.f32 %v3860_v41, %v7072_v27  ;;  %v4002_v48 = vmax.f32 %v5856_v34, 0.0  ;;  %v4004_v52 = vmax.f32 %v5920_v35, 0.0 }
 0x314   :  { %v4005_v46 = vmax.f32 %v5857_v38, 0.0  ;;  %v4007_v47 = vmax.f32 %v5921_v39, 0.0 }
 0x315   :  { %v4006_v56 = vmax.f32 %v5858_v42, 0.0  ;;  %v4008_v57 = vmax.f32 %v5922_v43, 0.0 }
 0x316   :  { %v4105_v58 = vpack.c.bf16 %v4005_v46, %v4001_v44  ;;  %v7154_v59 = vpack.c.bf16 %v4007_v47, %v4003_v45 }
 0x317   :  { %v4106_v60 = vpack.c.bf16 %v4006_v56, %v4002_v48  ;;  %v7156_v61 = vpack.c.bf16 %v4008_v57, %v4004_v52  ;;  %v3092_v62 = vpop.f32.mrb[28].mxu0  ;;  %v3864_v63 = vpop.f32.mrb[28].mxu1 }
 0x318   :  { %v5859_v0 = vadd.f32 %v3092_v62, %v7066_v24  ;;  %v5923_v1 = vadd.f32 %v3864_v63, %v7068_v25  ;;  %v3094_v2 = vpop.f32.mrb[29].mxu0  ;;  %v3866_v3 = vpop.f32.mrb[29].mxu1 }
 0x319   :  { %v5860_v4 = vadd.f32 %v3094_v2, %v7070_v26  ;;  %v5924_v5 = vadd.f32 %v3866_v3, %v7072_v27  ;;  %v3096_v6 = vpop.f32.mrb[30].mxu0  ;;  %v3868_v7 = vpop.f32.mrb[30].mxu1  ;;  %4488 = vmatprep.mubr.bf16.mxu0 %v4106_v60 }
 0x31a   :  { %v5861_v8 = vadd.f32 %v3096_v6, %v7066_v24  ;;  %v5925_v9 = vadd.f32 %v3868_v7, %v7068_v25  ;;  %v3098_v10 = vpop.f32.mrb[31].mxu0  ;;  %v3870_v11 = vpop.f32.mrb[31].mxu1  ;;  %4489 = vmatmul.mubr.bf16.gmra.mrb[88].mxu0 %v4105_v58  ;;  %v4009_v14 = vmax.f32 %v5859_v0, 0.0  ;;  %v4011_v16 = vmax.f32 %v5923_v1, 0.0 }
 0x31b   :  { %v5862_v12 = vadd.f32 %v3098_v10, %v7070_v26  ;;  %v5926_v13 = vadd.f32 %v3870_v11, %v7072_v27  ;;  %v4010_v28 = vmax.f32 %v5860_v4, 0.0  ;;  %v4012_v29 = vmax.f32 %v5924_v5, 0.0 }
 0x31c   :  { %v4013_v20 = vmax.f32 %v5861_v8, 0.0  ;;  %v4015_v22 = vmax.f32 %v5925_v9, 0.0 }
 0x31d   :  { %v4014_v30 = vmax.f32 %v5862_v12, 0.0  ;;  %v4016_v31 = vmax.f32 %v5926_v13, 0.0 }
 0x31e   :  { %v4109_v32 = vpack.c.bf16 %v4013_v20, %v4009_v14  ;;  %v7166_v33 = vpack.c.bf16 %v4015_v22, %v4011_v16 }
 0x31f   :  { %v4110_v34 = vpack.c.bf16 %v4014_v30, %v4010_v28  ;;  %v7168_v35 = vpack.c.bf16 %v4016_v31, %v4012_v29  ;;  %v3102_v36 = vpop.f32.mrb[32].mxu0  ;;  %v3874_v37 = vpop.f32.mrb[32].mxu1 }
 0x320   :  { %v5863_v38 = vadd.f32 %v3102_v36, %v7066_v24  ;;  %v5927_v39 = vadd.f32 %v3874_v37, %v7068_v25  ;;  %v3104_v40 = vpop.f32.mrb[33].mxu0  ;;  %v3876_v41 = vpop.f32.mrb[33].mxu1 }
 0x321   :  { %v5864_v42 = vadd.f32 %v3104_v40, %v7070_v26  ;;  %v5928_v43 = vadd.f32 %v3876_v41, %v7072_v27  ;;  %v3106_v44 = vpop.f32.mrb[34].mxu0  ;;  %v3878_v45 = vpop.f32.mrb[34].mxu1  ;;  %4496 = vmatprep.mubr.bf16.mxu0 %v4110_v34 }
 0x322   :  { %v5865_v46 = vadd.f32 %v3106_v44, %v7066_v24  ;;  %v5929_v47 = vadd.f32 %v3878_v45, %v7068_v25  ;;  %v3108_v48 = vpop.f32.mrb[35].mxu0  ;;  %v3880_v52 = vpop.f32.mrb[35].mxu1  ;;  %4497 = vmatmul.mubr.bf16.gmra.mrb[92].mxu0 %v4109_v32  ;;  %v4017_v58 = vmax.f32 %v5863_v38, 0.0  ;;  %v4019_v60 = vmax.f32 %v5927_v39, 0.0 }
 0x323   :  { %v5866_v56 = vadd.f32 %v3108_v48, %v7070_v26  ;;  %v5930_v57 = vadd.f32 %v3880_v52, %v7072_v27  ;;  %v4018_v0 = vmax.f32 %v5864_v42, 0.0  ;;  %v4020_v1 = vmax.f32 %v5928_v43, 0.0 }
 0x324   :  { %v4021_v62 = vmax.f32 %v5865_v46, 0.0  ;;  %v4023_v63 = vmax.f32 %v5929_v47, 0.0 }
 0x325   :  { %v4022_v2 = vmax.f32 %v5866_v56, 0.0  ;;  %v4024_v3 = vmax.f32 %v5930_v57, 0.0 }
 0x326   :  { %v4113_v4 = vpack.c.bf16 %v4021_v62, %v4017_v58  ;;  %v7178_v5 = vpack.c.bf16 %v4023_v63, %v4019_v60 }
 0x327   :  { %v4114_v6 = vpack.c.bf16 %v4022_v2, %v4018_v0  ;;  %v7180_v7 = vpack.c.bf16 %v4024_v3, %v4020_v1  ;;  %v3112_v8 = vpop.f32.mrb[36].mxu0  ;;  %v3884_v9 = vpop.f32.mrb[36].mxu1 }
 0x328   :  { %v5867_v10 = vadd.f32 %v3112_v8, %v7066_v24  ;;  %v5931_v11 = vadd.f32 %v3884_v9, %v7068_v25  ;;  %v3114_v12 = vpop.f32.mrb[37].mxu0  ;;  %v3886_v13 = vpop.f32.mrb[37].mxu1 }
 0x329   :  { %v5868_v14 = vadd.f32 %v3114_v12, %v7070_v26  ;;  %v5932_v16 = vadd.f32 %v3886_v13, %v7072_v27  ;;  %v3116_v20 = vpop.f32.mrb[38].mxu0  ;;  %v3888_v22 = vpop.f32.mrb[38].mxu1  ;;  %4504 = vmatprep.mubr.bf16.mxu0 %v4114_v6 }
 0x32a   :  { %v5869_v28 = vadd.f32 %v3116_v20, %v7066_v24  ;;  %v5933_v29 = vadd.f32 %v3888_v22, %v7068_v25  ;;  %v3118_v30 = vpop.f32.mrb[39].mxu0  ;;  %v3890_v31 = vpop.f32.mrb[39].mxu1  ;;  %4505 = vmatmul.mubr.bf16.gmra.mrb[96].mxu0 %v4113_v4  ;;  %v4025_v36 = vmax.f32 %v5867_v10, 0.0  ;;  %v4027_v37 = vmax.f32 %v5931_v11, 0.0 }
 0x32b   :  { %v5870_v32 = vadd.f32 %v3118_v30, %v7070_v26  ;;  %v5934_v34 = vadd.f32 %v3890_v31, %v7072_v27  ;;  %v4026_v40 = vmax.f32 %v5868_v14, 0.0  ;;  %v4028_v41 = vmax.f32 %v5932_v16, 0.0 }
 0x32c   :  { %v4029_v38 = vmax.f32 %v5869_v28, 0.0  ;;  %v4031_v39 = vmax.f32 %v5933_v29, 0.0 }
 0x32d   :  { %v4030_v42 = vmax.f32 %v5870_v32, 0.0  ;;  %v4032_v43 = vmax.f32 %v5934_v34, 0.0 }
 0x32e   :  { %v4117_v44 = vpack.c.bf16 %v4029_v38, %v4025_v36  ;;  %v7190_v45 = vpack.c.bf16 %v4031_v39, %v4027_v37 }
 0x32f   :  { %v4118_v46 = vpack.c.bf16 %v4030_v42, %v4026_v40  ;;  %v7192_v47 = vpack.c.bf16 %v4032_v43, %v4028_v41  ;;  %v3122_v48 = vpop.f32.mrb[40].mxu0  ;;  %v3894_v52 = vpop.f32.mrb[40].mxu1 }
 0x330   :  { %v5871_v56 = vadd.f32 %v3122_v48, %v7066_v24  ;;  %v5935_v57 = vadd.f32 %v3894_v52, %v7068_v25  ;;  %v3124_v58 = vpop.f32.mrb[41].mxu0  ;;  %v3896_v60 = vpop.f32.mrb[41].mxu1 }
 0x331   :  { %v5872_v62 = vadd.f32 %v3124_v58, %v7070_v26  ;;  %v5936_v63 = vadd.f32 %v3896_v60, %v7072_v27  ;;  %v3126_v0 = vpop.f32.mrb[42].mxu0  ;;  %v3898_v1 = vpop.f32.mrb[42].mxu1  ;;  %4512 = vmatprep.mubr.bf16.mxu0 %v4118_v46 }
 0x332   :  { %v5873_v2 = vadd.f32 %v3126_v0, %v7066_v24  ;;  %v5937_v3 = vadd.f32 %v3898_v1, %v7068_v25  ;;  %v3128_v4 = vpop.f32.mrb[43].mxu0  ;;  %v3900_v6 = vpop.f32.mrb[43].mxu1  ;;  %4513 = vmatmul.mubr.bf16.gmra.mrb[100].mxu0 %v4117_v44  ;;  %v4033_v10 = vmax.f32 %v5871_v56, 0.0  ;;  %v4035_v11 = vmax.f32 %v5935_v57, 0.0 }
 0x333   :  { %v5874_v8 = vadd.f32 %v3128_v4, %v7070_v26  ;;  %v5938_v9 = vadd.f32 %v3900_v6, %v7072_v27  ;;  %v4034_v14 = vmax.f32 %v5872_v62, 0.0  ;;  %v4036_v16 = vmax.f32 %v5936_v63, 0.0 }
 0x334   :  { %v4037_v12 = vmax.f32 %v5873_v2, 0.0  ;;  %v4039_v13 = vmax.f32 %v5937_v3, 0.0 }
 0x335   :  { %v4038_v20 = vmax.f32 %v5874_v8, 0.0  ;;  %v4040_v22 = vmax.f32 %v5938_v9, 0.0 }
 0x336   :  { %v4121_v28 = vpack.c.bf16 %v4037_v12, %v4033_v10  ;;  %v7202_v29 = vpack.c.bf16 %v4039_v13, %v4035_v11 }
 0x337   :  { %v4122_v30 = vpack.c.bf16 %v4038_v20, %v4034_v14  ;;  %v7204_v31 = vpack.c.bf16 %v4040_v22, %v4036_v16  ;;  %v3132_v32 = vpop.f32.mrb[44].mxu0  ;;  %v3904_v34 = vpop.f32.mrb[44].mxu1 }
 0x338   :  { %v5875_v36 = vadd.f32 %v3132_v32, %v7066_v24  ;;  %v5939_v37 = vadd.f32 %v3904_v34, %v7068_v25  ;;  %v3134_v38 = vpop.f32.mrb[45].mxu0  ;;  %v3906_v39 = vpop.f32.mrb[45].mxu1 }
 0x339   :  { %v5876_v40 = vadd.f32 %v3134_v38, %v7070_v26  ;;  %v5940_v41 = vadd.f32 %v3906_v39, %v7072_v27  ;;  %v3136_v42 = vpop.f32.mrb[46].mxu0  ;;  %v3908_v43 = vpop.f32.mrb[46].mxu1  ;;  %4520 = vmatprep.mubr.bf16.mxu0 %v4122_v30 }
 0x33a   :  { %v5877_v44 = vadd.f32 %v3136_v42, %v7066_v24  ;;  %v5941_v46 = vadd.f32 %v3908_v43, %v7068_v25  ;;  %v3138_v48 = vpop.f32.mrb[47].mxu0  ;;  %v3910_v52 = vpop.f32.mrb[47].mxu1  ;;  %4521 = vmatmul.mubr.bf16.gmra.mrb[104].mxu0 %v4121_v28  ;;  %v4041_v58 = vmax.f32 %v5875_v36, 0.0  ;;  %v4043_v60 = vmax.f32 %v5939_v37, 0.0 }
 0x33b   :  { %v5878_v56 = vadd.f32 %v3138_v48, %v7070_v26  ;;  %v5942_v57 = vadd.f32 %v3910_v52, %v7072_v27  ;;  %v4042_v0 = vmax.f32 %v5876_v40, 0.0  ;;  %v4044_v1 = vmax.f32 %v5940_v41, 0.0 }
 0x33c   :  { %v4045_v62 = vmax.f32 %v5877_v44, 0.0  ;;  %v4047_v63 = vmax.f32 %v5941_v46, 0.0 }
 0x33d   :  { %v4046_v2 = vmax.f32 %v5878_v56, 0.0  ;;  %v4048_v3 = vmax.f32 %v5942_v57, 0.0 }
 0x33e   :  { %v4125_v4 = vpack.c.bf16 %v4045_v62, %v4041_v58  ;;  %v7214_v6 = vpack.c.bf16 %v4047_v63, %v4043_v60 }
 0x33f   :  { %v4126_v8 = vpack.c.bf16 %v4046_v2, %v4042_v0  ;;  %v7216_v9 = vpack.c.bf16 %v4048_v3, %v4044_v1  ;;  %v3142_v10 = vpop.f32.mrb[48].mxu0  ;;  %v3914_v11 = vpop.f32.mrb[48].mxu1  ;;  %v6757_v0 = vld [vmem:[#allocation7 + $0x80] sm:$0xff]  }
 0x340   :  { %v5879_v12 = vadd.f32 %v3142_v10, %v7066_v24  ;;  %v5943_v13 = vadd.f32 %v3914_v11, %v7068_v25  ;;  %v3144_v14 = vpop.f32.mrb[49].mxu0  ;;  %v3916_v16 = vpop.f32.mrb[49].mxu1 }
 0x341   :  { %v5880_v20 = vadd.f32 %v3144_v14, %v7070_v26  ;;  %v5944_v22 = vadd.f32 %v3916_v16, %v7072_v27  ;;  %v3146_v28 = vpop.f32.mrb[50].mxu0  ;;  %v3918_v30 = vpop.f32.mrb[50].mxu1  ;;  %4528 = vmatprep.mubr.bf16.mxu0 %v4126_v8  ;;  %v6758_v8 = vld [vmem:[#allocation7 + $0xc8] sm:$0xff]  }
 0x342   :  { %v5881_v32 = vadd.f32 %v3146_v28, %v7066_v24  ;;  %v5945_v34 = vadd.f32 %v3918_v30, %v7068_v25  ;;  %v3148_v36 = vpop.f32.mrb[51].mxu0  ;;  %v3920_v37 = vpop.f32.mrb[51].mxu1  ;;  %4529 = vmatmul.mubr.bf16.gmra.mrb[108].mxu0 %v4125_v4  ;;  %v4049_v40 = vmax.f32 %v5879_v12, 0.0  ;;  %v4051_v41 = vmax.f32 %v5943_v13, 0.0 }
 0x343   :  { %v5882_v38 = vadd.f32 %v3148_v36, %v7070_v26  ;;  %v5946_v39 = vadd.f32 %v3920_v37, %v7072_v27  ;;  %v4050_v44 = vmax.f32 %v5880_v20, 0.0  ;;  %v4052_v46 = vmax.f32 %v5944_v22, 0.0 }
 0x344   :  { %v4053_v42 = vmax.f32 %v5881_v32, 0.0  ;;  %v4055_v43 = vmax.f32 %v5945_v34, 0.0  ;;  %v6759_v32 = vld [vmem:[#allocation7 + $0x88] sm:$0xff]  }
 0x345   :  { %v4054_v48 = vmax.f32 %v5882_v38, 0.0  ;;  %v4056_v52 = vmax.f32 %v5946_v39, 0.0  ;;  %v6760_v39 = vld [vmem:[#allocation7 + $0xd0] sm:$0xff]  }
 0x346   :  { %v4129_v56 = vpack.c.bf16 %v4053_v42, %v4049_v40  ;;  %v7226_v57 = vpack.c.bf16 %v4055_v43, %v4051_v41 }
 0x347   :  { %v4130_v58 = vpack.c.bf16 %v4054_v48, %v4050_v44  ;;  %v7228_v60 = vpack.c.bf16 %v4056_v52, %v4052_v46  ;;  %v3152_v62 = vpop.f32.mrb[52].mxu0  ;;  %v3924_v63 = vpop.f32.mrb[52].mxu1 }
 0x348   :  { %v5883_v1 = vadd.f32 %v3152_v62, %v7066_v24  ;;  %v5947_v2 = vadd.f32 %v3924_v63, %v7068_v25  ;;  %v3154_v3 = vpop.f32.mrb[53].mxu0  ;;  %v3926_v4 = vpop.f32.mrb[53].mxu1  ;;  %v6761_v62 = vld [vmem:[#allocation7 + $0x90] sm:$0xff]  }
 0x349   :  { %v5884_v10 = vadd.f32 %v3154_v3, %v7070_v26  ;;  %v5948_v11 = vadd.f32 %v3926_v4, %v7072_v27  ;;  %v3156_v12 = vpop.f32.mrb[54].mxu0  ;;  %v3928_v13 = vpop.f32.mrb[54].mxu1  ;;  %4536 = vmatprep.mubr.bf16.mxu1 %v4130_v58  ;;  %v6762_v3 = vld [vmem:[#allocation7 + $0xd8] sm:$0xff]  }
 0x34a   :  { %v5885_v14 = vadd.f32 %v3156_v12, %v7066_v24  ;;  %v5949_v16 = vadd.f32 %v3928_v13, %v7068_v25  ;;  %v3158_v20 = vpop.f32.mrb[55].mxu0  ;;  %v3930_v22 = vpop.f32.mrb[55].mxu1  ;;  %4537 = vmatmul.mubr.bf16.vlgmr.msra.gmra.mrb[64].mxu1 %v4129_v56  ;;  %v4057_v34 = vmax.f32 %v5883_v1, 0.0  ;;  %v4059_v36 = vmax.f32 %v5947_v2, 0.0 }
 0x34b   :  { %v5886_v28 = vadd.f32 %v3158_v20, %v7070_v26  ;;  %v5950_v30 = vadd.f32 %v3930_v22, %v7072_v27  ;;  %5632 = vmatpush3.bf16.msra.mxu1 %v6757_v0  ;;  %v4058_v40 = vmax.f32 %v5884_v10, 0.0  ;;  %v4060_v41 = vmax.f32 %v5948_v11, 0.0 }
 0x34c   :  { %v4061_v37 = vmax.f32 %v5885_v14, 0.0  ;;  %v4063_v38 = vmax.f32 %v5949_v16, 0.0  ;;  %5633 = vmatprep.subr.bf16.mxu1 %v6758_v8 }
 0x34d   :  { %v4062_v42 = vmax.f32 %v5886_v28, 0.0  ;;  %v4064_v43 = vmax.f32 %v5950_v30, 0.0  ;;  %v6763_v28 = vld [vmem:[#allocation7 + $0x98] sm:$0xff]  }
 0x34e   :  { %v4133_v44 = vpack.c.bf16 %v4061_v37, %v4057_v34  ;;  %v7238_v46 = vpack.c.bf16 %v4063_v38, %v4059_v36  ;;  %v6764_v37 = vld [vmem:[#allocation7 + $0xe0] sm:$0xff]  }
 0x34f   :  { %v4134_v48 = vpack.c.bf16 %v4062_v42, %v4058_v40  ;;  %v7240_v52 = vpack.c.bf16 %v4064_v43, %v4060_v41  ;;  %v3162_v56 = vpop.f32.mrb[56].mxu0  ;;  %v3934_v58 = vpop.f32.mrb[56].mxu1  ;;  %5634 = vmatpush3.bf16.msra.mxu1 %v6759_v32 }
 0x350   :  { %v5887_v63 = vadd.f32 %v3162_v56, %v7066_v24  ;;  %v5951_v0 = vadd.f32 %v3934_v58, %v7068_v25  ;;  %v3164_v1 = vpop.f32.mrb[57].mxu0  ;;  %v3936_v2 = vpop.f32.mrb[57].mxu1  ;;  %5635 = vmatprep.subr.bf16.mxu1 %v6760_v39 }
 0x351   :  { %v5888_v4 = vadd.f32 %v3164_v1, %v7070_v26  ;;  %v5952_v8 = vadd.f32 %v3936_v2, %v7072_v27  ;;  %v3166_v10 = vpop.f32.mrb[58].mxu0  ;;  %v3938_v11 = vpop.f32.mrb[58].mxu1  ;;  %4544 = vmatprep.mubr.bf16.mxu1 %v4134_v48 }
 0x352   :  { %v5889_v12 = vadd.f32 %v3166_v10, %v7066_v24  ;;  %v5953_v13 = vadd.f32 %v3938_v11, %v7068_v25  ;;  %v3168_v14 = vpop.f32.mrb[59].mxu0  ;;  %v3940_v16 = vpop.f32.mrb[59].mxu1  ;;  %4545 = vmatmul.mubr.bf16.gmra.mrb[68].mxu1 %v4133_v44  ;;  %v4065_v30 = vmax.f32 %v5887_v63, 0.0  ;;  %v4067_v32 = vmax.f32 %v5951_v0, 0.0 }
 0x353   :  { %v5890_v20 = vadd.f32 %v3168_v14, %v7070_v26  ;;  %v5954_v22 = vadd.f32 %v3940_v16, %v7072_v27  ;;  %5636 = vmatpush3.bf16.msra.mxu1 %v6761_v62  ;;  %v4066_v38 = vmax.f32 %v5888_v4, 0.0  ;;  %v4068_v39 = vmax.f32 %v5952_v8, 0.0  ;;  %v6765_v62 = vld [vmem:[#allocation7 + $0xa0] sm:$0xff]  }
 0x354   :  { %v4069_v34 = vmax.f32 %v5889_v12, 0.0  ;;  %v4071_v36 = vmax.f32 %v5953_v13, 0.0  ;;  %5637 = vmatprep.subr.bf16.mxu1 %v6762_v3  ;;  %v6766_v3 = vld [vmem:[#allocation7 + $0xe8] sm:$0xff]  }
 0x355   :  { %v4070_v40 = vmax.f32 %v5890_v20, 0.0  ;;  %v4072_v41 = vmax.f32 %v5954_v22, 0.0 }
 0x356   :  { %v4137_v42 = vpack.c.bf16 %v4069_v34, %v4065_v30  ;;  %v7250_v43 = vpack.c.bf16 %v4071_v36, %v4067_v32 }
 0x357   :  { %v4138_v44 = vpack.c.bf16 %v4070_v40, %v4066_v38  ;;  %v7252_v48 = vpack.c.bf16 %v4072_v41, %v4068_v39  ;;  %v3172_v56 = vpop.f32.mrb[60].mxu0  ;;  %v3944_v58 = vpop.f32.mrb[60].mxu1  ;;  %5638 = vmatpush3.bf16.msra.mxu1 %v6763_v28  ;;  %v6767_v28 = vld [vmem:[#allocation7 + $0xa8] sm:$0xff]  }
 0x358   :  { %v5891_v63 = vadd.f32 %v3172_v56, %v7066_v24  ;;  %v5955_v0 = vadd.f32 %v3944_v58, %v7068_v25  ;;  %v3174_v1 = vpop.f32.mrb[61].mxu0  ;;  %v3946_v2 = vpop.f32.mrb[61].mxu1  ;;  %5639 = vmatprep.subr.bf16.mxu1 %v6764_v37  ;;  %v6768_v37 = vld [vmem:[#allocation7 + $0xf0] sm:$0xff]   ;;  %v6771_v56 = vld [vmem:[#allocation7 + $0xb8] sm:$0xff]  }
 0x359   :  { %v5892_v4 = vadd.f32 %v3174_v1, %v7070_v26  ;;  %v5956_v8 = vadd.f32 %v3946_v2, %v7072_v27  ;;  %v3176_v10 = vpop.f32.mrb[62].mxu0  ;;  %v3948_v11 = vpop.f32.mrb[62].mxu1  ;;  %4552 = vmatprep.mubr.bf16.mxu1 %v4138_v44 }
 0x35a   :  { %v5893_v12 = vadd.f32 %v3176_v10, %v7066_v24  ;;  %v5957_v13 = vadd.f32 %v3948_v11, %v7068_v25  ;;  %v3178_v14 = vpop.f32.mrb[63].mxu0  ;;  %v3950_v16 = vpop.f32.mrb[63].mxu1  ;;  %4553 = vmatmul.mubr.bf16.gmra.mrb[72].mxu1 %v4137_v42  ;;  %v4073_v30 = vmax.f32 %v5891_v63, 0.0  ;;  %v4075_v32 = vmax.f32 %v5955_v0, 0.0 }
 0x35b   :  { %v5894_v20 = vadd.f32 %v3178_v14, %v7070_v26  ;;  %v5958_v22 = vadd.f32 %v3950_v16, %v7072_v27  ;;  %5640 = vmatpush3.bf16.msra.mxu1 %v6765_v62  ;;  %v4074_v38 = vmax.f32 %v5892_v4, 0.0  ;;  %v4076_v39 = vmax.f32 %v5956_v8, 0.0  ;;  %v6769_v26 = vld [vmem:[#allocation7 + $0xb0] sm:$0xff]   ;;  %v6770_v27 = vld [vmem:[#allocation7 + $0xf8] sm:$0xff]  }
 0x35c   :  { %v4077_v34 = vmax.f32 %v5893_v12, 0.0  ;;  %v4079_v36 = vmax.f32 %v5957_v13, 0.0  ;;  %5641 = vmatprep.subr.bf16.mxu1 %v6766_v3 }
 0x35d   :  { %v4078_v24 = vmax.f32 %v5894_v20, 0.0  ;;  %v4080_v40 = vmax.f32 %v5958_v22, 0.0 }
 0x35e   :  { %v4141_v25 = vpack.c.bf16 %v4077_v34, %v4073_v30  ;;  %v7262_v41 = vpack.c.bf16 %v4079_v36, %v4075_v32 }
 0x35f   :  { %v4142_v42 = vpack.c.bf16 %v4078_v24, %v4074_v38  ;;  %v7264_v44 = vpack.c.bf16 %v4080_v40, %v4076_v39  ;;  %5642 = vmatpush3.bf16.msra.mxu1 %v6767_v28 }
 0x360   :  { %5643 = vmatprep.subr.bf16.mxu1 %v6768_v37 }
 0x361   :  { %4560 = vmatprep.mubr.bf16.mxu1 %v4142_v42 }
 0x362   :  { %4561 = vmatmul.mubr.bf16.gmra.mrb[76].mxu1 %v4141_v25 }
 0x363   :  { %5644 = vmatpush3.bf16.msra.mxu1 %v6769_v26  ;;  %4601 = vmatprep.mubr.bf16.mxu1 %v7084_v55  ;;  %v6773_v55 = vld [vmem:[#allocation8 + $0x8] sm:$0xff]  }
 0x364   :  { %5645 = vmatprep.subr.bf16.mxu1 %v6770_v27 }
 0x367   :  { %5646 = vmatpush3.bf16.msra.mxu1 %v6771_v56 }
 0x36a   :  { %4602 = vmatmul.mubr.bf16.vlgmr.msra.gmra.mrb[80].mxu1 %v7082_v53  ;;  %v6772_v53 = vld [vmem:[#allocation8] sm:$0xff]  }
 0x36b   :  { %4609 = vmatprep.mubr.bf16.mxu1 %v7096_v19  ;;  %5767 = vmatprep.subr.bf16.mxu0 %v6772_v53  ;;  %v6775_v19 = vld [vmem:[#allocation8 + $0x18] sm:$0xff]  }
 0x36c   :  { %5768 = vmatpush3.bf16.msra.mxu0 %v6772_v53 }
 0x36d   :  { %5769 = vmatprep.subr.bf16.mxu0 %v6773_v55 }
 0x370   :  { %5770 = vmatpush3.bf16.msra.mxu0 %v6773_v55 }
 0x372   :  { %4610 = vmatmul.mubr.bf16.gmra.mrb[84].mxu1 %v7094_v17  ;;  %v6774_v17 = vld [vmem:[#allocation8 + $0x10] sm:$0xff]  }
 0x373   :  { %4617 = vmatprep.mubr.bf16.mxu1 %v7108_v51  ;;  %5771 = vmatprep.subr.bf16.mxu0 %v6774_v17 }
 0x374   :  { %5772 = vmatpush3.bf16.msra.mxu0 %v6774_v17 }
 0x375   :  { %5773 = vmatprep.subr.bf16.mxu0 %v6775_v19 }
 0x378   :  { %5774 = vmatpush3.bf16.msra.mxu0 %v6775_v19 }
 0x37a   :  { %4618 = vmatmul.mubr.bf16.gmra.mrb[88].mxu1 %v7106_v49 }
 0x37b   :  { %4625 = vmatprep.mubr.bf16.mxu1 %v7120_v18 }
 0x382   :  { %4626 = vmatmul.mubr.bf16.gmra.mrb[92].mxu1 %v7118_v15 }
 0x383   :  { %4633 = vmatprep.mubr.bf16.mxu1 %v7132_v54 }
 0x38a   :  { %4634 = vmatmul.mubr.bf16.gmra.mrb[96].mxu1 %v7130_v50  ;;  %v6776_v50 = vld [vmem:[#allocation8 + $0x20] sm:$0xff]  }
 0x38b   :  { %4641 = vmatprep.mubr.bf16.mxu1 %v7144_v23  ;;  %5775 = vmatprep.subr.bf16.mxu0 %v6776_v50  ;;  %v6777_v23 = vld [vmem:[#allocation8 + $0x28] sm:$0xff]  }
 0x38c   :  { %5776 = vmatpush3.bf16.msra.mxu0 %v6776_v50 }
 0x38d   :  { %5777 = vmatprep.subr.bf16.mxu0 %v6777_v23 }
 0x390   :  { %5778 = vmatpush3.bf16.msra.mxu0 %v6777_v23 }
 0x392   :  { %4642 = vmatmul.mubr.bf16.gmra.mrb[100].mxu1 %v7142_v21 }
 0x393   :  { %4649 = vmatprep.mubr.bf16.mxu1 %v7156_v61 }
 0x39a   :  { %4650 = vmatmul.mubr.bf16.gmra.mrb[104].mxu1 %v7154_v59 }
 0x39b   :  { %4657 = vmatprep.mubr.bf16.mxu1 %v7168_v35 }
 0x3a2   :  { %4658 = vmatmul.mubr.bf16.gmra.mrb[108].mxu1 %v7166_v33 }
 0x3a3   :  { %4665 = vmatprep.mubr.bf16.mxu1 %v7180_v7 }
 0x3aa   :  { %4666 = vmatmul.mubr.bf16.gmra.mrb[112].mxu1 %v7178_v5  ;;  %v6778_v5 = vld [vmem:[#allocation8 + $0x30] sm:$0xff]  }
 0x3ab   :  { %4673 = vmatprep.mubr.bf16.mxu1 %v7192_v47  ;;  %5779 = vmatprep.subr.bf16.mxu0 %v6778_v5  ;;  %v6779_v47 = vld [vmem:[#allocation8 + $0x38] sm:$0xff]  }
 0x3ac   :  { %5780 = vmatpush3.bf16.msra.mxu0 %v6778_v5 }
 0x3ad   :  { %5781 = vmatprep.subr.bf16.mxu0 %v6779_v47 }
 0x3b0   :  { %5782 = vmatpush3.bf16.msra.mxu0 %v6779_v47 }
 0x3b2   :  { %4674 = vmatmul.mubr.bf16.gmra.mrb[116].mxu1 %v7190_v45 }
 0x3b3   :  { %4681 = vmatprep.mubr.bf16.mxu1 %v7204_v31 }
 0x3ba   :  { %4682 = vmatmul.mubr.bf16.gmra.mrb[120].mxu1 %v7202_v29 }
 0x3bb   :  { %4689 = vmatprep.mubr.bf16.mxu1 %v7216_v9 }
 0x3bd   :  { %v5535_v49 = vpop.f32.mrb[64].mxu0 }
 0x3be   :  { %v5536_v51 = vpop.f32.mrb[65].mxu0 }
 0x3bf   :  { %v7289_v15 = vadd.f32 %v5536_v51, %v5535_v49  ;;  %v5538_v18 = vpop.f32.mrb[66].mxu0 }
 0x3c0   :  { %v5539_v54 = vpop.f32.mrb[67].mxu0 }
 0x3c1   :  { %v7291_v21 = vadd.f32 %v5539_v54, %v5538_v18 }
 0x3c2   :  { %4690 = vmatmul.mubr.bf16.gmra.mrb[124].mxu1 %v7214_v6 }
 0x3c3   :  { %4697 = vmatprep.mubr.bf16.mxu1 %v7228_v60 }
 0x3c5   :  { %v5541_v59 = vpop.f32.mrb[68].mxu0 }
 0x3c6   :  { %v5542_v61 = vpop.f32.mrb[69].mxu0 }
 0x3c7   :  { %v7295_v33 = vadd.f32 %v5542_v61, %v5541_v59  ;;  %v5544_v35 = vpop.f32.mrb[70].mxu0 }
 0x3c8   :  { %v5545_v7 = vpop.f32.mrb[71].mxu0 }
 0x3c9   :  { %v7297_v45 = vadd.f32 %v5545_v7, %v5544_v35 }
 0x3ca   :  { %4698 = vmatmul.mubr.bf16.gmra.mrb[128].mxu1 %v7226_v57 }
 0x3cb   :  { %4705 = vmatprep.mubr.bf16.mxu1 %v7240_v52 }
 0x3cd   :  { %v5547_v29 = vpop.f32.mrb[72].mxu0 }
 0x3ce   :  { %v5548_v31 = vpop.f32.mrb[73].mxu0 }
 0x3cf   :  { %v7301_v6 = vadd.f32 %v5548_v31, %v5547_v29  ;;  %v5550_v9 = vpop.f32.mrb[74].mxu0 }
 0x3d0   :  { %v5551_v60 = vpop.f32.mrb[75].mxu0 }
 0x3d1   :  { %v7303_v58 = vadd.f32 %v5551_v60, %v5550_v9 }
 0x3d2   :  { %4706 = vmatmul.mubr.bf16.gmra.mrb[132].mxu1 %v7238_v46 }
 0x3d3   :  { %4713 = vmatprep.mubr.bf16.mxu1 %v7252_v48 }
 0x3d5   :  { %v5553_v62 = vpop.f32.mrb[76].mxu0 }
 0x3d6   :  { %v5554_v57 = vpop.f32.mrb[77].mxu0 }
 0x3d7   :  { %v7307_v63 = vadd.f32 %v5554_v57, %v5553_v62  ;;  %v5556_v52 = vpop.f32.mrb[78].mxu0 }
 0x3d8   :  { %v5557_v0 = vpop.f32.mrb[79].mxu0 }
 0x3d9   :  { %v7309_v1 = vadd.f32 %v5557_v0, %v5556_v52 }
 0x3da   :  { %4714 = vmatmul.mubr.bf16.gmra.mrb[136].mxu1 %v7250_v43 }
 0x3db   :  { %4721 = vmatprep.mubr.bf16.mxu1 %v7264_v44 }
 0x3dd   :  { %v5559_v2 = vpop.f32.mrb[80].mxu0 }
 0x3de   :  { %v5560_v3 = vpop.f32.mrb[81].mxu0 }
 0x3df   :  { %v7313_v4 = vadd.f32 %v5560_v3, %v5559_v2  ;;  %v5562_v8 = vpop.f32.mrb[82].mxu0 }
 0x3e0   :  { %v5563_v46 = vpop.f32.mrb[83].mxu0 }
 0x3e1   :  { %v7315_v10 = vadd.f32 %v5563_v46, %v5562_v8 }
 0x3e2   :  { %4722 = vmatmul.mubr.bf16.gmra.mrb[140].mxu1 %v7262_v41 }
 0x3e5   :  { %v5565_v48 = vpop.f32.mrb[84].mxu0 }
 0x3e6   :  { %v5566_v11 = vpop.f32.mrb[85].mxu0 }
 0x3e7   :  { %v7318_v12 = vadd.f32 %v5566_v11, %v5565_v48  ;;  %v5568_v13 = vpop.f32.mrb[86].mxu0 }
 0x3e8   :  { %v5569_v14 = vpop.f32.mrb[87].mxu0 }
 0x3e9   :  { %v7320_v16 = vadd.f32 %v5569_v14, %v5568_v13 }
 0x3ed   :  { %v5571_v43 = vpop.f32.mrb[88].mxu0 }
 0x3ee   :  { %v5572_v20 = vpop.f32.mrb[89].mxu0 }
 0x3ef   :  { %v7322_v22 = vadd.f32 %v5572_v20, %v5571_v43  ;;  %v5574_v28 = vpop.f32.mrb[90].mxu0 }
 0x3f0   :  { %v5575_v30 = vpop.f32.mrb[91].mxu0 }
 0x3f1   :  { %v7324_v32 = vadd.f32 %v5575_v30, %v5574_v28 }
 0x3f5   :  { %v5577_v34 = vpop.f32.mrb[92].mxu0 }
 0x3f6   :  { %v5578_v36 = vpop.f32.mrb[93].mxu0 }
 0x3f7   :  { %v7326_v37 = vadd.f32 %v5578_v36, %v5577_v34  ;;  %v5580_v38 = vpop.f32.mrb[94].mxu0 }
 0x3f8   :  { %v5581_v39 = vpop.f32.mrb[95].mxu0 }
 0x3f9   :  { %v7328_v24 = vadd.f32 %v5581_v39, %v5580_v38 }
 0x3fd   :  { %v5583_v40 = vpop.f32.mrb[96].mxu0 }
 0x3fe   :  { %v5584_v25 = vpop.f32.mrb[97].mxu0 }
 0x3ff   :  { %v7330_v41 = vadd.f32 %v5584_v25, %v5583_v40  ;;  %v5586_v42 = vpop.f32.mrb[98].mxu0  ;;  %v7365_v40 = vld [vmem:[%s7484_s4] ss:$0 sm:$0xff] }
 0x400   :  { %v5587_v44 = vpop.f32.mrb[99].mxu0 }
 0x401   :  { %v7332_v26 = vadd.f32 %v5587_v44, %v5586_v42  ;;  %v4443_v44 = vadd.f32 %v7289_v15, %v7365_v40 }
 0x405   :  { %v5589_v27 = vpop.f32.mrb[100].mxu0 }
 0x406   :  { %v5590_v56 = vpop.f32.mrb[101].mxu0 }
 0x407   :  { %v7334_v53 = vadd.f32 %v5590_v56, %v5589_v27  ;;  %v5592_v55 = vpop.f32.mrb[102].mxu0 }
 0x408   :  { %v5593_v17 = vpop.f32.mrb[103].mxu0 }
 0x409   :  { %v7336_v19 = vadd.f32 %v5593_v17, %v5592_v55  ;;  %v4446_v17 = vadd.f32 %v7291_v21, %v7365_v40 }
 0x40d   :  { %v5595_v49 = vpop.f32.mrb[104].mxu0 }
 0x40e   :  { %v5596_v51 = vpop.f32.mrb[105].mxu0 }
 0x40f   :  { %v7338_v18 = vadd.f32 %v5596_v51, %v5595_v49  ;;  %v5598_v50 = vpop.f32.mrb[106].mxu0 }
 0x410   :  { %v5599_v54 = vpop.f32.mrb[107].mxu0 }
 0x411   :  { %v7340_v23 = vadd.f32 %v5599_v54, %v5598_v50 }
 0x415   :  { %v5601_v59 = vpop.f32.mrb[108].mxu0 }
 0x416   :  { %v5602_v61 = vpop.f32.mrb[109].mxu0 }
 0x417   :  { %v7342_v35 = vadd.f32 %v5602_v61, %v5601_v59  ;;  %v5604_v5 = vpop.f32.mrb[110].mxu0 }
 0x418   :  { %v5605_v7 = vpop.f32.mrb[111].mxu0 }
 0x419   :  { %v7344_v47 = vadd.f32 %v5605_v7, %v5604_v5  ;;  %v4451_v7 = vadd.f32 %v7295_v33, %v7365_v40 }
 0x41d   :  { %v5607_v29 = vpop.f32.mrb[64].mxu1 }
 0x41e   :  { %v5608_v31 = vpop.f32.mrb[65].mxu1 }
 0x41f   :  { %v7346_v9 = vadd.f32 %v5608_v31, %v5607_v29  ;;  %v5610_v60 = vpop.f32.mrb[66].mxu1 }
 0x420   :  { %v5611_v62 = vpop.f32.mrb[67].mxu1 }
 0x421   :  { %v7348_v57 = vadd.f32 %v5611_v62, %v5610_v60  ;;  %v4454_v62 = vadd.f32 %v7297_v45, %v7365_v40 }
 0x425   :  { %v5613_v52 = vpop.f32.mrb[68].mxu1 }
 0x426   :  { %v5614_v0 = vpop.f32.mrb[69].mxu1 }
 0x427   :  { %v7350_v2 = vadd.f32 %v5614_v0, %v5613_v52  ;;  %v5616_v3 = vpop.f32.mrb[70].mxu1 }
 0x428   :  { %v5617_v8 = vpop.f32.mrb[71].mxu1 }
 0x429   :  { %v7352_v46 = vadd.f32 %v5617_v8, %v5616_v3 }
 0x42d   :  { %v5619_v48 = vpop.f32.mrb[72].mxu1 }
 0x42e   :  { %v5620_v11 = vpop.f32.mrb[73].mxu1 }
 0x42f   :  { %v7354_v13 = vadd.f32 %v5620_v11, %v5619_v48  ;;  %v5622_v14 = vpop.f32.mrb[74].mxu1 }
 0x430   :  { %v5623_v43 = vpop.f32.mrb[75].mxu1 }
 0x431   :  { %v7356_v20 = vadd.f32 %v5623_v43, %v5622_v14  ;;  %v4459_v14 = vadd.f32 %v7301_v6, %v7365_v40 }
 0x435   :  { %v5625_v28 = vpop.f32.mrb[76].mxu1 }
 0x436   :  { %v5626_v30 = vpop.f32.mrb[77].mxu1 }
 0x437   :  { %v7358_v34 = vadd.f32 %v5626_v30, %v5625_v28  ;;  %v5628_v36 = vpop.f32.mrb[78].mxu1 }
 0x438   :  { %v5629_v38 = vpop.f32.mrb[79].mxu1 }
 0x439   :  { %v7360_v39 = vadd.f32 %v5629_v38, %v5628_v36  ;;  %v4462_v36 = vadd.f32 %v7303_v58, %v7365_v40 }
 0x43d   :  { %v5647_v25 = vpop.f32.mrb[80].mxu1 }
 0x43e   :  { %v5648_v42 = vpop.f32.mrb[81].mxu1 }
 0x43f   :  { %v5649_v27 = vadd.f32 %v5648_v42, %v5647_v25  ;;  %v5650_v56 = vpop.f32.mrb[82].mxu1 }
 0x440   :  { %v5651_v55 = vpop.f32.mrb[83].mxu1 }
 0x441   :  { %v4604_v49 = vadd.f32 %v5649_v27, %v4443_v44  ;;  %v5652_v51 = vadd.f32 %v5651_v55, %v5650_v56  ;;  %v4467_v55 = vadd.f32 %v7307_v63, %v7365_v40 }
 0x443   :  { %v4607_v50 = vadd.f32 %v5652_v51, %v4446_v17  ;;  %v4730_v54 = vmax.f32 %v4604_v49, 0.0 }
 0x445   :  { %v4731_v59 = vmax.f32 %v4607_v50, 0.0  ;;  %v5653_v61 = vpop.f32.mrb[84].mxu1  ;;  %v4470_v50 = vadd.f32 %v7309_v1, %v7365_v40 }
 0x446   :  { %v5654_v5 = vpop.f32.mrb[85].mxu1 }
 0x447   :  { %v5655_v29 = vadd.f32 %v5654_v5, %v5653_v61  ;;  %v5656_v31 = vpop.f32.mrb[86].mxu1  ;;  %v4762_v60 = vpack.c.bf16 %v4731_v59, %v4730_v54 }
 0x448   :  { %v5657_v15 = vpop.f32.mrb[87].mxu1 }
 0x449   :  { %v4612_v52 = vadd.f32 %v5655_v29, %v4451_v7  ;;  %v5658_v0 = vadd.f32 %v5657_v15, %v5656_v31  ;;  %5783 = vmatprep.mubr.bf16.mxu0 %v4762_v60  ;;  %v4475_v31 = vadd.f32 %v7313_v4, %v7365_v40 }
 0x44b   :  { %v4615_v21 = vadd.f32 %v5658_v0, %v4454_v62  ;;  %v4732_v3 = vmax.f32 %v4612_v52, 0.0  ;;  %v4478_v52 = vadd.f32 %v7315_v10, %v7365_v40 }
 0x44d   :  { %v4733_v8 = vmax.f32 %v4615_v21, 0.0  ;;  %v5659_v48 = vpop.f32.mrb[88].mxu1 }
 0x44e   :  { %v5660_v11 = vpop.f32.mrb[89].mxu1 }
 0x44f   :  { %v4763_v43 = vpack.c.bf16 %v4733_v8, %v4732_v3  ;;  %v5661_v33 = vadd.f32 %v5660_v11, %v5659_v48  ;;  %v5662_v28 = vpop.f32.mrb[90].mxu1 }
 0x450   :  { %v5663_v30 = vpop.f32.mrb[91].mxu1 }
 0x451   :  { %v4620_v38 = vadd.f32 %v5661_v33, %v4459_v14  ;;  %v5664_v45 = vadd.f32 %v5663_v30, %v5662_v28  ;;  %5784 = vmatmul.mubr.bf16.vlgmr.msra.gmra.mrb[112].mxu0 %v4763_v43  ;;  %v4483_v14 = vadd.f32 %v7318_v12, %v7365_v40  ;;  %v4486_v30 = vadd.f32 %v7320_v16, %v7365_v40 }
 0x453   :  { %v4623_v25 = vadd.f32 %v5664_v45, %v4462_v36  ;;  %v4734_v42 = vmax.f32 %v4620_v38, 0.0 }
 0x455   :  { %v4735_v44 = vmax.f32 %v4623_v25, 0.0  ;;  %v5665_v27 = vpop.f32.mrb[92].mxu1 }
 0x456   :  { %v5666_v56 = vpop.f32.mrb[93].mxu1 }
 0x457   :  { %v5667_v17 = vadd.f32 %v5666_v56, %v5665_v27  ;;  %v5668_v6 = vpop.f32.mrb[94].mxu1  ;;  %v4764_v49 = vpack.c.bf16 %v4735_v44, %v4734_v42  ;;  %v4491_v27 = vadd.f32 %v7322_v22, %v7365_v40 }
 0x458   :  { %v5669_v51 = vpop.f32.mrb[95].mxu1 }
 0x459   :  { %v4628_v54 = vadd.f32 %v5667_v17, %v4467_v55  ;;  %v5670_v58 = vadd.f32 %v5669_v51, %v5668_v6  ;;  %5787 = vmatprep.mubr.bf16.mxu0 %v4764_v49  ;;  %v4494_v6 = vadd.f32 %v7324_v32, %v7365_v40 }
 0x45b   :  { %v4631_v59 = vadd.f32 %v5670_v58, %v4470_v50  ;;  %v4736_v61 = vmax.f32 %v4628_v54, 0.0 }
 0x45d   :  { %v4737_v5 = vmax.f32 %v4631_v59, 0.0  ;;  %v5671_v7 = vpop.f32.mrb[96].mxu1 }
 0x45e   :  { %v5672_v29 = vpop.f32.mrb[97].mxu1 }
 0x45f   :  { %v5673_v60 = vadd.f32 %v5672_v29, %v5671_v7  ;;  %v5674_v63 = vpop.f32.mrb[98].mxu1  ;;  %v4765_v15 = vpack.c.bf16 %v4737_v5, %v4736_v61  ;;  %v4499_v61 = vadd.f32 %v7326_v37, %v7365_v40 }
 0x460   :  { %v5675_v62 = vpop.f32.mrb[99].mxu1 }
 0x461   :  { %v4636_v0 = vadd.f32 %v5673_v60, %v4475_v31  ;;  %v5676_v1 = vadd.f32 %v5675_v62, %v5674_v63  ;;  %5788 = vmatmul.mubr.bf16.gmra.mrb[116].mxu0 %v4765_v15  ;;  %v4502_v31 = vadd.f32 %v7328_v24, %v7365_v40 }
 0x463   :  { %v4639_v21 = vadd.f32 %v5676_v1, %v4478_v52  ;;  %v4738_v3 = vmax.f32 %v4636_v0, 0.0  ;;  %v4507_v1 = vadd.f32 %v7330_v41, %v7365_v40 }
 0x465   :  { %v4739_v8 = vmax.f32 %v4639_v21, 0.0  ;;  %v5677_v48 = vpop.f32.mrb[100].mxu1 }
 0x466   :  { %v5678_v11 = vpop.f32.mrb[101].mxu1 }
 0x467   :  { %v5679_v43 = vadd.f32 %v5678_v11, %v5677_v48  ;;  %v5680_v4 = vpop.f32.mrb[102].mxu1  ;;  %v4766_v33 = vpack.c.bf16 %v4739_v8, %v4738_v3  ;;  %v4510_v48 = vadd.f32 %v7332_v26, %v7365_v40 }
 0x468   :  { %v5681_v28 = vpop.f32.mrb[103].mxu1 }
 0x469   :  { %v4644_v36 = vadd.f32 %v5679_v43, %v4483_v14  ;;  %v5682_v10 = vadd.f32 %v5681_v28, %v5680_v4  ;;  %5791 = vmatprep.mubr.bf16.mxu0 %v4766_v33 }
 0x46b   :  { %v4647_v38 = vadd.f32 %v5682_v10, %v4486_v30  ;;  %v4740_v45 = vmax.f32 %v4644_v36, 0.0  ;;  %v4515_v30 = vadd.f32 %v7334_v53, %v7365_v40 }
 0x46d   :  { %v4741_v25 = vmax.f32 %v4647_v38, 0.0  ;;  %v5683_v42 = vpop.f32.mrb[104].mxu1 }
 0x46e   :  { %v5684_v44 = vpop.f32.mrb[105].mxu1 }
 0x46f   :  { %v5685_v56 = vadd.f32 %v5684_v44, %v5683_v42  ;;  %v5686_v12 = vpop.f32.mrb[106].mxu1  ;;  %v4767_v55 = vpack.c.bf16 %v4741_v25, %v4740_v45  ;;  %v4518_v45 = vadd.f32 %v7336_v19, %v7365_v40 }
 0x470   :  { %v5687_v17 = vpop.f32.mrb[107].mxu1 }
 0x471   :  { %v4652_v49 = vadd.f32 %v5685_v56, %v4491_v27  ;;  %v5688_v16 = vadd.f32 %v5687_v17, %v5686_v12  ;;  %5792 = vmatmul.mubr.bf16.gmra.mrb[120].mxu0 %v4767_v55  ;;  %v4523_v55 = vadd.f32 %v7338_v18, %v7365_v40 }
 0x473   :  { %v4655_v51 = vadd.f32 %v5688_v16, %v4494_v6  ;;  %v4742_v50 = vmax.f32 %v4652_v49, 0.0  ;;  %v4526_v16 = vadd.f32 %v7340_v23, %v7365_v40 }
 0x475   :  { %v4743_v54 = vmax.f32 %v4655_v51, 0.0  ;;  %v5689_v58 = vpop.f32.mrb[108].mxu1 }
 0x476   :  { %v5690_v59 = vpop.f32.mrb[109].mxu1 }
 0x477   :  { %v5691_v5 = vadd.f32 %v5690_v59, %v5689_v58  ;;  %v5692_v22 = vpop.f32.mrb[110].mxu1  ;;  %v4768_v7 = vpack.c.bf16 %v4743_v54, %v4742_v50 }
 0x478   :  { %v5693_v29 = vpop.f32.mrb[111].mxu1 }
 0x479   :  { %v4660_v60 = vadd.f32 %v5691_v5, %v4499_v61  ;;  %v5694_v32 = vadd.f32 %v5693_v29, %v5692_v22  ;;  %5795 = vmatprep.mubr.bf16.mxu0 %v4768_v7  ;;  %v4531_v5 = vadd.f32 %v7342_v35, %v7365_v40 }
 0x47b   :  { %v4663_v63 = vadd.f32 %v5694_v32, %v4502_v31  ;;  %v4744_v15 = vmax.f32 %v4660_v60, 0.0  ;;  %v4534_v31 = vadd.f32 %v7344_v47, %v7365_v40 }
 0x47d   :  { %v4745_v62 = vmax.f32 %v4663_v63, 0.0  ;;  %v5695_v52 = vpop.f32.mrb[112].mxu1 }
 0x47e   :  { %v5696_v0 = vpop.f32.mrb[113].mxu1 }
 0x47f   :  { %v5697_v21 = vadd.f32 %v5696_v0, %v5695_v52  ;;  %v5698_v37 = vpop.f32.mrb[114].mxu1  ;;  %v4769_v3 = vpack.c.bf16 %v4745_v62, %v4744_v15  ;;  %v4539_v0 = vadd.f32 %v7346_v9, %v7365_v40 }
 0x480   :  { %v5699_v8 = vpop.f32.mrb[115].mxu1 }
 0x481   :  { %v4668_v11 = vadd.f32 %v5697_v21, %v4507_v1  ;;  %v5700_v24 = vadd.f32 %v5699_v8, %v5698_v37  ;;  %5796 = vmatmul.mubr.bf16.gmra.mrb[124].mxu0 %v4769_v3  ;;  %v4542_v3 = vadd.f32 %v7348_v57, %v7365_v40 }
 0x483   :  { %v4671_v14 = vadd.f32 %v5700_v24, %v4510_v48  ;;  %v4746_v43 = vmax.f32 %v4668_v11, 0.0 }
 0x485   :  { %v4747_v4 = vmax.f32 %v4671_v14, 0.0  ;;  %v5701_v33 = vpop.f32.mrb[116].mxu1 }
 0x486   :  { %v5702_v28 = vpop.f32.mrb[117].mxu1 }
 0x487   :  { %v5703_v36 = vadd.f32 %v5702_v28, %v5701_v33  ;;  %v5704_v41 = vpop.f32.mrb[118].mxu1  ;;  %v4770_v10 = vpack.c.bf16 %v4747_v4, %v4746_v43  ;;  %v4547_v4 = vadd.f32 %v7350_v2, %v7365_v40 }
 0x488   :  { %v5705_v38 = vpop.f32.mrb[119].mxu1 }
 0x489   :  { %v4676_v25 = vadd.f32 %v5703_v36, %v4515_v30  ;;  %v5706_v26 = vadd.f32 %v5705_v38, %v5704_v41  ;;  %5799 = vmatprep.mubr.bf16.mxu0 %v4770_v10  ;;  %v4550_v36 = vadd.f32 %v7352_v46, %v7365_v40 }
 0x48b   :  { %v4679_v42 = vadd.f32 %v5706_v26, %v4518_v45  ;;  %v4748_v44 = vmax.f32 %v4676_v25, 0.0 }
 0x48d   :  { %v4749_v27 = vmax.f32 %v4679_v42, 0.0  ;;  %v5707_v56 = vpop.f32.mrb[120].mxu1  ;;  %v4555_v42 = vadd.f32 %v7354_v13, %v7365_v40 }
 0x48e   :  { %v5708_v12 = vpop.f32.mrb[121].mxu1 }
 0x48f   :  { %v5709_v17 = vadd.f32 %v5708_v12, %v5707_v56  ;;  %v5710_v53 = vpop.f32.mrb[122].mxu1  ;;  %v4771_v6 = vpack.c.bf16 %v4749_v27, %v4748_v44  ;;  %v4558_v12 = vadd.f32 %v7356_v20, %v7365_v40 }
 0x490   :  { %v5711_v49 = vpop.f32.mrb[123].mxu1 }
 0x491   :  { %v4684_v51 = vadd.f32 %v5709_v17, %v4523_v55  ;;  %v5712_v19 = vadd.f32 %v5711_v49, %v5710_v53  ;;  %5800 = vmatmul.mubr.bf16.gmra.mrb[128].mxu0 %v4771_v6 }
 0x493   :  { %v4687_v50 = vadd.f32 %v5712_v19, %v4526_v16  ;;  %v4750_v54 = vmax.f32 %v4684_v51, 0.0  ;;  %v4563_v51 = vadd.f32 %v7358_v34, %v7365_v40 }
 0x495   :  { %v4751_v58 = vmax.f32 %v4687_v50, 0.0  ;;  %v5713_v59 = vpop.f32.mrb[124].mxu1 }
 0x496   :  { %v5714_v61 = vpop.f32.mrb[125].mxu1 }
 0x497   :  { %v5715_v22 = vadd.f32 %v5714_v61, %v5713_v59  ;;  %v5716_v18 = vpop.f32.mrb[126].mxu1  ;;  %v4772_v7 = vpack.c.bf16 %v4751_v58, %v4750_v54  ;;  %v4566_v58 = vadd.f32 %v7360_v39, %v7365_v40 }
 0x498   :  { %v5717_v29 = vpop.f32.mrb[127].mxu1 }
 0x499   :  { %v4692_v60 = vadd.f32 %v5715_v22, %v4531_v5  ;;  %v5718_v23 = vadd.f32 %v5717_v29, %v5716_v18  ;;  %5803 = vmatprep.mubr.bf16.mxu0 %v4772_v7  ;;  %v7434_v7 = vld [vmem:[%s7486_s6] ss:$0 sm:$0xff]  ;;  %s6972_s6 = smov [#allocation10]  }
 0x49a   :  { %s5079_s8 = sshll.u32 %s6972_s6, 4  ;;  %s5080_s8 = int_to_ptr.vmem [resolvable:$true] %s5079_s8 }
 0x49b   :  { %v4695_v32 = vadd.f32 %v5718_v23, %v4534_v31  ;;  %v4752_v63 = vmax.f32 %v4692_v60, 0.0  ;;  %s6932_s9 = scalar_lea.vmem %s5080_s8, 4096  ;;  %p6937_p5 = scmp.lt.s32.totalorder %s5080_s8, %s5080_s8 }
 0x49c   :  { %p6933_p4 = scmp.ne.s32.totalorder %s5080_s8, %s6932_s9  ;;  %p6938_p6 = scmp.lt.s32.totalorder %s6932_s9, %s6932_s9 }
 0x49d   :  { %v4753_v15 = vmax.f32 %v4695_v32, 0.0  ;;  %v5719_v62 = vpop.f32.mrb[128].mxu1 }
 0x49e   :  { %v5720_v52 = vpop.f32.mrb[129].mxu1  ;;  %p6939_p7 = por %p6938_p6, %p6937_p5 }
 0x49f   :  { %v5721_v1 = vadd.f32 %v5720_v52, %v5719_v62  ;;  %v5722_v35 = vpop.f32.mrb[130].mxu1  ;;  %v4773_v21 = vpack.c.bf16 %v4753_v15, %v4752_v63 }
 0x4a0   :  { %v5723_v37 = vpop.f32.mrb[131].mxu1  ;;  %p6940_p8 = pnand %p6939_p7, %p6933_p4 }
 0x4a1   :  { %v4700_v8 = vadd.f32 %v5721_v1, %v4539_v0  ;;  %v5724_v47 = vadd.f32 %v5723_v37, %v5722_v35  ;;  %5804 = vmatmul.mubr.bf16.gmra.mrb[132].mxu0 %v4773_v21 }
 0x4a3   :  { %v4703_v48 = vadd.f32 %v5724_v47, %v4542_v3  ;;  %v4754_v11 = vmax.f32 %v4700_v8, 0.0 }
 0x4a5   :  { %v4755_v24 = vmax.f32 %v4703_v48, 0.0  ;;  %v5725_v14 = vpop.f32.mrb[132].mxu1 }
 0x4a6   :  { %v5726_v43 = vpop.f32.mrb[133].mxu1 }
 0x4a7   :  { %v5727_v33 = vadd.f32 %v5726_v43, %v5725_v14  ;;  %v5728_v9 = vpop.f32.mrb[134].mxu1  ;;  %v4774_v28 = vpack.c.bf16 %v4755_v24, %v4754_v11 }
 0x4a8   :  { %v5729_v30 = vpop.f32.mrb[135].mxu1 }
 0x4a9   :  { %v4708_v41 = vadd.f32 %v5727_v33, %v4547_v4  ;;  %v5730_v57 = vadd.f32 %v5729_v30, %v5728_v9  ;;  %5807 = vmatprep.mubr.bf16.mxu0 %v4774_v28 }
 0x4ab   :  { %v4711_v10 = vadd.f32 %v5730_v57, %v4550_v36  ;;  %v4756_v38 = vmax.f32 %v4708_v41, 0.0 }
 0x4ad   :  { %v4757_v45 = vmax.f32 %v4711_v10, 0.0  ;;  %v5731_v25 = vpop.f32.mrb[136].mxu1 }
 0x4ae   :  { %v5732_v26 = vpop.f32.mrb[137].mxu1 }
 0x4af   :  { %v5733_v44 = vadd.f32 %v5732_v26, %v5731_v25  ;;  %v5734_v2 = vpop.f32.mrb[138].mxu1  ;;  %v4775_v27 = vpack.c.bf16 %v4757_v45, %v4756_v38 }
 0x4b0   :  { %v5735_v56 = vpop.f32.mrb[139].mxu1 }
 0x4b1   :  { %v4716_v55 = vadd.f32 %v5733_v44, %v4555_v42  ;;  %v5736_v46 = vadd.f32 %v5735_v56, %v5734_v2  ;;  %5808 = vmatmul.mubr.bf16.gmra.mrb[136].mxu0 %v4775_v27 }
 0x4b3   :  { %v4719_v17 = vadd.f32 %v5736_v46, %v4558_v12  ;;  %v4758_v53 = vmax.f32 %v4716_v55, 0.0 }
 0x4b5   :  { %v4759_v6 = vmax.f32 %v4719_v17, 0.0  ;;  %v5737_v49 = vpop.f32.mrb[140].mxu1 }
 0x4b6   :  { %v5738_v16 = vpop.f32.mrb[141].mxu1 }
 0x4b7   :  { %v5739_v19 = vadd.f32 %v5738_v16, %v5737_v49  ;;  %v5740_v13 = vpop.f32.mrb[142].mxu1  ;;  %v4776_v50 = vpack.c.bf16 %v4759_v6, %v4758_v53 }
 0x4b8   :  { %v5741_v54 = vpop.f32.mrb[143].mxu1 }
 0x4b9   :  { %v4724_v59 = vadd.f32 %v5739_v19, %v4563_v51  ;;  %v5742_v20 = vadd.f32 %v5741_v54, %v5740_v13  ;;  %5811 = vmatprep.mubr.bf16.mxu0 %v4776_v50 }
 0x4bb   :  { %v4727_v61 = vadd.f32 %v5742_v20, %v4566_v58  ;;  %v4760_v5 = vmax.f32 %v4724_v59, 0.0 }
 0x4bd   :  { %v4761_v22 = vmax.f32 %v4727_v61, 0.0 }
 0x4bf   :  { %v4777_v18 = vpack.c.bf16 %v4761_v22, %v4760_v5 }
 0x4c1   :  { %5812 = vmatmul.mubr.bf16.gmra.mrb[140].mxu0 %v4777_v18 }
 0x524   :  { %v5785_v34 = vpop.f32.mrb[112].mxu0 }
 0x525   :  { %v4892_v29 = vadd.f32 %v5785_v34, %v7434_v7  ;;  %v4883_v31 = vpop.f32.mrb[113].mxu0 }
 0x526   :  { %v4884_v60 = vadd.f32 %v7434_v7, %v4883_v31  ;;  %v5786_v39 = vpop.f32.mrb[114].mxu0 }
 0x527   :  { %6780 = vtanh.f32 %v4892_v29  ;;  %v4895_v40 = vadd.f32 %v5786_v39, %v7434_v7  ;;  %v4886_v23 = vpop.f32.mrb[115].mxu0 }
 0x528   :  { %6782 = vtanh.f32 %v4884_v60  ;;  %v4887_v32 = vadd.f32 %v7434_v7, %v4886_v23 }
 0x529   :  { %6784 = vtanh.f32 %v4895_v40 }
 0x52a   :  { %6786 = vtanh.f32 %v4887_v32 }
 0x531   :  { %v6781_v63 = vpop.eup %6780 }
 0x532   :  { %v6783_v15 = vpop.eup %6782  ;;  %5044 = vst [vmem:[#allocation10 + $0x10] sm:$0xff] %v6781_v63 }
 0x533   :  { %v6785_v62 = vpop.eup %6784  ;;  %5042 = vst [vmem:[#allocation10] sm:$0xff] %v6783_v15 }
 0x534   :  { %v6787_v52 = vpop.eup %6786  ;;  %5045 = vst [vmem:[#allocation10 + $0x18] sm:$0xff] %v6785_v62  ;;  %v5789_v0 = vpop.f32.mrb[116].mxu0 }
 0x535   :  { %5043 = vst [vmem:[#allocation10 + $0x8] sm:$0xff] %v6787_v52  ;;  %v4908_v1 = vadd.f32 %v5789_v0, %v7434_v7  ;;  %v4899_v35 = vpop.f32.mrb[117].mxu0 }
 0x536   :  { %v4900_v21 = vadd.f32 %v7434_v7, %v4899_v35  ;;  %v5790_v37 = vpop.f32.mrb[118].mxu0 }
 0x537   :  { %6788 = vtanh.f32 %v4908_v1  ;;  %v4911_v3 = vadd.f32 %v5790_v37, %v7434_v7  ;;  %v4902_v8 = vpop.f32.mrb[119].mxu0 }
 0x538   :  { %6790 = vtanh.f32 %v4900_v21  ;;  %v4903_v47 = vadd.f32 %v7434_v7, %v4902_v8 }
 0x539   :  { %6792 = vtanh.f32 %v4911_v3 }
 0x53a   :  { %6794 = vtanh.f32 %v4903_v47 }
 0x541   :  { %v6789_v48 = vpop.eup %6788 }
 0x542   :  { %v6791_v11 = vpop.eup %6790  ;;  %5048 = vst [vmem:[#allocation10 + $0x30] sm:$0xff] %v6789_v48 }
 0x543   :  { %v6793_v24 = vpop.eup %6792  ;;  %5046 = vst [vmem:[#allocation10 + $0x20] sm:$0xff] %v6791_v11 }
 0x544   :  { %v6795_v14 = vpop.eup %6794  ;;  %5049 = vst [vmem:[#allocation10 + $0x38] sm:$0xff] %v6793_v24  ;;  %v5793_v43 = vpop.f32.mrb[120].mxu0 }
 0x545   :  { %5047 = vst [vmem:[#allocation10 + $0x28] sm:$0xff] %v6795_v14  ;;  %v4924_v4 = vadd.f32 %v5793_v43, %v7434_v7  ;;  %v4915_v33 = vpop.f32.mrb[121].mxu0 }
 0x546   :  { %v4916_v9 = vadd.f32 %v7434_v7, %v4915_v33  ;;  %v5794_v28 = vpop.f32.mrb[122].mxu0 }
 0x547   :  { %6796 = vtanh.f32 %v4924_v4  ;;  %v4927_v30 = vadd.f32 %v5794_v28, %v7434_v7  ;;  %v4918_v36 = vpop.f32.mrb[123].mxu0 }
 0x548   :  { %6798 = vtanh.f32 %v4916_v9  ;;  %v4919_v41 = vadd.f32 %v7434_v7, %v4918_v36 }
 0x549   :  { %6800 = vtanh.f32 %v4927_v30 }
 0x54a   :  { %6802 = vtanh.f32 %v4919_v41 }
 0x551   :  { %v6797_v57 = vpop.eup %6796 }
 0x552   :  { %v6799_v10 = vpop.eup %6798  ;;  %5052 = vst [vmem:[#allocation10 + $0x50] sm:$0xff] %v6797_v57 }
 0x553   :  { %v6801_v38 = vpop.eup %6800  ;;  %5050 = vst [vmem:[#allocation10 + $0x40] sm:$0xff] %v6799_v10 }
 0x554   :  { %v6803_v45 = vpop.eup %6802  ;;  %5053 = vst [vmem:[#allocation10 + $0x58] sm:$0xff] %v6801_v38  ;;  %v5797_v25 = vpop.f32.mrb[124].mxu0 }
 0x555   :  { %5051 = vst [vmem:[#allocation10 + $0x48] sm:$0xff] %v6803_v45  ;;  %v4940_v26 = vadd.f32 %v5797_v25, %v7434_v7  ;;  %v4931_v42 = vpop.f32.mrb[125].mxu0 }
 0x556   :  { %v4932_v44 = vadd.f32 %v7434_v7, %v4931_v42  ;;  %v5798_v2 = vpop.f32.mrb[126].mxu0 }
 0x557   :  { %6804 = vtanh.f32 %v4940_v26  ;;  %v4943_v27 = vadd.f32 %v5798_v2, %v7434_v7  ;;  %v4934_v56 = vpop.f32.mrb[127].mxu0 }
 0x558   :  { %6806 = vtanh.f32 %v4932_v44  ;;  %v4935_v12 = vadd.f32 %v7434_v7, %v4934_v56 }
 0x559   :  { %6808 = vtanh.f32 %v4943_v27 }
 0x55a   :  { %6810 = vtanh.f32 %v4935_v12 }
 0x561   :  { %v6805_v55 = vpop.eup %6804 }
 0x562   :  { %v6807_v46 = vpop.eup %6806  ;;  %5056 = vst [vmem:[#allocation10 + $0x70] sm:$0xff] %v6805_v55 }
 0x563   :  { %v6809_v17 = vpop.eup %6808  ;;  %5054 = vst [vmem:[#allocation10 + $0x60] sm:$0xff] %v6807_v46 }
 0x564   :  { %v6811_v53 = vpop.eup %6810  ;;  %5057 = vst [vmem:[#allocation10 + $0x78] sm:$0xff] %v6809_v17  ;;  %v5801_v6 = vpop.f32.mrb[128].mxu0 }
 0x565   :  { %5055 = vst [vmem:[#allocation10 + $0x68] sm:$0xff] %v6811_v53  ;;  %v4956_v49 = vadd.f32 %v5801_v6, %v7434_v7  ;;  %v4947_v16 = vpop.f32.mrb[129].mxu0 }
 0x566   :  { %v4948_v51 = vadd.f32 %v7434_v7, %v4947_v16  ;;  %v5802_v19 = vpop.f32.mrb[130].mxu0 }
 0x567   :  { %6812 = vtanh.f32 %v4956_v49  ;;  %v4959_v13 = vadd.f32 %v5802_v19, %v7434_v7  ;;  %v4950_v50 = vpop.f32.mrb[131].mxu0 }
 0x568   :  { %6814 = vtanh.f32 %v4948_v51  ;;  %v4951_v54 = vadd.f32 %v7434_v7, %v4950_v50 }
 0x569   :  { %6816 = vtanh.f32 %v4959_v13 }
 0x56a   :  { %6818 = vtanh.f32 %v4951_v54 }
 0x571   :  { %v6813_v58 = vpop.eup %6812 }
 0x572   :  { %v6815_v59 = vpop.eup %6814  ;;  %5060 = vst [vmem:[#allocation10 + $0x90] sm:$0xff] %v6813_v58 }
 0x573   :  { %v6817_v20 = vpop.eup %6816  ;;  %5058 = vst [vmem:[#allocation10 + $0x80] sm:$0xff] %v6815_v59 }
 0x574   :  { %v6819_v61 = vpop.eup %6818  ;;  %5061 = vst [vmem:[#allocation10 + $0x98] sm:$0xff] %v6817_v20  ;;  %v5805_v5 = vpop.f32.mrb[132].mxu0 }
 0x575   :  { %5059 = vst [vmem:[#allocation10 + $0x88] sm:$0xff] %v6819_v61  ;;  %v4972_v22 = vadd.f32 %v5805_v5, %v7434_v7  ;;  %v4963_v18 = vpop.f32.mrb[133].mxu0 }
 0x576   :  { %v4964_v34 = vadd.f32 %v7434_v7, %v4963_v18  ;;  %v5806_v29 = vpop.f32.mrb[134].mxu0 }
 0x577   :  { %6820 = vtanh.f32 %v4972_v22  ;;  %v4975_v31 = vadd.f32 %v5806_v29, %v7434_v7  ;;  %v4966_v60 = vpop.f32.mrb[135].mxu0 }
 0x578   :  { %6822 = vtanh.f32 %v4964_v34  ;;  %v4967_v39 = vadd.f32 %v7434_v7, %v4966_v60 }
 0x579   :  { %6824 = vtanh.f32 %v4975_v31 }
 0x57a   :  { %6826 = vtanh.f32 %v4967_v39 }
 0x581   :  { %v6821_v40 = vpop.eup %6820 }
 0x582   :  { %v6823_v23 = vpop.eup %6822  ;;  %5064 = vst [vmem:[#allocation10 + $0xb0] sm:$0xff] %v6821_v40 }
 0x583   :  { %v6825_v32 = vpop.eup %6824  ;;  %5062 = vst [vmem:[#allocation10 + $0xa0] sm:$0xff] %v6823_v23 }
 0x584   :  { %v6827_v63 = vpop.eup %6826  ;;  %5065 = vst [vmem:[#allocation10 + $0xb8] sm:$0xff] %v6825_v32  ;;  %v5809_v15 = vpop.f32.mrb[136].mxu0 }
 0x585   :  { %5063 = vst [vmem:[#allocation10 + $0xa8] sm:$0xff] %v6827_v63  ;;  %v4988_v62 = vadd.f32 %v5809_v15, %v7434_v7  ;;  %v4979_v52 = vpop.f32.mrb[137].mxu0 }
 0x586   :  { %v4980_v0 = vadd.f32 %v7434_v7, %v4979_v52  ;;  %v5810_v1 = vpop.f32.mrb[138].mxu0 }
 0x587   :  { %6828 = vtanh.f32 %v4988_v62  ;;  %v4991_v35 = vadd.f32 %v5810_v1, %v7434_v7  ;;  %v4982_v21 = vpop.f32.mrb[139].mxu0 }
 0x588   :  { %6830 = vtanh.f32 %v4980_v0  ;;  %v4983_v37 = vadd.f32 %v7434_v7, %v4982_v21 }
 0x589   :  { %6832 = vtanh.f32 %v4991_v35 }
 0x58a   :  { %6834 = vtanh.f32 %v4983_v37 }
 0x591   :  { %v6829_v3 = vpop.eup %6828 }
 0x592   :  { %v6831_v8 = vpop.eup %6830  ;;  %5068 = vst [vmem:[#allocation10 + $0xd0] sm:$0xff] %v6829_v3 }
 0x593   :  { %v6833_v47 = vpop.eup %6832  ;;  %5066 = vst [vmem:[#allocation10 + $0xc0] sm:$0xff] %v6831_v8 }
 0x594   :  { %v6835_v48 = vpop.eup %6834  ;;  %5069 = vst [vmem:[#allocation10 + $0xd8] sm:$0xff] %v6833_v47  ;;  %v5813_v11 = vpop.f32.mrb[140].mxu0 }
 0x595   :  { %5067 = vst [vmem:[#allocation10 + $0xc8] sm:$0xff] %v6835_v48  ;;  %v5004_v24 = vadd.f32 %v5813_v11, %v7434_v7  ;;  %v4995_v14 = vpop.f32.mrb[141].mxu0 }
 0x596   :  { %v4996_v43 = vadd.f32 %v7434_v7, %v4995_v14  ;;  %v5814_v4 = vpop.f32.mrb[142].mxu0 }
 0x597   :  { %6836 = vtanh.f32 %v5004_v24  ;;  %v5007_v33 = vadd.f32 %v5814_v4, %v7434_v7  ;;  %v4998_v9 = vpop.f32.mrb[143].mxu0 }
 0x598   :  { %6838 = vtanh.f32 %v4996_v43  ;;  %v4999_v28 = vadd.f32 %v7434_v7, %v4998_v9 }
 0x599   :  { %6840 = vtanh.f32 %v5007_v33 }
 0x59a   :  { %6842 = vtanh.f32 %v4999_v28 }
 0x5a1   :  { %v6837_v30 = vpop.eup %6836 }
 0x5a2   :  { %v6839_v36 = vpop.eup %6838  ;;  %5072 = vst [vmem:[#allocation10 + $0xf0] sm:$0xff] %v6837_v30 }
 0x5a3   :  { %v6841_v41 = vpop.eup %6840  ;;  %5070 = vst [vmem:[#allocation10 + $0xe0] sm:$0xff] %v6839_v36 }
 0x5a4   :  { %v6843_v57 = vpop.eup %6842  ;;  %5073 = vst [vmem:[#allocation10 + $0xf8] sm:$0xff] %v6841_v41 }
 0x5a5   :  { %5071 = vst [vmem:[#allocation10 + $0xe8] sm:$0xff] %v6843_v57 }
 0x5a6   :  { %6943 = shalt.err (!%p6940_p8)
}
 0x5a7   :  { %s6944_s12 = scalar_lea.hbm %s7487_s7, 4096 }
 0x5a8   :  { %p6945_p9 = scmp.ne.s32.totalorder %s7487_s7, %s6944_s12  ;;  %p6948_p10 = scmp.lt.u32.totalorder %s6944_s12, %s7487_s7 }
 0x5aa   :  { %p6950_p11 = pnand %p6948_p10, %p6945_p9 }
 0x5ac   :  { %6953 = shalt.err (!%p6950_p11)
}
 0x5ad   :  { %s6973_s16 = smov 128   ;;  %s6974_s17 = smov 8  }
 0x5ae   :  { %5085 = dma.vmem_to_hbm [thread:$0]  %s5080_s8, 4096, %s7487_s7, [#allocation4], %s6973_s16, %s6973_s16, %s6974_s17  }
 0x5af   :  { %6960 = dma.done.wait [#allocation4], 4096  }
 0x5b0   :  { %6961 = vsyncadd [#allocation4], 4294963200 }
 0x5b1   :  { %5089 = vsyncpa [#allocation3], 1 }
 0x5b2   :  { %5090 = vsyncpa [#allocation6], 1 }
 0x5b3   :  { %5091 = vsyncpa [#allocation9], 1 }
 0x5b4   :  { %5092 = vsyncpa [#allocation4], 1 }

</bundles_post_ra>
